<compile_context>
chip_gen: v7x
topology: tpu7x:2x2x1
jax: 0.10.0
libtpu: 0.0.40
codegen_flags: <defaults>
</compile_context>

<pallas_src>
import functools

import jax
import jax.numpy as jnp
from jax.experimental import pallas as pl
from jax.experimental.pallas import tpu as pltpu

_EPS = 1e-5                       # PyTorch BatchNorm2d default eps
_SLOPE = 0.01                     # PyTorch LeakyReLU default negative_slope
_STRIP_BUDGET = 4 * 1024 * 1024   # bytes for one f32 input row strip (Pallas double-buffers it)


# ----------------------------- Pallas kernels ------------------------------ #

def _conv3x3_kernel(x_ref, w_ref, sc_ref, sh_ref, y_ref, ps_ref, pq_ref, *, pre_act, slope):
    """Fused: [optional BN-affine + LeakyReLU on the input strip] -> 3x3 conv (9 shifted bf16
    matmuls, f32 accumulation) -> conv output + per-tile BN partial (sum, sumsq) epilogue.

    x_ref : (1, TH+2, W+2, Cin)  spatially padded input row strip (halo = 1 row / 1 col)
    w_ref : (9, Cin, Cout)       bf16 weights, tap index k = ky*3 + kx
    sc/sh : (1, 1, Cin)          previous-layer BN affine (used only when pre_act=True)
    y_ref : (1, TH*W, Cout)      conv output (pre-BN) for this strip
    ps/pq : (1, 1, Cout)         per-strip partial sum / sum-of-squares of y
    """
    _, thp2, wp2, cin = x_ref.shape
    th, w = thp2 - 2, wp2 - 2
    cout = w_ref.shape[2]

    x = x_ref[0]                                           # (TH+2, W+2, Cin) f32
    if pre_act:
        # Consumer-fused BatchNorm affine + LeakyReLU of the previous layer.
        x = x * sc_ref[...] + sh_ref[...]
        x = jnp.where(x >= 0.0, x, slope * x)

    acc = jnp.zeros((th * w, cout), jnp.float32)
    for ky in range(3):
        for kx in range(3):
            patch = x[ky:ky + th, kx:kx + w, :].reshape(th * w, cin).astype(jnp.bfloat16)
            acc = acc + jnp.dot(patch, w_ref[ky * 3 + kx],
                                preferred_element_type=jnp.float32)

    y_ref[0] = acc
    ps_ref[0] = jnp.sum(acc, axis=0, keepdims=True)
    pq_ref[0] = jnp.sum(acc * acc, axis=0, keepdims=True)


def _conv3x3_fused(strips, w9, sc, sh, *, pre_act, slope):
    """strips: (G, TH+2, W+2, Cin) f32; w9: (9, Cin, Cout) bf16; sc/sh: (1,1,Cin) f32."""
    g, thp2, wp2, cin = strips.shape
    th, w = thp2 - 2, wp2 - 2
    cout = w9.shape[-1]
    kernel = functools.partial(_conv3x3_kernel, pre_act=pre_act, slope=slope)
    return pl.pallas_call(
        kernel,
        out_shape=(jax.ShapeDtypeStruct((g, th * w, cout), jnp.float32),
                   jax.ShapeDtypeStruct((g, 1, cout), jnp.float32),
                   jax.ShapeDtypeStruct((g, 1, cout), jnp.float32)),
        grid=(g,),
        in_specs=[pl.BlockSpec((1, thp2, wp2, cin), lambda i: (i, 0, 0, 0)),
                  pl.BlockSpec((9, cin, cout), lambda i: (0, 0, 0)),
                  pl.BlockSpec((1, 1, cin), lambda i: (0, 0, 0)),
                  pl.BlockSpec((1, 1, cin), lambda i: (0, 0, 0))],
        out_specs=(pl.BlockSpec((1, th * w, cout), lambda i: (i, 0, 0)),
                   pl.BlockSpec((1, 1, cout), lambda i: (i, 0, 0)),
                   pl.BlockSpec((1, 1, cout), lambda i: (i, 0, 0))),
        compiler_params=pltpu.CompilerParams(dimension_semantics=("parallel",)),
    )(strips, w9, sc, sh)


def _bn_lrelu_kernel(x_ref, sc_ref, sh_ref, o_ref, *, slope):
    y = x_ref[...] * sc_ref[...] + sh_ref[...]
    o_ref[...] = jnp.where(y >= 0.0, y, slope * y)


def _bn_lrelu(y_ld, sc_ld, sh_ld, *, slope):
    """Final BN-affine + LeakyReLU on a lane-dense (G, TH, W*C) layout."""
    g, th, wc = y_ld.shape
    return pl.pallas_call(
        functools.partial(_bn_lrelu_kernel, slope=slope),
        out_shape=jax.ShapeDtypeStruct((g, th, wc), jnp.float32),
        grid=(g,),
        in_specs=[pl.BlockSpec((1, th, wc), lambda i: (i, 0, 0)),
                  pl.BlockSpec((1, 1, wc), lambda i: (0, 0, 0)),
                  pl.BlockSpec((1, 1, wc), lambda i: (0, 0, 0))],
        out_specs=pl.BlockSpec((1, th, wc), lambda i: (i, 0, 0)),
        compiler_params=pltpu.CompilerParams(dimension_semantics=("parallel",)),
    )(y_ld, sc_ld, sh_ld)


# ------------------------------- JAX glue ----------------------------------- #

def _interp_matrix(out_size, in_size):
    """Dense (out_size, in_size) bilinear interpolation matrix, align_corners=True."""
    if out_size == 1:
        src = jnp.zeros((1,), jnp.float32)
    else:
        src = jnp.arange(out_size, dtype=jnp.float32) * ((in_size - 1) / (out_size - 1))
    i0 = jnp.clip(jnp.floor(src).astype(jnp.int32), 0, in_size - 1)
    i1 = jnp.minimum(i0 + 1, in_size - 1)
    w1 = src - i0.astype(jnp.float32)
    w0 = 1.0 - w1
    rows = jnp.arange(out_size)
    m = jnp.zeros((out_size, in_size), jnp.float32)
    m = m.at[rows, i0].add(w0)
    m = m.at[rows, i1].add(w1)
    return m


def _pick_tile_h(h, w, c, budget_bytes=_STRIP_BUDGET):
    """Largest divisor of H whose f32 halo strip fits the VMEM budget."""
    for th in range(h, 0, -1):
        if h % th == 0 and (th + 2) * (w + 2) * c * 4 <= budget_bytes:
            return th
    return 1


def _row_strips(x_nhwc, th, fill):
    """Spatially pad x with per-channel `fill` and cut into (N*T, TH+2, W+2, C) halo row strips."""
    n, h, w, c = x_nhwc.shape
    pad = jnp.broadcast_to(fill.astype(jnp.float32).reshape(1, 1, 1, c), (n, h + 2, w + 2, c))
    xp = pad.at[:, 1:h + 1, 1:w + 1, :].set(x_nhwc)
    t = h // th
    if t == 1:
        s = xp[:, None]
    else:
        # TODO(synk): the overlapping-strip pack (~(TH+2)/TH duplication) stays in XLA glue.
        s = jnp.stack([xp[:, i * th:i * th + th + 2] for i in range(t)], axis=1)
    return s.reshape(n * t, th + 2, w + 2, c)


@jax.jit
def _upsample_bn_forward(x, concat_with, w1, w2):
    n, _, h_in, w_in = x.shape
    _, _, ho, wo = concat_with.shape
    cout = w1.shape[0]
    slope, eps = _SLOPE, _EPS

    # --- bilinear upsample (align_corners=True) as separable dense matmuls, in NHWC ---
    # TODO(synk): two tiny dense matmuls kept in plain JAX (not the Pallas hot path).
    x_nhwc = jnp.transpose(x, (0, 2, 3, 1))
    skip_nhwc = jnp.transpose(concat_with, (0, 2, 3, 1))
    lh = _interp_matrix(ho, h_in)
    lw = _interp_matrix(wo, w_in)
    up = jnp.einsum('oh,nhwc->nowc', lh, x_nhwc)
    up = jnp.einsum('pw,nowc->nopc', lw, up)
    f = jnp.concatenate([up, skip_nhwc], axis=-1)            # (N, Ho, Wo, Cin) NHWC
    cin = f.shape[-1]
    m = n * ho * wo

    # --- conv1 (3x3, pad 1; bias cancelled by the training-mode BN) + fused BN1 stats ---
    w1m = jnp.transpose(w1, (2, 3, 1, 0)).reshape(9, cin, cout).astype(jnp.bfloat16)
    th1 = _pick_tile_h(ho, wo, cin)
    s1 = _row_strips(f, th1, jnp.zeros((cin,), jnp.float32))
    id_sc = jnp.ones((1, 1, cin), jnp.float32)
    id_sh = jnp.zeros((1, 1, cin), jnp.float32)
    y1, ps1, pq1 = _conv3x3_fused(s1, w1m, id_sc, id_sh, pre_act=False, slope=slope)

    mean1 = jnp.sum(ps1, axis=0) / m                          # (1, Cout), biased batch stats
    var1 = jnp.maximum(jnp.sum(pq1, axis=0) / m - mean1 * mean1, 0.0)
    scale1 = jax.lax.rsqrt(var1 + eps)                        # BN gamma = 1 (fresh module)
    shift1 = -mean1 * scale1                                  # BN beta  = 0

    # --- conv2 with BN1-affine + LeakyReLU fused into its input stage + fused BN2 stats ---
    # Halo of y1 is filled with the per-channel batch mean so the fused affine+LReLU maps it
    # exactly to 0 (== PyTorch's zero-padded activation).
    w2m = jnp.transpose(w2, (2, 3, 1, 0)).reshape(9, cout, cout).astype(jnp.bfloat16)
    y1_nhwc = y1.reshape(n, ho, wo, cout)
    th2 = _pick_tile_h(ho, wo, cout)
    s2 = _row_strips(y1_nhwc, th2, mean1.reshape(-1))
    y2, ps2, pq2 = _conv3x3_fused(s2, w2m, scale1.reshape(1, 1, cout),
                                  shift1.reshape(1, 1, cout), pre_act=True, slope=slope)

    mean2 = jnp.sum(ps2, axis=0) / m
    var2 = jnp.maximum(jnp.sum(pq2, axis=0) / m - mean2 * mean2, 0.0)
    scale2 = jax.lax.rsqrt(var2 + eps)
    shift2 = -mean2 * scale2

    # --- final BN2-affine + LeakyReLU on a lane-dense (TH2, Wo*Cout) layout ---
    g2 = y2.shape[0]
    y2_ld = y2.reshape(g2, th2, wo * cout)                    # free reshape (contiguous)
    sc_ld = jnp.tile(scale2.reshape(-1), wo).reshape(1, 1, wo * cout)
    sh_ld = jnp.tile(shift2.reshape(-1), wo).reshape(1, 1, wo * cout)
    out = _bn_lrelu(y2_ld, sc_ld, sh_ld, slope=slope)

    out = out.reshape(n, ho, wo, cout)
    return jnp.transpose(out, (0, 3, 1, 2))                   # back to NCHW


class UpSampleBN:
    """JAX/Pallas equivalent of the PyTorch UpSampleBN module (deterministic init).

    Training-mode BatchNorm (batch statistics, gamma=1, beta=0).  The conv biases are kept as
    parameters for interface parity but are not used in compute: a per-channel constant added
    before a training-mode BatchNorm is exactly cancelled by the mean subtraction.
    # TODO(synk): BatchNorm running_mean/var state updates are not modeled (output-equivalent).
    """

    def __init__(self, skip_input, output_features, key):
        k1, k2, k3, k4 = jax.random.split(key, 4)
        self.w1 = 0.05 * jax.random.normal(k1, (output_features, skip_input, 3, 3), jnp.float32)
        self.b1 = 0.05 * jax.random.normal(k2, (output_features,), jnp.float32)
        self.w2 = 0.05 * jax.random.normal(k3, (output_features, output_features, 3, 3), jnp.float32)
        self.b2 = 0.05 * jax.random.normal(k4, (output_features,), jnp.float32)

    def __call__(self, x, concat_with):
        # x, concat_with: NCHW float32
        return _upsample_bn_forward(x, concat_with, self.w1, self.w2)


if __name__ == "__main__":
    key = jax.random.PRNGKey(0)
    kx, kc, kp = jax.random.split(key, 3)

    # x: low-res features, concat_with: skip connection at target resolution (both NCHW).
    x = jax.random.normal(kx, (2, 8, 8, 8), jnp.float32)
    concat_with = jax.random.normal(kc, (2, 8, 16, 16), jnp.float32)

    module = UpSampleBN(skip_input=16, output_features=8, key=kp)
    out = module(x, concat_with)
    out = jax.block_until_ready(out)

    assert out.shape == (2, 8, 16, 16), out.shape
    assert bool(jnp.all(jnp.isfinite(out)))
    print("KERNEL_OK")
</pallas_src>

<mosaic_0001>
module attributes {stable_mosaic.version = 11 : i64} {
  func.func private @main(%arg0: i32) attributes {dimension_semantics = [#tpu.dimension_semantics<core_parallel>], iteration_bounds = array<i64: 2>, tpu.core_type = #tpu.core_type<sc_scalar_subcore>, window_params = []} {
    return
  }
}

module attributes {stable_mosaic.version = 11 : i64} {
  func.func private @main(%arg0: i32) attributes {dimension_semantics = [#tpu.dimension_semantics<core_parallel>], iteration_bounds = array<i64: 2>, tpu.core_type = #tpu.core_type<sc_scalar_subcore>, window_params = []} {
    return
  }
}

module attributes {stable_mosaic.version = 11 : i64} {
  func.func @_conv3x3_kernel(%arg0: i32, %arg1: memref<1x18x18x16xf32, #tpu.memory_space<vmem>>, %arg2: memref<9x16x8xbf16, #tpu.memory_space<vmem>>, %arg3: memref<1x1x16xf32, #tpu.memory_space<vmem>>, %arg4: memref<1x1x16xf32, #tpu.memory_space<vmem>>, %arg5: memref<1x256x8xf32, #tpu.memory_space<vmem>>, %arg6: memref<1x1x8xf32, #tpu.memory_space<vmem>>, %arg7: memref<1x1x8xf32, #tpu.memory_space<vmem>>) attributes {dimension_semantics = [#tpu.dimension_semantics<parallel>], iteration_bounds = array<i64: 2>, scalar_prefetch = 0 : i64, scratch_operands = 0 : i64, tpu.core_type = #tpu.core_type<tc>, window_params = [{transform_indices = @transform_0, window_bounds = array<i64: 1, 18, 18, 16>}, {pipeline_mode = #tpu.pipeline_mode<synchronous>, transform_indices = @transform_1, window_bounds = array<i64: 9, 16, 8>}, {pipeline_mode = #tpu.pipeline_mode<synchronous>, transform_indices = @transform_2, window_bounds = array<i64: 1, 1, 16>}, {pipeline_mode = #tpu.pipeline_mode<synchronous>, transform_indices = @transform_3, window_bounds = array<i64: 1, 1, 16>}, {transform_indices = @transform_4, window_bounds = array<i64: 1, 256, 8>}, {transform_indices = @transform_5, window_bounds = array<i64: 1, 1, 8>}, {transform_indices = @transform_6, window_bounds = array<i64: 1, 1, 8>}]} {
    %c0 = arith.constant 0 : index
    %c0_0 = arith.constant 0 : index
    %c0_1 = arith.constant 0 : index
    %c0_2 = arith.constant 0 : index
    %0 = vector.load %arg1[%c0, %c0_0, %c0_1, %c0_2] : memref<1x18x18x16xf32, #tpu.memory_space<vmem>>, vector<1x18x18x16xf32>
    %1 = vector.shape_cast %0 : vector<1x18x18x16xf32> to vector<18x18x16xf32>
    %cst = arith.constant 0.000000e+00 : f32
    %2 = vector.broadcast %cst : f32 to vector<256x8xf32>
    %3 = vector.extract_strided_slice %1 {offsets = [0, 0, 0], sizes = [16, 16, 16], strides = [1, 1, 1]} : vector<18x18x16xf32> to vector<16x16x16xf32>
    %4 = vector.shape_cast %3 : vector<16x16x16xf32> to vector<256x16xf32>
    %5 = arith.truncf %4 : vector<256x16xf32> to vector<256x16xbf16>
    %c0_3 = arith.constant 0 : index
    %c0_4 = arith.constant 0 : index
    %c0_5 = arith.constant 0 : index
    %6 = vector.load %arg2[%c0_3, %c0_4, %c0_5] : memref<9x16x8xbf16, #tpu.memory_space<vmem>>, vector<1x16x8xbf16>
    %7 = vector.shape_cast %6 : vector<1x16x8xbf16> to vector<16x8xbf16>
    %cst_6 = arith.constant dense<0.000000e+00> : vector<256x8xf32>
    %8 = tpu.matmul %5, %7, %cst_6 {dimension_numbers = #tpu.dot_dimension_numbers<[1], [0], [0], [1], [0, 0, 1, 1], [], []>} : vector<256x16xbf16>, vector<16x8xbf16>, vector<256x8xf32> -> vector<256x8xf32>
    %9 = arith.addf %2, %8 : vector<256x8xf32>
    %10 = vector.extract_strided_slice %1 {offsets = [0, 1, 0], sizes = [16, 16, 16], strides = [1, 1, 1]} : vector<18x18x16xf32> to vector<16x16x16xf32>
    %11 = vector.shape_cast %10 : vector<16x16x16xf32> to vector<256x16xf32>
    %12 = arith.truncf %11 : vector<256x16xf32> to vector<256x16xbf16>
    %c1 = arith.constant 1 : index
    %c0_7 = arith.constant 0 : index
    %c0_8 = arith.constant 0 : index
    %13 = vector.load %arg2[%c1, %c0_7, %c0_8] : memref<9x16x8xbf16, #tpu.memory_space<vmem>>, vector<1x16x8xbf16>
    %14 = vector.shape_cast %13 : vector<1x16x8xbf16> to vector<16x8xbf16>
    %cst_9 = arith.constant dense<0.000000e+00> : vector<256x8xf32>
    %15 = tpu.matmul %12, %14, %cst_9 {dimension_numbers = #tpu.dot_dimension_numbers<[1], [0], [0], [1], [0, 0, 1, 1], [], []>} : vector<256x16xbf16>, vector<16x8xbf16>, vector<256x8xf32> -> vector<256x8xf32>
    %16 = arith.addf %9, %15 : vector<256x8xf32>
    %17 = vector.extract_strided_slice %1 {offsets = [0, 2, 0], sizes = [16, 16, 16], strides = [1, 1, 1]} : vector<18x18x16xf32> to vector<16x16x16xf32>
    %18 = vector.shape_cast %17 : vector<16x16x16xf32> to vector<256x16xf32>
    %19 = arith.truncf %18 : vector<256x16xf32> to vector<256x16xbf16>
    %c2 = arith.constant 2 : index
    %c0_10 = arith.constant 0 : index
    %c0_11 = arith.constant 0 : index
    %20 = vector.load %arg2[%c2, %c0_10, %c0_11] : memref<9x16x8xbf16, #tpu.memory_space<vmem>>, vector<1x16x8xbf16>
    %21 = vector.shape_cast %20 : vector<1x16x8xbf16> to vector<16x8xbf16>
    %cst_12 = arith.constant dense<0.000000e+00> : vector<256x8xf32>
    %22 = tpu.matmul %19, %21, %cst_12 {dimension_numbers = #tpu.dot_dimension_numbers<[1], [0], [0], [1], [0, 0, 1, 1], [], []>} : vector<256x16xbf16>, vector<16x8xbf16>, vector<256x8xf32> -> vector<256x8xf32>
    %23 = arith.addf %16, %22 : vector<256x8xf32>
    %24 = vector.extract_strided_slice %1 {offsets = [1, 0, 0], sizes = [16, 16, 16], strides = [1, 1, 1]} : vector<18x18x16xf32> to vector<16x16x16xf32>
    %25 = vector.shape_cast %24 : vector<16x16x16xf32> to vector<256x16xf32>
    %26 = arith.truncf %25 : vector<256x16xf32> to vector<256x16xbf16>
    %c3 = arith.constant 3 : index
    %c0_13 = arith.constant 0 : index
    %c0_14 = arith.constant 0 : index
    %27 = vector.load %arg2[%c3, %c0_13, %c0_14] : memref<9x16x8xbf16, #tpu.memory_space<vmem>>, vector<1x16x8xbf16>
    %28 = vector.shape_cast %27 : vector<1x16x8xbf16> to vector<16x8xbf16>
    %cst_15 = arith.constant dense<0.000000e+00> : vector<256x8xf32>
    %29 = tpu.matmul %26, %28, %cst_15 {dimension_numbers = #tpu.dot_dimension_numbers<[1], [0], [0], [1], [0, 0, 1, 1], [], []>} : vector<256x16xbf16>, vector<16x8xbf16>, vector<256x8xf32> -> vector<256x8xf32>
    %30 = arith.addf %23, %29 : vector<256x8xf32>
    %31 = vector.extract_strided_slice %1 {offsets = [1, 1, 0], sizes = [16, 16, 16], strides = [1, 1, 1]} : vector<18x18x16xf32> to vector<16x16x16xf32>
    %32 = vector.shape_cast %31 : vector<16x16x16xf32> to vector<256x16xf32>
    %33 = arith.truncf %32 : vector<256x16xf32> to vector<256x16xbf16>
    %c4 = arith.constant 4 : index
    %c0_16 = arith.constant 0 : index
    %c0_17 = arith.constant 0 : index
    %34 = vector.load %arg2[%c4, %c0_16, %c0_17] : memref<9x16x8xbf16, #tpu.memory_space<vmem>>, vector<1x16x8xbf16>
    %35 = vector.shape_cast %34 : vector<1x16x8xbf16> to vector<16x8xbf16>
    %cst_18 = arith.constant dense<0.000000e+00> : vector<256x8xf32>
    %36 = tpu.matmul %33, %35, %cst_18 {dimension_numbers = #tpu.dot_dimension_numbers<[1], [0], [0], [1], [0, 0, 1, 1], [], []>} : vector<256x16xbf16>, vector<16x8xbf16>, vector<256x8xf32> -> vector<256x8xf32>
    %37 = arith.addf %30, %36 : vector<256x8xf32>
    %38 = vector.extract_strided_slice %1 {offsets = [1, 2, 0], sizes = [16, 16, 16], strides = [1, 1, 1]} : vector<18x18x16xf32> to vector<16x16x16xf32>
    %39 = vector.shape_cast %38 : vector<16x16x16xf32> to vector<256x16xf32>
    %40 = arith.truncf %39 : vector<256x16xf32> to vector<256x16xbf16>
    %c5 = arith.constant 5 : index
    %c0_19 = arith.constant 0 : index
    %c0_20 = arith.constant 0 : index
    %41 = vector.load %arg2[%c5, %c0_19, %c0_20] : memref<9x16x8xbf16, #tpu.memory_space<vmem>>, vector<1x16x8xbf16>
    %42 = vector.shape_cast %41 : vector<1x16x8xbf16> to vector<16x8xbf16>
    %cst_21 = arith.constant dense<0.000000e+00> : vector<256x8xf32>
    %43 = tpu.matmul %40, %42, %cst_21 {dimension_numbers = #tpu.dot_dimension_numbers<[1], [0], [0], [1], [0, 0, 1, 1], [], []>} : vector<256x16xbf16>, vector<16x8xbf16>, vector<256x8xf32> -> vector<256x8xf32>
    %44 = arith.addf %37, %43 : vector<256x8xf32>
    %45 = vector.extract_strided_slice %1 {offsets = [2, 0, 0], sizes = [16, 16, 16], strides = [1, 1, 1]} : vector<18x18x16xf32> to vector<16x16x16xf32>
    %46 = vector.shape_cast %45 : vector<16x16x16xf32> to vector<256x16xf32>
    %47 = arith.truncf %46 : vector<256x16xf32> to vector<256x16xbf16>
    %c6 = arith.constant 6 : index
    %c0_22 = arith.constant 0 : index
    %c0_23 = arith.constant 0 : index
    %48 = vector.load %arg2[%c6, %c0_22, %c0_23] : memref<9x16x8xbf16, #tpu.memory_space<vmem>>, vector<1x16x8xbf16>
    %49 = vector.shape_cast %48 : vector<1x16x8xbf16> to vector<16x8xbf16>
    %cst_24 = arith.constant dense<0.000000e+00> : vector<256x8xf32>
    %50 = tpu.matmul %47, %49, %cst_24 {dimension_numbers = #tpu.dot_dimension_numbers<[1], [0], [0], [1], [0, 0, 1, 1], [], []>} : vector<256x16xbf16>, vector<16x8xbf16>, vector<256x8xf32> -> vector<256x8xf32>
    %51 = arith.addf %44, %50 : vector<256x8xf32>
    %52 = vector.extract_strided_slice %1 {offsets = [2, 1, 0], sizes = [16, 16, 16], strides = [1, 1, 1]} : vector<18x18x16xf32> to vector<16x16x16xf32>
    %53 = vector.shape_cast %52 : vector<16x16x16xf32> to vector<256x16xf32>
    %54 = arith.truncf %53 : vector<256x16xf32> to vector<256x16xbf16>
    %c7 = arith.constant 7 : index
    %c0_25 = arith.constant 0 : index
    %c0_26 = arith.constant 0 : index
    %55 = vector.load %arg2[%c7, %c0_25, %c0_26] : memref<9x16x8xbf16, #tpu.memory_space<vmem>>, vector<1x16x8xbf16>
    %56 = vector.shape_cast %55 : vector<1x16x8xbf16> to vector<16x8xbf16>
    %cst_27 = arith.constant dense<0.000000e+00> : vector<256x8xf32>
    %57 = tpu.matmul %54, %56, %cst_27 {dimension_numbers = #tpu.dot_dimension_numbers<[1], [0], [0], [1], [0, 0, 1, 1], [], []>} : vector<256x16xbf16>, vector<16x8xbf16>, vector<256x8xf32> -> vector<256x8xf32>
    %58 = arith.addf %51, %57 : vector<256x8xf32>
    %59 = vector.extract_strided_slice %1 {offsets = [2, 2, 0], sizes = [16, 16, 16], strides = [1, 1, 1]} : vector<18x18x16xf32> to vector<16x16x16xf32>
    %60 = vector.shape_cast %59 : vector<16x16x16xf32> to vector<256x16xf32>
    %61 = arith.truncf %60 : vector<256x16xf32> to vector<256x16xbf16>
    %c8 = arith.constant 8 : index
    %c0_28 = arith.constant 0 : index
    %c0_29 = arith.constant 0 : index
    %62 = vector.load %arg2[%c8, %c0_28, %c0_29] : memref<9x16x8xbf16, #tpu.memory_space<vmem>>, vector<1x16x8xbf16>
    %63 = vector.shape_cast %62 : vector<1x16x8xbf16> to vector<16x8xbf16>
    %cst_30 = arith.constant dense<0.000000e+00> : vector<256x8xf32>
    %64 = tpu.matmul %61, %63, %cst_30 {dimension_numbers = #tpu.dot_dimension_numbers<[1], [0], [0], [1], [0, 0, 1, 1], [], []>} : vector<256x16xbf16>, vector<16x8xbf16>, vector<256x8xf32> -> vector<256x8xf32>
    %65 = arith.addf %58, %64 : vector<256x8xf32>
    %c0_31 = arith.constant 0 : index
    %c0_32 = arith.constant 0 : index
    %c0_33 = arith.constant 0 : index
    %66 = vector.load %arg5[%c0_31, %c0_32, %c0_33] : memref<1x256x8xf32, #tpu.memory_space<vmem>>, vector<1x256x8xf32>
    %67 = vector.shape_cast %66 : vector<1x256x8xf32> to vector<256x8xf32>
    %68 = vector.shape_cast %65 : vector<256x8xf32> to vector<1x256x8xf32>
    tpu.vector_store %arg5[%c0_31, %c0_32, %c0_33], %68 {strides = array<i32>} : memref<1x256x8xf32, #tpu.memory_space<vmem>>, vector<1x256x8xf32>,
    %cst_34 = arith.constant dense<0.000000e+00> : vector<8xf32>
    %69 = vector.multi_reduction <add>, %65, %cst_34 [0] : vector<256x8xf32> to vector<8xf32>
    %70 = vector.shape_cast %69 : vector<8xf32> to vector<1x8xf32>
    %c0_35 = arith.constant 0 : index
    %c0_36 = arith.constant 0 : index
    %c0_37 = arith.constant 0 : index
    %71 = vector.load %arg6[%c0_35, %c0_36, %c0_37] : memref<1x1x8xf32, #tpu.memory_space<vmem>>, vector<1x1x8xf32>
    %72 = vector.shape_cast %71 : vector<1x1x8xf32> to vector<1x8xf32>
    %73 = vector.shape_cast %70 : vector<1x8xf32> to vector<1x1x8xf32>
    tpu.vector_store %arg6[%c0_35, %c0_36, %c0_37], %73 {strides = array<i32>} : memref<1x1x8xf32, #tpu.memory_space<vmem>>, vector<1x1x8xf32>,
    %74 = arith.mulf %65, %65 : vector<256x8xf32>
    %cst_38 = arith.constant dense<0.000000e+00> : vector<8xf32>
    %75 = vector.multi_reduction <add>, %74, %cst_38 [0] : vector<256x8xf32> to vector<8xf32>
    %76 = vector.shape_cast %75 : vector<8xf32> to vector<1x8xf32>
    %c0_39 = arith.constant 0 : index
    %c0_40 = arith.constant 0 : index
    %c0_41 = arith.constant 0 : index
    %77 = vector.load %arg7[%c0_39, %c0_40, %c0_41] : memref<1x1x8xf32, #tpu.memory_space<vmem>>, vector<1x1x8xf32>
    %78 = vector.shape_cast %77 : vector<1x1x8xf32> to vector<1x8xf32>
    %79 = vector.shape_cast %76 : vector<1x8xf32> to vector<1x1x8xf32>
    tpu.vector_store %arg7[%c0_39, %c0_40, %c0_41], %79 {strides = array<i32>} : memref<1x1x8xf32, #tpu.memory_space<vmem>>, vector<1x1x8xf32>,
    return
  }
  func.func @transform_0(%arg0: i32) -> (i32, i32, i32, i32) {
    %c0_i32 = arith.constant 0 : i32
    %c0_i32_0 = arith.constant 0 : i32
    %c0_i32_1 = arith.constant 0 : i32
    %c0_i32_2 = arith.constant 0 : i32
    return %arg0, %c0_i32, %c0_i32_0, %c0_i32_1 : i32, i32, i32, i32
  }
  func.func @transform_1(%arg0: i32) -> (i32, i32, i32) {
    %c0_i32 = arith.constant 0 : i32
    %c0_i32_0 = arith.constant 0 : i32
    %c0_i32_1 = arith.constant 0 : i32
    %c0_i32_2 = arith.constant 0 : i32
    return %c0_i32, %c0_i32_0, %c0_i32_1 : i32, i32, i32
  }
  func.func @transform_2(%arg0: i32) -> (i32, i32, i32) {
    %c0_i32 = arith.constant 0 : i32
    %c0_i32_0 = arith.constant 0 : i32
    %c0_i32_1 = arith.constant 0 : i32
    %c0_i32_2 = arith.constant 0 : i32
    return %c0_i32, %c0_i32_0, %c0_i32_1 : i32, i32, i32
  }
  func.func @transform_3(%arg0: i32) -> (i32, i32, i32) {
    %c0_i32 = arith.constant 0 : i32
    %c0_i32_0 = arith.constant 0 : i32
    %c0_i32_1 = arith.constant 0 : i32
    %c0_i32_2 = arith.constant 0 : i32
    return %c0_i32, %c0_i32_0, %c0_i32_1 : i32, i32, i32
  }
  func.func @transform_4(%arg0: i32) -> (i32, i32, i32) {
    %c0_i32 = arith.constant 0 : i32
    %c0_i32_0 = arith.constant 0 : i32
    %c0_i32_1 = arith.constant 0 : i32
    return %arg0, %c0_i32, %c0_i32_0 : i32, i32, i32
  }
  func.func @transform_5(%arg0: i32) -> (i32, i32, i32) {
    %c0_i32 = arith.constant 0 : i32
    %c0_i32_0 = arith.constant 0 : i32
    %c0_i32_1 = arith.constant 0 : i32
    return %arg0, %c0_i32, %c0_i32_0 : i32, i32, i32
  }
  func.func @transform_6(%arg0: i32) -> (i32, i32, i32) {
    %c0_i32 = arith.constant 0 : i32
    %c0_i32_0 = arith.constant 0 : i32
    %c0_i32_1 = arith.constant 0 : i32
    return %arg0, %c0_i32, %c0_i32_0 : i32, i32, i32
  }
}

module attributes {stable_mosaic.version = 11 : i64} {
  func.func @_conv3x3_kernel(%arg0: i32, %arg1: memref<1x18x18x8xf32, #tpu.memory_space<vmem>>, %arg2: memref<9x8x8xbf16, #tpu.memory_space<vmem>>, %arg3: memref<1x1x8xf32, #tpu.memory_space<vmem>>, %arg4: memref<1x1x8xf32, #tpu.memory_space<vmem>>, %arg5: memref<1x256x8xf32, #tpu.memory_space<vmem>>, %arg6: memref<1x1x8xf32, #tpu.memory_space<vmem>>, %arg7: memref<1x1x8xf32, #tpu.memory_space<vmem>>) attributes {dimension_semantics = [#tpu.dimension_semantics<parallel>], iteration_bounds = array<i64: 2>, scalar_prefetch = 0 : i64, scratch_operands = 0 : i64, tpu.core_type = #tpu.core_type<tc>, window_params = [{transform_indices = @transform_0, window_bounds = array<i64: 1, 18, 18, 8>}, {pipeline_mode = #tpu.pipeline_mode<synchronous>, transform_indices = @transform_1, window_bounds = array<i64: 9, 8, 8>}, {pipeline_mode = #tpu.pipeline_mode<synchronous>, transform_indices = @transform_2, window_bounds = array<i64: 1, 1, 8>}, {pipeline_mode = #tpu.pipeline_mode<synchronous>, transform_indices = @transform_3, window_bounds = array<i64: 1, 1, 8>}, {transform_indices = @transform_4, window_bounds = array<i64: 1, 256, 8>}, {transform_indices = @transform_5, window_bounds = array<i64: 1, 1, 8>}, {transform_indices = @transform_6, window_bounds = array<i64: 1, 1, 8>}]} {
    %c0 = arith.constant 0 : index
    %c0_0 = arith.constant 0 : index
    %c0_1 = arith.constant 0 : index
    %c0_2 = arith.constant 0 : index
    %0 = vector.load %arg1[%c0, %c0_0, %c0_1, %c0_2] : memref<1x18x18x8xf32, #tpu.memory_space<vmem>>, vector<1x18x18x8xf32>
    %1 = vector.shape_cast %0 : vector<1x18x18x8xf32> to vector<18x18x8xf32>
    %c0_3 = arith.constant 0 : index
    %c0_4 = arith.constant 0 : index
    %c0_5 = arith.constant 0 : index
    %2 = vector.load %arg3[%c0_3, %c0_4, %c0_5] : memref<1x1x8xf32, #tpu.memory_space<vmem>>, vector<1x1x8xf32>
    %3 = vector.broadcast %2 : vector<1x1x8xf32> to vector<18x18x8xf32>
    %4 = arith.mulf %1, %3 : vector<18x18x8xf32>
    %c0_6 = arith.constant 0 : index
    %c0_7 = arith.constant 0 : index
    %c0_8 = arith.constant 0 : index
    %5 = vector.load %arg4[%c0_6, %c0_7, %c0_8] : memref<1x1x8xf32, #tpu.memory_space<vmem>>, vector<1x1x8xf32>
    %6 = vector.broadcast %5 : vector<1x1x8xf32> to vector<18x18x8xf32>
    %7 = arith.addf %4, %6 : vector<18x18x8xf32>
    %cst = arith.constant 0.000000e+00 : f32
    %8 = vector.broadcast %cst : f32 to vector<18x18x8xf32>
    %9 = arith.cmpf oge, %7, %8 : vector<18x18x8xf32>
    %cst_9 = arith.constant 0.00999999977 : f32
    %10 = vector.broadcast %cst_9 : f32 to vector<18x18x8xf32>
    %11 = arith.mulf %10, %7 : vector<18x18x8xf32>
    %12 = arith.select %9, %7, %11 : vector<18x18x8xi1>, vector<18x18x8xf32>
    %cst_10 = arith.constant 0.000000e+00 : f32
    %13 = vector.broadcast %cst_10 : f32 to vector<256x8xf32>
    %14 = vector.extract_strided_slice %12 {offsets = [0, 0, 0], sizes = [16, 16, 8], strides = [1, 1, 1]} : vector<18x18x8xf32> to vector<16x16x8xf32>
    %15 = vector.shape_cast %14 : vector<16x16x8xf32> to vector<256x8xf32>
    %16 = arith.truncf %15 : vector<256x8xf32> to vector<256x8xbf16>
    %c0_11 = arith.constant 0 : index
    %c0_12 = arith.constant 0 : index
    %c0_13 = arith.constant 0 : index
    %17 = vector.load %arg2[%c0_11, %c0_12, %c0_13] : memref<9x8x8xbf16, #tpu.memory_space<vmem>>, vector<1x8x8xbf16>
    %18 = vector.shape_cast %17 : vector<1x8x8xbf16> to vector<8x8xbf16>
    %cst_14 = arith.constant dense<0.000000e+00> : vector<256x8xf32>
    %19 = tpu.matmul %16, %18, %cst_14 {dimension_numbers = #tpu.dot_dimension_numbers<[1], [0], [0], [1], [0, 0, 1, 1], [], []>} : vector<256x8xbf16>, vector<8x8xbf16>, vector<256x8xf32> -> vector<256x8xf32>
    %20 = arith.addf %13, %19 : vector<256x8xf32>
    %21 = vector.extract_strided_slice %12 {offsets = [0, 1, 0], sizes = [16, 16, 8], strides = [1, 1, 1]} : vector<18x18x8xf32> to vector<16x16x8xf32>
    %22 = vector.shape_cast %21 : vector<16x16x8xf32> to vector<256x8xf32>
    %23 = arith.truncf %22 : vector<256x8xf32> to vector<256x8xbf16>
    %c1 = arith.constant 1 : index
    %c0_15 = arith.constant 0 : index
    %c0_16 = arith.constant 0 : index
    %24 = vector.load %arg2[%c1, %c0_15, %c0_16] : memref<9x8x8xbf16, #tpu.memory_space<vmem>>, vector<1x8x8xbf16>
    %25 = vector.shape_cast %24 : vector<1x8x8xbf16> to vector<8x8xbf16>
    %cst_17 = arith.constant dense<0.000000e+00> : vector<256x8xf32>
    %26 = tpu.matmul %23, %25, %cst_17 {dimension_numbers = #tpu.dot_dimension_numbers<[1], [0], [0], [1], [0, 0, 1, 1], [], []>} : vector<256x8xbf16>, vector<8x8xbf16>, vector<256x8xf32> -> vector<256x8xf32>
    %27 = arith.addf %20, %26 : vector<256x8xf32>
    %28 = vector.extract_strided_slice %12 {offsets = [0, 2, 0], sizes = [16, 16, 8], strides = [1, 1, 1]} : vector<18x18x8xf32> to vector<16x16x8xf32>
    %29 = vector.shape_cast %28 : vector<16x16x8xf32> to vector<256x8xf32>
    %30 = arith.truncf %29 : vector<256x8xf32> to vector<256x8xbf16>
    %c2 = arith.constant 2 : index
    %c0_18 = arith.constant 0 : index
    %c0_19 = arith.constant 0 : index
    %31 = vector.load %arg2[%c2, %c0_18, %c0_19] : memref<9x8x8xbf16, #tpu.memory_space<vmem>>, vector<1x8x8xbf16>
    %32 = vector.shape_cast %31 : vector<1x8x8xbf16> to vector<8x8xbf16>
    %cst_20 = arith.constant dense<0.000000e+00> : vector<256x8xf32>
    %33 = tpu.matmul %30, %32, %cst_20 {dimension_numbers = #tpu.dot_dimension_numbers<[1], [0], [0], [1], [0, 0, 1, 1], [], []>} : vector<256x8xbf16>, vector<8x8xbf16>, vector<256x8xf32> -> vector<256x8xf32>
    %34 = arith.addf %27, %33 : vector<256x8xf32>
    %35 = vector.extract_strided_slice %12 {offsets = [1, 0, 0], sizes = [16, 16, 8], strides = [1, 1, 1]} : vector<18x18x8xf32> to vector<16x16x8xf32>
    %36 = vector.shape_cast %35 : vector<16x16x8xf32> to vector<256x8xf32>
    %37 = arith.truncf %36 : vector<256x8xf32> to vector<256x8xbf16>
    %c3 = arith.constant 3 : index
    %c0_21 = arith.constant 0 : index
    %c0_22 = arith.constant 0 : index
    %38 = vector.load %arg2[%c3, %c0_21, %c0_22] : memref<9x8x8xbf16, #tpu.memory_space<vmem>>, vector<1x8x8xbf16>
    %39 = vector.shape_cast %38 : vector<1x8x8xbf16> to vector<8x8xbf16>
    %cst_23 = arith.constant dense<0.000000e+00> : vector<256x8xf32>
    %40 = tpu.matmul %37, %39, %cst_23 {dimension_numbers = #tpu.dot_dimension_numbers<[1], [0], [0], [1], [0, 0, 1, 1], [], []>} : vector<256x8xbf16>, vector<8x8xbf16>, vector<256x8xf32> -> vector<256x8xf32>
    %41 = arith.addf %34, %40 : vector<256x8xf32>
    %42 = vector.extract_strided_slice %12 {offsets = [1, 1, 0], sizes = [16, 16, 8], strides = [1, 1, 1]} : vector<18x18x8xf32> to vector<16x16x8xf32>
    %43 = vector.shape_cast %42 : vector<16x16x8xf32> to vector<256x8xf32>
    %44 = arith.truncf %43 : vector<256x8xf32> to vector<256x8xbf16>
    %c4 = arith.constant 4 : index
    %c0_24 = arith.constant 0 : index
    %c0_25 = arith.constant 0 : index
    %45 = vector.load %arg2[%c4, %c0_24, %c0_25] : memref<9x8x8xbf16, #tpu.memory_space<vmem>>, vector<1x8x8xbf16>
    %46 = vector.shape_cast %45 : vector<1x8x8xbf16> to vector<8x8xbf16>
    %cst_26 = arith.constant dense<0.000000e+00> : vector<256x8xf32>
    %47 = tpu.matmul %44, %46, %cst_26 {dimension_numbers = #tpu.dot_dimension_numbers<[1], [0], [0], [1], [0, 0, 1, 1], [], []>} : vector<256x8xbf16>, vector<8x8xbf16>, vector<256x8xf32> -> vector<256x8xf32>
    %48 = arith.addf %41, %47 : vector<256x8xf32>
    %49 = vector.extract_strided_slice %12 {offsets = [1, 2, 0], sizes = [16, 16, 8], strides = [1, 1, 1]} : vector<18x18x8xf32> to vector<16x16x8xf32>
    %50 = vector.shape_cast %49 : vector<16x16x8xf32> to vector<256x8xf32>
    %51 = arith.truncf %50 : vector<256x8xf32> to vector<256x8xbf16>
    %c5 = arith.constant 5 : index
    %c0_27 = arith.constant 0 : index
    %c0_28 = arith.constant 0 : index
    %52 = vector.load %arg2[%c5, %c0_27, %c0_28] : memref<9x8x8xbf16, #tpu.memory_space<vmem>>, vector<1x8x8xbf16>
    %53 = vector.shape_cast %52 : vector<1x8x8xbf16> to vector<8x8xbf16>
    %cst_29 = arith.constant dense<0.000000e+00> : vector<256x8xf32>
    %54 = tpu.matmul %51, %53, %cst_29 {dimension_numbers = #tpu.dot_dimension_numbers<[1], [0], [0], [1], [0, 0, 1, 1], [], []>} : vector<256x8xbf16>, vector<8x8xbf16>, vector<256x8xf32> -> vector<256x8xf32>
    %55 = arith.addf %48, %54 : vector<256x8xf32>
    %56 = vector.extract_strided_slice %12 {offsets = [2, 0, 0], sizes = [16, 16, 8], strides = [1, 1, 1]} : vector<18x18x8xf32> to vector<16x16x8xf32>
    %57 = vector.shape_cast %56 : vector<16x16x8xf32> to vector<256x8xf32>
    %58 = arith.truncf %57 : vector<256x8xf32> to vector<256x8xbf16>
    %c6 = arith.constant 6 : index
    %c0_30 = arith.constant 0 : index
    %c0_31 = arith.constant 0 : index
    %59 = vector.load %arg2[%c6, %c0_30, %c0_31] : memref<9x8x8xbf16, #tpu.memory_space<vmem>>, vector<1x8x8xbf16>
    %60 = vector.shape_cast %59 : vector<1x8x8xbf16> to vector<8x8xbf16>
    %cst_32 = arith.constant dense<0.000000e+00> : vector<256x8xf32>
    %61 = tpu.matmul %58, %60, %cst_32 {dimension_numbers = #tpu.dot_dimension_numbers<[1], [0], [0], [1], [0, 0, 1, 1], [], []>} : vector<256x8xbf16>, vector<8x8xbf16>, vector<256x8xf32> -> vector<256x8xf32>
    %62 = arith.addf %55, %61 : vector<256x8xf32>
    %63 = vector.extract_strided_slice %12 {offsets = [2, 1, 0], sizes = [16, 16, 8], strides = [1, 1, 1]} : vector<18x18x8xf32> to vector<16x16x8xf32>
    %64 = vector.shape_cast %63 : vector<16x16x8xf32> to vector<256x8xf32>
    %65 = arith.truncf %64 : vector<256x8xf32> to vector<256x8xbf16>
    %c7 = arith.constant 7 : index
    %c0_33 = arith.constant 0 : index
    %c0_34 = arith.constant 0 : index
    %66 = vector.load %arg2[%c7, %c0_33, %c0_34] : memref<9x8x8xbf16, #tpu.memory_space<vmem>>, vector<1x8x8xbf16>
    %67 = vector.shape_cast %66 : vector<1x8x8xbf16> to vector<8x8xbf16>
    %cst_35 = arith.constant dense<0.000000e+00> : vector<256x8xf32>
    %68 = tpu.matmul %65, %67, %cst_35 {dimension_numbers = #tpu.dot_dimension_numbers<[1], [0], [0], [1], [0, 0, 1, 1], [], []>} : vector<256x8xbf16>, vector<8x8xbf16>, vector<256x8xf32> -> vector<256x8xf32>
    %69 = arith.addf %62, %68 : vector<256x8xf32>
    %70 = vector.extract_strided_slice %12 {offsets = [2, 2, 0], sizes = [16, 16, 8], strides = [1, 1, 1]} : vector<18x18x8xf32> to vector<16x16x8xf32>
    %71 = vector.shape_cast %70 : vector<16x16x8xf32> to vector<256x8xf32>
    %72 = arith.truncf %71 : vector<256x8xf32> to vector<256x8xbf16>
    %c8 = arith.constant 8 : index
    %c0_36 = arith.constant 0 : index
    %c0_37 = arith.constant 0 : index
    %73 = vector.load %arg2[%c8, %c0_36, %c0_37] : memref<9x8x8xbf16, #tpu.memory_space<vmem>>, vector<1x8x8xbf16>
    %74 = vector.shape_cast %73 : vector<1x8x8xbf16> to vector<8x8xbf16>
    %cst_38 = arith.constant dense<0.000000e+00> : vector<256x8xf32>
    %75 = tpu.matmul %72, %74, %cst_38 {dimension_numbers = #tpu.dot_dimension_numbers<[1], [0], [0], [1], [0, 0, 1, 1], [], []>} : vector<256x8xbf16>, vector<8x8xbf16>, vector<256x8xf32> -> vector<256x8xf32>
    %76 = arith.addf %69, %75 : vector<256x8xf32>
    %c0_39 = arith.constant 0 : index
    %c0_40 = arith.constant 0 : index
    %c0_41 = arith.constant 0 : index
    %77 = vector.load %arg5[%c0_39, %c0_40, %c0_41] : memref<1x256x8xf32, #tpu.memory_space<vmem>>, vector<1x256x8xf32>
    %78 = vector.shape_cast %77 : vector<1x256x8xf32> to vector<256x8xf32>
    %79 = vector.shape_cast %76 : vector<256x8xf32> to vector<1x256x8xf32>
    tpu.vector_store %arg5[%c0_39, %c0_40, %c0_41], %79 {strides = array<i32>} : memref<1x256x8xf32, #tpu.memory_space<vmem>>, vector<1x256x8xf32>,
    %cst_42 = arith.constant dense<0.000000e+00> : vector<8xf32>
    %80 = vector.multi_reduction <add>, %76, %cst_42 [0] : vector<256x8xf32> to vector<8xf32>
    %81 = vector.shape_cast %80 : vector<8xf32> to vector<1x8xf32>
    %c0_43 = arith.constant 0 : index
    %c0_44 = arith.constant 0 : index
    %c0_45 = arith.constant 0 : index
    %82 = vector.load %arg6[%c0_43, %c0_44, %c0_45] : memref<1x1x8xf32, #tpu.memory_space<vmem>>, vector<1x1x8xf32>
    %83 = vector.shape_cast %82 : vector<1x1x8xf32> to vector<1x8xf32>
    %84 = vector.shape_cast %81 : vector<1x8xf32> to vector<1x1x8xf32>
    tpu.vector_store %arg6[%c0_43, %c0_44, %c0_45], %84 {strides = array<i32>} : memref<1x1x8xf32, #tpu.memory_space<vmem>>, vector<1x1x8xf32>,
    %85 = arith.mulf %76, %76 : vector<256x8xf32>
    %cst_46 = arith.constant dense<0.000000e+00> : vector<8xf32>
    %86 = vector.multi_reduction <add>, %85, %cst_46 [0] : vector<256x8xf32> to vector<8xf32>
    %87 = vector.shape_cast %86 : vector<8xf32> to vector<1x8xf32>
    %c0_47 = arith.constant 0 : index
    %c0_48 = arith.constant 0 : index
    %c0_49 = arith.constant 0 : index
    %88 = vector.load %arg7[%c0_47, %c0_48, %c0_49] : memref<1x1x8xf32, #tpu.memory_space<vmem>>, vector<1x1x8xf32>
    %89 = vector.shape_cast %88 : vector<1x1x8xf32> to vector<1x8xf32>
    %90 = vector.shape_cast %87 : vector<1x8xf32> to vector<1x1x8xf32>
    tpu.vector_store %arg7[%c0_47, %c0_48, %c0_49], %90 {strides = array<i32>} : memref<1x1x8xf32, #tpu.memory_space<vmem>>, vector<1x1x8xf32>,
    return
  }
  func.func @transform_0(%arg0: i32) -> (i32, i32, i32, i32) {
    %c0_i32 = arith.constant 0 : i32
    %c0_i32_0 = arith.constant 0 : i32
    %c0_i32_1 = arith.constant 0 : i32
    %c0_i32_2 = arith.constant 0 : i32
    return %arg0, %c0_i32, %c0_i32_0, %c0_i32_1 : i32, i32, i32, i32
  }
  func.func @transform_1(%arg0: i32) -> (i32, i32, i32) {
    %c0_i32 = arith.constant 0 : i32
    %c0_i32_0 = arith.constant 0 : i32
    %c0_i32_1 = arith.constant 0 : i32
    %c0_i32_2 = arith.constant 0 : i32
    return %c0_i32, %c0_i32_0, %c0_i32_1 : i32, i32, i32
  }
  func.func @transform_2(%arg0: i32) -> (i32, i32, i32) {
    %c0_i32 = arith.constant 0 : i32
    %c0_i32_0 = arith.constant 0 : i32
    %c0_i32_1 = arith.constant 0 : i32
    %c0_i32_2 = arith.constant 0 : i32
    return %c0_i32, %c0_i32_0, %c0_i32_1 : i32, i32, i32
  }
  func.func @transform_3(%arg0: i32) -> (i32, i32, i32) {
    %c0_i32 = arith.constant 0 : i32
    %c0_i32_0 = arith.constant 0 : i32
    %c0_i32_1 = arith.constant 0 : i32
    %c0_i32_2 = arith.constant 0 : i32
    return %c0_i32, %c0_i32_0, %c0_i32_1 : i32, i32, i32
  }
  func.func @transform_4(%arg0: i32) -> (i32, i32, i32) {
    %c0_i32 = arith.constant 0 : i32
    %c0_i32_0 = arith.constant 0 : i32
    %c0_i32_1 = arith.constant 0 : i32
    return %arg0, %c0_i32, %c0_i32_0 : i32, i32, i32
  }
  func.func @transform_5(%arg0: i32) -> (i32, i32, i32) {
    %c0_i32 = arith.constant 0 : i32
    %c0_i32_0 = arith.constant 0 : i32
    %c0_i32_1 = arith.constant 0 : i32
    return %arg0, %c0_i32, %c0_i32_0 : i32, i32, i32
  }
  func.func @transform_6(%arg0: i32) -> (i32, i32, i32) {
    %c0_i32 = arith.constant 0 : i32
    %c0_i32_0 = arith.constant 0 : i32
    %c0_i32_1 = arith.constant 0 : i32
    return %arg0, %c0_i32, %c0_i32_0 : i32, i32, i32
  }
}

module attributes {stable_mosaic.version = 11 : i64} {
  func.func @_bn_lrelu_kernel(%arg0: i32, %arg1: memref<1x16x128xf32, #tpu.memory_space<vmem>>, %arg2: memref<1x1x128xf32, #tpu.memory_space<vmem>>, %arg3: memref<1x1x128xf32, #tpu.memory_space<vmem>>, %arg4: memref<1x16x128xf32, #tpu.memory_space<vmem>>) attributes {dimension_semantics = [#tpu.dimension_semantics<parallel>], iteration_bounds = array<i64: 2>, scalar_prefetch = 0 : i64, scratch_operands = 0 : i64, tpu.core_type = #tpu.core_type<tc>, window_params = [{transform_indices = @transform_0, window_bounds = array<i64: 1, 16, 128>}, {pipeline_mode = #tpu.pipeline_mode<synchronous>, transform_indices = @transform_1, window_bounds = array<i64: 1, 1, 128>}, {pipeline_mode = #tpu.pipeline_mode<synchronous>, transform_indices = @transform_2, window_bounds = array<i64: 1, 1, 128>}, {transform_indices = @transform_3, window_bounds = array<i64: 1, 16, 128>}]} {
    %c0 = arith.constant 0 : index
    %c0_0 = arith.constant 0 : index
    %c0_1 = arith.constant 0 : index
    %0 = vector.load %arg1[%c0, %c0_0, %c0_1] : memref<1x16x128xf32, #tpu.memory_space<vmem>>, vector<1x16x128xf32>
    %c0_2 = arith.constant 0 : index
    %c0_3 = arith.constant 0 : index
    %c0_4 = arith.constant 0 : index
    %1 = vector.load %arg2[%c0_2, %c0_3, %c0_4] : memref<1x1x128xf32, #tpu.memory_space<vmem>>, vector<1x1x128xf32>
    %2 = vector.broadcast %1 : vector<1x1x128xf32> to vector<1x16x128xf32>
    %3 = arith.mulf %0, %2 : vector<1x16x128xf32>
    %c0_5 = arith.constant 0 : index
    %c0_6 = arith.constant 0 : index
    %c0_7 = arith.constant 0 : index
    %4 = vector.load %arg3[%c0_5, %c0_6, %c0_7] : memref<1x1x128xf32, #tpu.memory_space<vmem>>, vector<1x1x128xf32>
    %5 = vector.broadcast %4 : vector<1x1x128xf32> to vector<1x16x128xf32>
    %6 = arith.addf %3, %5 : vector<1x16x128xf32>
    %cst = arith.constant 0.000000e+00 : f32
    %7 = vector.broadcast %cst : f32 to vector<1x16x128xf32>
    %8 = arith.cmpf oge, %6, %7 : vector<1x16x128xf32>
    %cst_8 = arith.constant 0.00999999977 : f32
    %9 = vector.broadcast %cst_8 : f32 to vector<1x16x128xf32>
    %10 = arith.mulf %9, %6 : vector<1x16x128xf32>
    %11 = arith.select %8, %6, %10 : vector<1x16x128xi1>, vector<1x16x128xf32>
    %c0_9 = arith.constant 0 : index
    %c0_10 = arith.constant 0 : index
    %c0_11 = arith.constant 0 : index
    %12 = vector.load %arg4[%c0_9, %c0_10, %c0_11] : memref<1x16x128xf32, #tpu.memory_space<vmem>>, vector<1x16x128xf32>
    tpu.vector_store %arg4[%c0_9, %c0_10, %c0_11], %11 {strides = array<i32>} : memref<1x16x128xf32, #tpu.memory_space<vmem>>, vector<1x16x128xf32>,
    return
  }
  func.func @transform_0(%arg0: i32) -> (i32, i32, i32) {
    %c0_i32 = arith.constant 0 : i32
    %c0_i32_0 = arith.constant 0 : i32
    %c0_i32_1 = arith.constant 0 : i32
    return %arg0, %c0_i32, %c0_i32_0 : i32, i32, i32
  }
  func.func @transform_1(%arg0: i32) -> (i32, i32, i32) {
    %c0_i32 = arith.constant 0 : i32
    %c0_i32_0 = arith.constant 0 : i32
    %c0_i32_1 = arith.constant 0 : i32
    %c0_i32_2 = arith.constant 0 : i32
    return %c0_i32, %c0_i32_0, %c0_i32_1 : i32, i32, i32
  }
  func.func @transform_2(%arg0: i32) -> (i32, i32, i32) {
    %c0_i32 = arith.constant 0 : i32
    %c0_i32_0 = arith.constant 0 : i32
    %c0_i32_1 = arith.constant 0 : i32
    %c0_i32_2 = arith.constant 0 : i32
    return %c0_i32, %c0_i32_0, %c0_i32_1 : i32, i32, i32
  }
  func.func @transform_3(%arg0: i32) -> (i32, i32, i32) {
    %c0_i32 = arith.constant 0 : i32
    %c0_i32_0 = arith.constant 0 : i32
    %c0_i32_1 = arith.constant 0 : i32
    return %arg0, %c0_i32, %c0_i32_0 : i32, i32, i32
  }
}

</mosaic_0001>

<bundles_post_ra>
// kernel: tile.10
= control target key start
LH: loop header
LB: loop body
LE: loop exit
PB: predicated region body
PF: predicated region fallthrough
CT: control target
= control target key end

     0   :  { %s28_s0 = inlined_call_operand.vmem [shape: f32[8], index: 0, kind: input, shape index: {}]   ;;  %s29_s1 = inlined_call_operand.vmem [shape: f32[16,8], index: 1, kind: output, shape index: {}]  }
   0x1   :  { %v4_v0 = vld [vmem:[%s28_s0] ss:$0 sm:$0xff] }
   0x2   :  { %5 = vst [vmem:[%s29_s1] sm:$0xff] %v4_v0  ;;  %8 = vst [vmem:[%s29_s1 + $0x8] sm:$0xff] %v4_v0 }

// kernel: tile.11
= control target key start
LH: loop header
LB: loop body
LE: loop exit
PB: predicated region body
PF: predicated region fallthrough
CT: control target
= control target key end

     0   :  { %s131_s10 = smov 120   ;;  %s132_s11 = smov 104   ;;  %vm3_vm0 = vcmask 64512   ;;  %vm9_vm1 = vcmask 1048512   ;;  %vm15_vm2 = vcmask 982912   ;;  %vm21_vm3 = vcmask 917312   ;;  %s207_s0 = inlined_call_operand.vmem [shape: f32[16,8], index: 0, kind: input, shape index: {}]   ;;  %s208_s1 = inlined_call_operand.vmem [shape: f32[1,1,128], index: 1, kind: output, shape index: {}]  }
   0x1   :  { %v101_v0 = vld [vmem:[%s207_s0 + $0xf] sm:$0x1]   ;;  %v103_v1 = vld [vmem:[%s207_s0 + $0xd] sm:$0x1]   ;;  %v102_v2 = vld [vmem:[%s207_s0 + $0xe] sm:$0x1]  }
   0x2   :  { %7 = vrot.lane.b32.xlu0 %v101_v0, %s131_s10  ;;  %19 = vrot.lane.b32.xlu1 %v103_v1, %s132_s11  ;;  %v104_v3 = vld [vmem:[%s207_s0 + $0xc] sm:$0x1]   ;;  %s133_s16 = smov 112   ;;  %s134_s17 = smov 96   ;;  %v105_v4 = vld [vmem:[%s207_s0 + $0xb] sm:$0x1]  }
   0x3   :  { %v106_v5 = vld [vmem:[%s207_s0 + $0xa] sm:$0x1]   ;;  %v2_v6 = vld [vmem:[%s207_s0] sm:$0x1]   ;;  %s135_s24 = smov 88   ;;  %s136_s25 = smov 80  }
   0x4   :  { %4 = vst.msk [vmem:[#allocation0] sm:$0x1] %vm3_vm0, %v2_v6   ;;  %v107_v7 = vld [vmem:[%s207_s0 + $0x9] sm:$0x1]   ;;  %v108_v8 = vld [vmem:[%s207_s0 + $0x8] sm:$0x1]  }
   0x5   :  { %s137_s30 = smov 72   ;;  %s138_s2 = smov 64   ;;  %v109_v9 = vld [vmem:[%s207_s0 + $0x7] sm:$0x1]   ;;  %v110_v10 = vld [vmem:[%s207_s0 + $0x6] sm:$0x1]  }
   0x6   :  { %13 = vrot.lane.b32.xlu0 %v102_v2, %s133_s16  ;;  %25 = vrot.lane.b32.xlu1 %v104_v3, %s134_s17  ;;  %s139_s7 = smov 56   ;;  %s140_s8 = smov 48   ;;  %v111_v11 = vld [vmem:[%s207_s0 + $0x5] sm:$0x1]   ;;  %v112_v12 = vld [vmem:[%s207_s0 + $0x4] sm:$0x1]  }
   0x7   :  { %s141_s13 = smov 40   ;;  %s142_s14 = smov 32   ;;  %v113_v13 = vld [vmem:[%s207_s0 + $0x3] sm:$0x1]   ;;  %v114_v14 = vld [vmem:[%s207_s0 + $0x2] sm:$0x1]  }
   0x8   :  { %s143_s19 = smov 24   ;;  %s144_s20 = smov 16   ;;  %v115_v15 = vld [vmem:[%s207_s0 + $0x1] sm:$0x1]   ;;  %vm27_vm4 = vcmask 851712   ;;  %vm33_vm5 = vcmask 786112  }
   0x9   :  { %s145_s0 = smov 8   ;;  %vm39_vm6 = vcmask 720512   ;;  %vm45_vm7 = vcmask 654912   ;;  %vm51_vm8 = vcmask 589312   ;;  %vm57_vm9 = vcmask 523712  }
   0xa   :  { %31 = vrot.lane.b32.xlu0 %v105_v4, %s135_s24  ;;  %37 = vrot.lane.b32.xlu1 %v106_v5, %s136_s25  ;;  %vm63_vm10 = vcmask 458112   ;;  %vm69_vm11 = vcmask 392512   ;;  %vm75_vm12 = vcmask 326912   ;;  %vm81_vm13 = vcmask 261312  }
   0xb   :  { %vm87_vm14 = vcmask 195712   ;;  %vm93_vm15 = vcmask 130112  }
   0xe   :  { %43 = vrot.lane.b32.xlu0 %v107_v7, %s137_s30  ;;  %49 = vrot.lane.b32.xlu1 %v108_v8, %s138_s2 }
  0x12   :  { %55 = vrot.lane.b32.xlu0 %v109_v9, %s139_s7  ;;  %61 = vrot.lane.b32.xlu1 %v110_v10, %s140_s8 }
  0x16   :  { %67 = vrot.lane.b32.xlu0 %v111_v11, %s141_s13  ;;  %73 = vrot.lane.b32.xlu1 %v112_v12, %s142_s14 }
  0x1a   :  { %79 = vrot.lane.b32.xlu0 %v113_v13, %s143_s19  ;;  %85 = vrot.lane.b32.xlu1 %v114_v14, %s144_s20 }
  0x1e   :  { %91 = vrot.lane.b32.xlu0 %v115_v15, %s145_s0 }
  0x74   :  { %v8_v16 = vpop.permute.xlu0 %7   ;;  %v20_v17 = vpop.permute.xlu1 %19  }
  0x75   :  { %10 = vst.msk [vmem:[#allocation0] sm:$0x1] %vm9_vm1, %v8_v16  }
  0x78   :  { %v14_v18 = vpop.permute.xlu0 %13   ;;  %v26_v19 = vpop.permute.xlu1 %25  }
  0x79   :  { %16 = vst.msk [vmem:[#allocation0] sm:$0x1] %vm15_vm2, %v14_v18  }
  0x7a   :  { %22 = vst.msk [vmem:[#allocation0] sm:$0x1] %vm21_vm3, %v20_v17  }
  0x7b   :  { %28 = vst.msk [vmem:[#allocation0] sm:$0x1] %vm27_vm4, %v26_v19  }
  0x7c   :  { %v32_v20 = vpop.permute.xlu0 %31   ;;  %v38_v21 = vpop.permute.xlu1 %37  }
  0x7d   :  { %34 = vst.msk [vmem:[#allocation0] sm:$0x1] %vm33_vm5, %v32_v20  }
  0x7e   :  { %40 = vst.msk [vmem:[#allocation0] sm:$0x1] %vm39_vm6, %v38_v21  }
  0x80   :  { %v44_v22 = vpop.permute.xlu0 %43   ;;  %v50_v23 = vpop.permute.xlu1 %49  }
  0x81   :  { %46 = vst.msk [vmem:[#allocation0] sm:$0x1] %vm45_vm7, %v44_v22  }
  0x82   :  { %52 = vst.msk [vmem:[#allocation0] sm:$0x1] %vm51_vm8, %v50_v23  }
  0x84   :  { %v56_v24 = vpop.permute.xlu0 %55   ;;  %v62_v25 = vpop.permute.xlu1 %61  }
  0x85   :  { %58 = vst.msk [vmem:[#allocation0] sm:$0x1] %vm57_vm9, %v56_v24  }
  0x86   :  { %64 = vst.msk [vmem:[#allocation0] sm:$0x1] %vm63_vm10, %v62_v25  }
  0x88   :  { %v68_v26 = vpop.permute.xlu0 %67   ;;  %v74_v27 = vpop.permute.xlu1 %73  }
  0x89   :  { %70 = vst.msk [vmem:[#allocation0] sm:$0x1] %vm69_vm11, %v68_v26  }
  0x8a   :  { %76 = vst.msk [vmem:[#allocation0] sm:$0x1] %vm75_vm12, %v74_v27  }
  0x8c   :  { %v80_v28 = vpop.permute.xlu0 %79   ;;  %v86_v29 = vpop.permute.xlu1 %85  }
  0x8d   :  { %82 = vst.msk [vmem:[#allocation0] sm:$0x1] %vm81_vm13, %v80_v28  }
  0x8e   :  { %88 = vst.msk [vmem:[#allocation0] sm:$0x1] %vm87_vm14, %v86_v29  }
  0x90   :  { %v92_v30 = vpop.permute.xlu0 %91  }
  0x91   :  { %94 = vst.msk [vmem:[#allocation0] sm:$0x1] %vm93_vm15, %v92_v30  }
  0x98   :  { %v98_v31 = vld [vmem:[#allocation0] sm:$0x1] }
  0x99   :  { %100 = vst [vmem:[%s208_s1] sm:$0x1] %v98_v31 }

// kernel: _upsample_bn_forward.5
= control target key start
LH: loop header
LB: loop body
LE: loop exit
PB: predicated region body
PF: predicated region fallthrough
CT: control target
= control target key end

     0   :  { %s305_s12 = smov 0   ;;  %s328_s0 = inlined_call_operand.vmem [shape: f32[2,16,128], index: 0, kind: input, shape index: {}]   ;;  %s329_s1 = inlined_call_operand.vmem [shape: f32[1,1,128], index: 1, kind: input, shape index: {}]   ;;  %s330_s2 = inlined_call_operand.vmem [shape: f32[1,1,128], index: 2, kind: input, shape index: {}]   ;;  %s331_s3 = inlined_call_operand.vmem [shape: f32[2,16,128], index: 3, kind: output, shape index: {}]  }
   0x1 LB: > { %s254_s13 = sadd.s32 4294967295, %s283_s12   ;;  %p258_p0 = scmp.ge.s32.totalorder %s283_s12, 1  ;;  %s283_s12 = sphi %s305_s12, %s13_s12  }
   0x2   : > { %p137_p1 = scmp.lt.s32.totalorder %s283_s12, 3 }
   0x4   : > { %p138_p2 = pnand %p258_p0, %p137_p1 }
   0x5   : > { %p161_p3 = scmp.lt.s32.totalorder (!%p138_p2), %s254_s13, 1  ;;  %v263_v0 = vld [vmem:[%s329_s1] ss:$0 sm:$0xff] (!%p138_p2) }
   0x6   : > { %141 = sbr.rel (%p138_p2) target bundleno = 25 (0x19), region = 32  ;;  %v264_v3 = vld [vmem:[%s330_s2] ss:$0 sm:$0xff] (!%p138_p2) }
   0xd   : > { %s333_s13 = smov (!%p161_p3, %s254_s13), 1 }
   0xe   : > { %s267_s14 = sshll.u32 %s333_s13, 4 }
   0xf   : > { %s165_s19 = scalar_lea.vmem %s328_s0, %s267_s14  ;;  %s170_s24 = scalar_lea.vmem %s331_s3, %s267_s14 }
  0x10   : > { %v171_v1 = vld [vmem:[%s165_s19] sm:$0xff]  ;;  %v172_v2 = vld [vmem:[%s165_s19 + $0x8] sm:$0xff] }
  0x11   : > { %v180_v4 = vmul.f32 %v263_v0, %v171_v1  ;;  %v181_v5 = vmul.f32 %v263_v0, %v172_v2 }
  0x13   : > { %v189_v6 = vadd.f32 %v264_v3, %v180_v4  ;;  %v190_v7 = vadd.f32 %v264_v3, %v181_v5 }
  0x15   : > { %vm191_vm0 = vcmp.ge.f32.partialorder %v189_v6, 0.0  ;;  %v193_v8 = vmul.f32 0.01, %v189_v6  ;;  %vm192_vm1 = vcmp.ge.f32.partialorder %v190_v7, 0.0  ;;  %v194_v9 = vmul.f32 0.01, %v190_v7 }
  0x17   : > { %v195_v10 = vsel %vm191_vm0, %v189_v6, %v193_v8  ;;  %v196_v11 = vsel %vm192_vm1, %v190_v7, %v194_v9 }
  0x18   : > { %197 = vst [vmem:[%s170_s24] sm:$0xff] %v195_v10  ;;  %198 = vst [vmem:[%s170_s24 + $0x8] sm:$0xff] %v196_v11 }
  0x19 PF: > { %s13_s12 = sadd.s32 1, %s283_s12  }
  0x1a   : > { %p10_p4 = scmp.ge.s32.totalorder %s13_s12, 4  }
  0x1c   :  { %12 = sbr.rel (!%p10_p4) target bundleno = 1 (0x1), region = 62 }

// kernel: _upsample_bn_forward.4
= control target key start
LH: loop header
LB: loop body
LE: loop exit
PB: predicated region body
PF: predicated region fallthrough
CT: control target
= control target key end

     0   :  { %s4108_s21 = smov 0   ;;  %s5271_s0 = inlined_call_operand.vmem [shape: f32[2,18,18,8], index: 0, kind: input, shape index: {}]   ;;  %s5272_s1 = inlined_call_operand.vmem [shape: bf16[9,8,8], index: 1, kind: input, shape index: {}]   ;;  %s5273_s2 = inlined_call_operand.vmem [shape: f32[1,1,8], index: 2, kind: input, shape index: {}]   ;;  %s5274_s3 = inlined_call_operand.vmem [shape: f32[1,1,8], index: 3, kind: input, shape index: {}]   ;;  %s5275_s4 = inlined_call_operand.vmem [shape: f32[2,256,8], index: 4, kind: output, shape index: {0}]   ;;  %s5276_s5 = inlined_call_operand.vmem [shape: f32[2,1,8], index: 5, kind: output, shape index: {1}]   ;;  %s5277_s6 = inlined_call_operand.vmem [shape: f32[2,1,8], index: 6, kind: output, shape index: {2}]  }
   0x1 LB: > { %s3161_s22 = sadd.s32 4294967295, %s4071_s21   ;;  %p3165_p0 = scmp.ge.s32.totalorder %s4071_s21, 1  ;;  %s4071_s21 = sphi %s4108_s21, %s17_s21  }
   0x2   : > { %p217_p1 = scmp.lt.s32.totalorder %s4071_s21, 3 }
   0x4   : > { %p218_p2 = pnand %p3165_p0, %p217_p1 }
   0x6   : > { %221 = sbr.rel (%p218_p2) target bundleno = 585 (0x249), region = 36 }
   0xd   : > { %v3171_v0 = vld [vmem:[%s5272_s1 + $0x4] sm:$0xf]  ;;  %vm853_vm0 = vcmask 1043456   ;;  %v3238_v1 = vld [vmem:[%s5272_s1 + $0x10] sm:$0xf]  ;;  %p253_p3 = scmp.lt.s32.totalorder %s3161_s22, 1 }
   0xe   : > { %4043 = vmatprep.subr.msk.bf16.mxu1 %vm853_vm0, %v3171_v0  ;;  %4047 = vmatprep.subr.msk.bf16.mxu0 %vm853_vm0, %v3238_v1  ;;  %v855_v2 = vsel %vm853_vm0, %v3171_v0, 0  ;;  %v4126_v3 = vsel %vm853_vm0, %v3238_v1, 0  ;;  %v624_v4 = vld [vmem:[%s5272_s1] sm:$0xf]  ;;  %v3255_v5 = vld [vmem:[%s5272_s1 + $0x14] sm:$0xf] }
   0xf   : > { %5304 = vst [vmem:[#allocation2_spill] sm:$0xff] %v4126_v3  ;;  %3480 = vmatpush3.bf16.msra.mxu1 %v855_v2  ;;  %3616 = vmatpush3.bf16.msra.mxu0 %v4126_v3  ;;  %s5339_s22 = smov (!%p253_p3, %s3161_s22), 1  ;;  %v4143_v6 = vld [vmem:[%s5273_s2] ss:$0 sm:$0xff]  ;;  %v4158_v8 = vld [vmem:[%s5272_s1 + $0x18] sm:$0xf] }
  0x10   : > { %4044 = vmatprep.subr.msk.bf16.mxu1 %vm853_vm0, %v624_v4  ;;  %s4053_s7 = smul.u32 432, %s5339_s22  ;;  %4049 = vmatprep.subr.msk.bf16.mxu0 %vm853_vm0, %v3255_v5  ;;  %v4153_v7 = vld [vmem:[%s5274_s3] ss:$0 sm:$0xff]  ;;  %vm673_vm1 = vcmask 1046528   ;;  %v4173_v21 = vsel %vm853_vm0, %v624_v4, 0  ;;  %vm804_vm2 = vcmask 64512   ;;  %s265_s15 = scalar_lea.vmem %s5276_s5, %s5339_s22 }
  0x11   : > { %v4179_v25 = vsel %vm853_vm0, %v3255_v5, 0  ;;  %v4186_v29 = vsel %vm853_vm0, %v4158_v8, 0  ;;  %s3325_s9 = sshll.u32 %s5339_s22, 8  ;;  %s268_s18 = scalar_lea.vmem %s5277_s6, %s5339_s22 }
  0x12   : > { %s4148_s12 = scalar_lea.vmem %s5271_s0, %s4053_s7 }
  0x13   : > { %v270_v9 = vld [vmem:[%s4148_s12] sm:$0xff]  ;;  %v271_v10 = vld [vmem:[%s4148_s12 + $0x8] sm:$0xff]  ;;  %v272_v11 = vld [vmem:[%s4148_s12 + $0x10] sm:$0x3] }
  0x14   : > { %v331_v12 = vmul.f32 %v4143_v6, %v270_v9  ;;  %v332_v13 = vmul.f32 %v4143_v6, %v271_v10  ;;  %v333_v14 = vmul.f32 %v4143_v6, %v272_v11  ;;  %v273_v15 = vld [vmem:[%s4148_s12 + $0x18] sm:$0xff]  ;;  %v274_v16 = vld [vmem:[%s4148_s12 + $0x20] sm:$0xff]  ;;  %v275_v17 = vld [vmem:[%s4148_s12 + $0x28] sm:$0x3] }
  0x15   : > { %v334_v18 = vmul.f32 %v4143_v6, %v273_v15  ;;  %v335_v19 = vmul.f32 %v4143_v6, %v274_v16  ;;  %v336_v20 = vmul.f32 %v4143_v6, %v275_v17  ;;  %v276_v31 = vld [vmem:[%s4148_s12 + $0x30] sm:$0xff]  ;;  %v278_v32 = vld [vmem:[%s4148_s12 + $0x40] sm:$0x3]  ;;  %v277_v35 = vld [vmem:[%s4148_s12 + $0x38] sm:$0xff] }
  0x16   : > { %v392_v22 = vadd.f32 %v4153_v7, %v331_v12  ;;  %v393_v23 = vadd.f32 %v4153_v7, %v332_v13  ;;  %v394_v24 = vadd.f32 %v4153_v7, %v333_v14  ;;  %v337_v42 = vmul.f32 %v4143_v6, %v276_v31  ;;  %v279_v54 = vld [vmem:[%s4148_s12 + $0x48] sm:$0xff]  ;;  %v280_v59 = vld [vmem:[%s4148_s12 + $0x50] sm:$0xff]  ;;  %v281_v4 = vld [vmem:[%s4148_s12 + $0x58] sm:$0x3] }
  0x17   : > { %v395_v26 = vadd.f32 %v4153_v7, %v334_v18  ;;  %v396_v27 = vadd.f32 %v4153_v7, %v335_v19  ;;  %v397_v28 = vadd.f32 %v4153_v7, %v336_v20  ;;  %v338_v45 = vmul.f32 %v4143_v6, %v277_v35  ;;  %v4239_v18 = vld [vmem:[%s5272_s1 + $0x8] sm:$0xf] }
  0x18   : > { %vm446_vm3 = vcmp.ge.f32.partialorder %v392_v22, 0.0  ;;  %vm447_vm4 = vcmp.ge.f32.partialorder %v393_v23, 0.0  ;;  %vm448_vm5 = vcmp.ge.f32.partialorder %v394_v24, 0.0  ;;  %v500_v30 = vmul.f32 0.01, %v392_v22  ;;  %v283_v31 = vld [vmem:[%s4148_s12 + $0x68] sm:$0xff] }
  0x19   : > { %v501_v33 = vmul.f32 0.01, %v393_v23  ;;  %v502_v34 = vmul.f32 0.01, %v394_v24  ;;  %vm449_vm6 = vcmp.ge.f32.partialorder %v395_v26, 0.0  ;;  %vm450_vm7 = vcmp.ge.f32.partialorder %v396_v27, 0.0 }
  0x1a   : > { %v4191_v36 = vsel %vm446_vm3, %v392_v22, %v500_v30  ;;  %v503_v37 = vmul.f32 0.01, %v395_v26  ;;  %v504_v38 = vmul.f32 0.01, %v396_v27  ;;  %vm451_vm8 = vcmp.ge.f32.partialorder %v397_v28, 0.0  ;;  %v282_v30 = vld [vmem:[%s4148_s12 + $0x60] sm:$0xff] }
  0x1b   : > { %v4193_v39 = vsel %vm447_vm4, %v393_v23, %v501_v33  ;;  %v4195_v40 = vsel %vm448_vm5, %v394_v24, %v502_v34  ;;  %v674_v41 = vrot.slane %v4191_v36, 1  ;;  %v505_v46 = vmul.f32 0.01, %v397_v28  ;;  %v284_v34 = vld [vmem:[%s4148_s12 + $0x70] sm:$0x3] }
  0x1c   : > { %v675_v43 = vrot.slane %v4193_v39, 1  ;;  %v677_v44 = vrot.slane %v4195_v40, 1  ;;  %v4202_v47 = vsel %vm449_vm6, %v395_v26, %v503_v37  ;;  %v4204_v48 = vsel %vm450_vm7, %v396_v27, %v504_v38 }
  0x1d   : > { %v339_v49 = vmul.f32 %v4143_v6, %v278_v32  ;;  %v4211_v52 = vpack.c.bf16 %v4204_v48, %v4202_v47  ;;  %v679_v53 = vrot.slane %v4202_v47, 1  ;;  %v4215_v56 = vsel %vm451_vm8, %v397_v28, %v505_v46 }
  0x1e   : > { %v676_v50 = vsel %vm673_vm1, %v674_v41, %v675_v43  ;;  %v678_v51 = vsel %vm673_vm1, %v675_v43, %v677_v44  ;;  %v680_v57 = vrot.slane %v4204_v48, 1  ;;  %v1236_v58 = vrot.slane %v4202_v47, 2  ;;  %v285_v44 = vld [vmem:[%s4148_s12 + $0x78] sm:$0xff] }
  0x1f   : > { %v786_v55 = vpack.c.bf16 %v678_v51, %v676_v50  ;;  %v682_v60 = vrot.slane %v4215_v56, 1  ;;  %v1237_v61 = vrot.slane %v4204_v48, 2  ;;  %v1239_v62 = vrot.slane %v4215_v56, 2  ;;  %v286_v51 = vld [vmem:[%s4148_s12 + $0x80] sm:$0xff] }
  0x20   : > { %v398_v63 = vadd.f32 %v4153_v7, %v337_v42  ;;  %v681_v0 = vsel %vm673_vm1, %v679_v53, %v680_v57  ;;  %v399_v1 = vadd.f32 %v4153_v7, %v338_v45  ;;  %v400_v2 = vadd.f32 %v4153_v7, %v339_v49 }
  0x21   : > { %3481 = vmatprep.mubr.msk.bf16.mxu1 %vm804_vm2, %v786_v55  ;;  %v340_v5 = vmul.f32 %v4143_v6, %v279_v54  ;;  %v683_v9 = vsel %vm673_vm1, %v680_v57, %v682_v60  ;;  %v341_v11 = vmul.f32 %v4143_v6, %v280_v59  ;;  %v342_v16 = vmul.f32 %v4143_v6, %v281_v4 }
  0x22   : > { %vm452_vm9 = vcmp.ge.f32.partialorder %v398_v63, 0.0  ;;  %v506_v10 = vmul.f32 0.01, %v398_v63  ;;  %v787_v12 = vpack.c.bf16 %v683_v9, %v681_v0  ;;  %vm453_vm10 = vcmp.ge.f32.partialorder %v399_v1, 0.0  ;;  %v287_v0 = vld [vmem:[%s4148_s12 + $0x88] sm:$0x3] }
  0x23   : > { %vm454_vm11 = vcmp.ge.f32.partialorder %v400_v2, 0.0  ;;  %v507_v13 = vmul.f32 0.01, %v399_v1  ;;  %v508_v14 = vmul.f32 0.01, %v400_v2  ;;  %v401_v17 = vadd.f32 %v4153_v7, %v340_v5 }
  0x24   : > { %v4232_v15 = vsel %vm452_vm9, %v398_v63, %v506_v10  ;;  %3617 = vmatprep.mubr.msk.bf16.mxu0 %vm804_vm2, %v787_v12  ;;  %3482 = vmatmul.mubr.msk.bf16.vlgmr.msra.gmra.mrb[0].mxu1 %vm804_vm2, %v787_v12  ;;  %v402_v23 = vadd.f32 %v4153_v7, %v341_v11  ;;  %v403_v28 = vadd.f32 %v4153_v7, %v342_v16  ;;  %v288_v11 = vld [vmem:[%s4148_s12 + $0x90] sm:$0xff]  ;;  %vm1230_vm8 = vcmask 1045504  }
  0x25   : > { %v4243_v19 = vsel %vm453_vm10, %v399_v1, %v507_v13  ;;  %v684_v20 = vrot.slane %v4232_v15, 1  ;;  %v1241_v22 = vrot.slane %v4232_v15, 2  ;;  %3514 = vmatpush3.bf16.msra.mxu1 %v4173_v21  ;;  %v4249_v24 = vsel %vm454_vm11, %v400_v2, %v508_v14 }
  0x26   : > { %v685_v26 = vrot.slane %v4243_v19, 1  ;;  %v1242_v27 = vrot.slane %v4243_v19, 2  ;;  %v687_v32 = vrot.slane %v4249_v24, 1  ;;  %v1244_v33 = vrot.slane %v4249_v24, 2  ;;  %4045 = vmatprep.subr.msk.bf16.mxu1 %vm853_vm0, %v4239_v18 }
  0x27   : > { %vm455_vm12 = vcmp.ge.f32.partialorder %v401_v17, 0.0  ;;  %vm456_vm13 = vcmp.ge.f32.partialorder %v402_v23, 0.0  ;;  %vm457_vm14 = vcmp.ge.f32.partialorder %v403_v28, 0.0  ;;  %v509_v35 = vmul.f32 0.01, %v401_v17 }
  0x28   : > { %v686_v21 = vsel %vm673_vm1, %v684_v20, %v685_v26  ;;  %v510_v37 = vmul.f32 0.01, %v402_v23  ;;  %v688_v38 = vsel %vm673_vm1, %v685_v26, %v687_v32  ;;  %v511_v41 = vmul.f32 0.01, %v403_v28 }
  0x29   : > { %v343_v42 = vmul.f32 %v4143_v6, %v282_v30  ;;  %v344_v43 = vmul.f32 %v4143_v6, %v283_v31  ;;  %v4266_v45 = vpack.c.bf16 %v688_v38, %v686_v21  ;;  %v4268_v46 = vsel %vm455_vm12, %v401_v17, %v509_v35  ;;  %v289_v30 = vld [vmem:[%s4148_s12 + $0x98] sm:$0xff]  ;;  %v290_v31 = vld [vmem:[%s4148_s12 + $0xa0] sm:$0x3] }
  0x2a   : > { %v4270_v49 = vsel %vm456_vm13, %v402_v23, %v510_v37  ;;  %v345_v50 = vmul.f32 %v4143_v6, %v284_v34  ;;  %v4274_v53 = vsel %vm457_vm14, %v403_v28, %v511_v41  ;;  %v689_v54 = vrot.slane %v4268_v46, 1 }
  0x2b   : > { %5305 = vst [vmem:[#allocation3_spill] sm:$0xff] %v4266_v45  ;;  %v690_v55 = vrot.slane %v4270_v49, 1  ;;  %v404_v57 = vadd.f32 %v4153_v7, %v343_v42  ;;  %3618 = vmatmul.mubr.msk.bf16.vlgmr.msra.gmra.mrb[0].mxu0 %vm804_vm2, %v4266_v45  ;;  %3485 = vmatprep.mubr.msk.bf16.mxu1 %vm804_vm2, %v4266_v45  ;;  %v692_v59 = vrot.slane %v4274_v53, 1  ;;  %v405_v60 = vadd.f32 %v4153_v7, %v344_v43  ;;  %v317_v45 = vld [vmem:[%s4148_s12 + $0x178] sm:$0x3] }
  0x2c   : > { %v406_v63 = vadd.f32 %v4153_v7, %v345_v50  ;;  %v346_v1 = vmul.f32 %v4143_v6, %v285_v44  ;;  %3650 = vmatpush3.bf16.msra.mxu0 %v4179_v25  ;;  %v347_v5 = vmul.f32 %v4143_v6, %v286_v51  ;;  %v348_v14 = vmul.f32 %v4143_v6, %v287_v0  ;;  %v291_v50 = vld [vmem:[%s4148_s12 + $0xa8] sm:$0xff]  ;;  %v292_v51 = vld [vmem:[%s4148_s12 + $0xb0] sm:$0xff] }
  0x2d   : > { %v691_v2 = vsel %vm673_vm1, %v689_v54, %v690_v55  ;;  %vm458_vm15 = vcmp.ge.f32.partialorder %v404_v57, 0.0  ;;  %v512_v4 = vmul.f32 0.01, %v404_v57  ;;  %v693_v9 = vsel %vm673_vm1, %v690_v55, %v692_v59  ;;  %4050 = vmatprep.subr.msk.bf16.mxu0 %vm853_vm0, %v4158_v8 }
  0x2e   : > { %vm459_vm3 = vcmp.ge.f32.partialorder %v405_v60, 0.0  ;;  %vm460_vm4 = vcmp.ge.f32.partialorder %v406_v63, 0.0  ;;  %v513_v10 = vmul.f32 0.01, %v405_v60  ;;  %v4295_v12 = vpack.c.bf16 %v693_v9, %v691_v2 }
  0x2f   : > { %v514_v25 = vmul.f32 0.01, %v406_v63  ;;  %v4297_v13 = vsel %vm458_vm15, %v404_v57, %v512_v4  ;;  %v407_v20 = vadd.f32 %v4153_v7, %v346_v1  ;;  %v408_v23 = vadd.f32 %v4153_v7, %v347_v5  ;;  %v293_v4 = vld [vmem:[%s4148_s12 + $0xb8] sm:$0x3] }
  0x30   : > { %5306 = vst [vmem:[#allocation4_spill] sm:$0xff] %v4295_v12  ;;  %v4300_v16 = vsel %vm459_vm3, %v405_v60, %v513_v10  ;;  %v694_v17 = vrot.slane %v4297_v13, 1  ;;  %3621 = vmatprep.mubr.msk.bf16.mxu0 %vm804_vm2, %v4295_v12  ;;  %3486 = vmatmul.mubr.msk.bf16.gmra.mrb[4].mxu1 %vm804_vm2, %v4295_v12  ;;  %v409_v28 = vadd.f32 %v4153_v7, %v348_v14  ;;  %v1246_v10 = vrot.slane %v4268_v46, 2  ;;  %v294_v14 = vld [vmem:[%s4148_s12 + $0xc0] sm:$0xff] }
  0x31   : > { %v4309_v8 = vsel %vm460_vm4, %v406_v63, %v514_v25  ;;  %v695_v26 = vrot.slane %v4300_v16, 1  ;;  %v349_v32 = vmul.f32 %v4143_v6, %v288_v11  ;;  %vm461_vm5 = vcmp.ge.f32.partialorder %v407_v20, 0.0 }
  0x32   : > { %v697_v34 = vrot.slane %v4309_v8, 1  ;;  %vm462_vm6 = vcmp.ge.f32.partialorder %v408_v23, 0.0  ;;  %v515_v21 = vmul.f32 0.01, %v407_v20  ;;  %vm463_vm7 = vcmp.ge.f32.partialorder %v409_v28, 0.0 }
  0x33   : > { %v696_v35 = vsel %vm673_vm1, %v694_v17, %v695_v26  ;;  %v516_v37 = vmul.f32 0.01, %v408_v23  ;;  %v517_v38 = vmul.f32 0.01, %v409_v28  ;;  %v350_v43 = vmul.f32 %v4143_v6, %v289_v30 }
  0x34   : > { %v698_v41 = vsel %vm673_vm1, %v695_v26, %v697_v34  ;;  %v4319_v42 = vsel %vm461_vm5, %v407_v20, %v515_v21  ;;  %v351_v44 = vmul.f32 %v4143_v6, %v290_v31  ;;  %v410_v0 = vadd.f32 %v4153_v7, %v349_v32 }
  0x35   : > { %v4325_v54 = vpack.c.bf16 %v698_v41, %v696_v35  ;;  %v4327_v55 = vsel %vm462_vm6, %v408_v23, %v516_v37  ;;  %v4329_v57 = vsel %vm463_vm7, %v409_v28, %v517_v38  ;;  %v699_v59 = vrot.slane %v4319_v42, 1 }
  0x36   : > { %v700_v60 = vrot.slane %v4327_v55, 1  ;;  %v702_v63 = vrot.slane %v4329_v57, 1  ;;  %v411_v1 = vadd.f32 %v4153_v7, %v350_v43  ;;  %v412_v2 = vadd.f32 %v4153_v7, %v351_v44  ;;  %v295_v44 = vld [vmem:[%s4148_s12 + $0xc8] sm:$0xff] }
  0x37   : > { %5307 = vst [vmem:[#allocation5_spill] sm:$0xff] %v4325_v54  ;;  %3622 = vmatmul.mubr.msk.bf16.gmra.mrb[4].mxu0 %vm804_vm2, %v4325_v54  ;;  %3489 = vmatprep.mubr.msk.bf16.mxu1 %vm804_vm2, %v4325_v54  ;;  %v352_v5 = vmul.f32 %v4143_v6, %v291_v50  ;;  %v353_v9 = vmul.f32 %v4143_v6, %v292_v51  ;;  %vm464_vm9 = vcmp.ge.f32.partialorder %v410_v0, 0.0  ;;  %v518_v20 = vmul.f32 0.01, %v410_v0  ;;  %v296_v50 = vld [vmem:[%s4148_s12 + $0xd0] sm:$0x3] }
  0x38   : > { %v701_v11 = vsel %vm673_vm1, %v699_v59, %v700_v60  ;;  %v703_v25 = vsel %vm673_vm1, %v700_v60, %v702_v63  ;;  %vm465_vm10 = vcmp.ge.f32.partialorder %v411_v1, 0.0  ;;  %vm466_vm11 = vcmp.ge.f32.partialorder %v412_v2, 0.0 }
  0x39   : > { %v4348_v17 = vpack.c.bf16 %v703_v25, %v701_v11  ;;  %v519_v23 = vmul.f32 0.01, %v411_v1  ;;  %v520_v26 = vmul.f32 0.01, %v412_v2  ;;  %v354_v28 = vmul.f32 %v4143_v6, %v293_v4 }
  0x3a   : > { %v413_v30 = vadd.f32 %v4153_v7, %v352_v5  ;;  %v414_v31 = vadd.f32 %v4153_v7, %v353_v9  ;;  %v4357_v32 = vsel %vm464_vm9, %v410_v0, %v518_v20  ;;  %v355_v21 = vmul.f32 %v4143_v6, %v294_v14 }
  0x3b   : > { %5308 = vst [vmem:[#allocation6_spill] sm:$0xff] %v4348_v17  ;;  %3625 = vmatprep.mubr.msk.bf16.mxu0 %vm804_vm2, %v4348_v17  ;;  %3490 = vmatmul.mubr.msk.bf16.gmra.mrb[8].mxu1 %vm804_vm2, %v4348_v17  ;;  %v4359_v34 = vsel %vm465_vm10, %v411_v1, %v519_v23  ;;  %v1247_v35 = vrot.slane %v4270_v49, 2  ;;  %v4363_v37 = vsel %vm466_vm11, %v412_v2, %v520_v26  ;;  %v704_v38 = vrot.slane %v4357_v32, 1  ;;  %v313_v17 = vld [vmem:[%s4148_s12 + $0x158] sm:$0xff] }
  0x3c   : > { %v705_v41 = vrot.slane %v4359_v34, 1  ;;  %v415_v43 = vadd.f32 %v4153_v7, %v354_v28  ;;  %v707_v51 = vrot.slane %v4363_v37, 1  ;;  %vm467_vm12 = vcmp.ge.f32.partialorder %v413_v30, 0.0 }
  0x3d   : > { %vm468_vm13 = vcmp.ge.f32.partialorder %v414_v31, 0.0  ;;  %v521_v59 = vmul.f32 0.01, %v413_v30  ;;  %v522_v63 = vmul.f32 0.01, %v414_v31  ;;  %v356_v4 = vmul.f32 %v4143_v6, %v295_v44 }
  0x3e   : > { %v706_v60 = vsel %vm673_vm1, %v704_v38, %v705_v41  ;;  %vm469_vm14 = vcmp.ge.f32.partialorder %v415_v43, 0.0  ;;  %v523_v0 = vmul.f32 0.01, %v415_v43  ;;  %v708_v1 = vsel %vm673_vm1, %v705_v41, %v707_v51  ;;  %v297_v38 = vld [vmem:[%s4148_s12 + $0xd8] sm:$0xff]  ;;  %v298_v41 = vld [vmem:[%s4148_s12 + $0xe0] sm:$0xff] }
  0x3f   : > { %v4373_v2 = vsel %vm467_vm12, %v413_v30, %v521_v59  ;;  %v357_v5 = vmul.f32 %v4143_v6, %v296_v50  ;;  %v4377_v9 = vpack.c.bf16 %v708_v1, %v706_v60  ;;  %v4379_v11 = vsel %vm468_vm13, %v414_v31, %v522_v63  ;;  %v299_v51 = vld [vmem:[%s4148_s12 + $0xe8] sm:$0x3] }
  0x40   : > { %v4381_v25 = vsel %vm469_vm14, %v415_v43, %v523_v0  ;;  %v709_v14 = vrot.slane %v4373_v2, 1  ;;  %v710_v20 = vrot.slane %v4379_v11, 1  ;;  %v416_v26 = vadd.f32 %v4153_v7, %v355_v21 }
  0x41   : > { %5309 = vst [vmem:[#allocation7_spill] sm:$0xff] %v4377_v9  ;;  %v712_v23 = vrot.slane %v4381_v25, 1  ;;  %v417_v28 = vadd.f32 %v4153_v7, %v356_v4  ;;  %3626 = vmatmul.mubr.msk.bf16.gmra.mrb[8].mxu0 %vm804_vm2, %v4377_v9  ;;  %3493 = vmatprep.mubr.msk.bf16.mxu1 %vm804_vm2, %v4377_v9  ;;  %v418_v30 = vadd.f32 %v4153_v7, %v357_v5  ;;  %v1249_v43 = vrot.slane %v4274_v53, 2 }
  0x42   : > { %v1238_v31 = vsel %vm1230_vm8, %v1236_v58, %v1237_v61  ;;  %v1240_v21 = vsel %vm1230_vm8, %v1237_v61, %v1239_v62  ;;  %v711_v44 = vsel %vm673_vm1, %v709_v14, %v710_v20  ;;  %vm470_vm15 = vcmp.ge.f32.partialorder %v416_v26, 0.0 }
  0x43   : > { %v713_v50 = vsel %vm673_vm1, %v710_v20, %v712_v23  ;;  %vm471_vm3 = vcmp.ge.f32.partialorder %v417_v28, 0.0  ;;  %vm472_vm4 = vcmp.ge.f32.partialorder %v418_v30, 0.0  ;;  %v524_v58 = vmul.f32 0.01, %v416_v26 }
  0x44   : > { %v4409_v47 = vpack.c.bf16 %v713_v50, %v711_v44  ;;  %v525_v56 = vmul.f32 0.01, %v417_v28  ;;  %v526_v59 = vmul.f32 0.01, %v418_v30  ;;  %v4411_v48 = vpack.c.bf16 %v1240_v21, %v1238_v31 }
  0x45   : > { %v358_v61 = vmul.f32 %v4143_v6, %v297_v38  ;;  %v359_v62 = vmul.f32 %v4143_v6, %v298_v41  ;;  %v4419_v53 = vsel %vm470_vm15, %v416_v26, %v524_v58  ;;  %v360_v63 = vmul.f32 %v4143_v6, %v299_v51  ;;  %v300_v38 = vld [vmem:[%s4148_s12 + $0xf0] sm:$0xff]  ;;  %v301_v41 = vld [vmem:[%s4148_s12 + $0xf8] sm:$0xff]  ;;  %v302_v51 = vld [vmem:[%s4148_s12 + $0x100] sm:$0x3] }
  0x46   : > { %5310 = vst [vmem:[#allocation8_spill] sm:$0xff] %v4409_v47  ;;  %3629 = vmatprep.mubr.msk.bf16.mxu0 %vm804_vm2, %v4409_v47  ;;  %3494 = vmatmul.mubr.msk.bf16.gmra.mrb[12].mxu1 %vm804_vm2, %v4409_v47  ;;  %v4421_v60 = vsel %vm471_vm3, %v417_v28, %v525_v56  ;;  %v1251_v0 = vrot.slane %v4297_v13, 2  ;;  %v4425_v1 = vsel %vm472_vm4, %v418_v30, %v526_v59  ;;  %v714_v4 = vrot.slane %v4419_v53, 1 }
  0x47   : > { %v715_v5 = vrot.slane %v4421_v60, 1  ;;  %v419_v14 = vadd.f32 %v4153_v7, %v358_v61  ;;  %v717_v20 = vrot.slane %v4425_v1, 1  ;;  %v420_v23 = vadd.f32 %v4153_v7, %v359_v62  ;;  %v303_v62 = vld [vmem:[%s4148_s12 + $0x108] sm:$0xff] }
  0x48   : > { %v421_v26 = vadd.f32 %v4153_v7, %v360_v63  ;;  %v1243_v28 = vsel %vm1230_vm8, %v1241_v22, %v1242_v27  ;;  %v1245_v21 = vsel %vm1230_vm8, %v1242_v27, %v1244_v33  ;;  %v361_v33 = vmul.f32 %v4143_v6, %v300_v38  ;;  %v305_v38 = vld [vmem:[%s4148_s12 + $0x118] sm:$0x3] }
  0x49   : > { %v716_v30 = vsel %vm673_vm1, %v714_v4, %v715_v5  ;;  %vm473_vm5 = vcmp.ge.f32.partialorder %v419_v14, 0.0  ;;  %v527_v31 = vmul.f32 0.01, %v419_v14  ;;  %v718_v44 = vsel %vm673_vm1, %v715_v5, %v717_v20 }
  0x4a   : > { %vm474_vm6 = vcmp.ge.f32.partialorder %v420_v23, 0.0  ;;  %vm475_vm7 = vcmp.ge.f32.partialorder %v421_v26, 0.0  ;;  %v528_v50 = vmul.f32 0.01, %v420_v23  ;;  %v4448_v22 = vpack.c.bf16 %v718_v44, %v716_v30 }
  0x4b   : > { %v529_v58 = vmul.f32 0.01, %v421_v26  ;;  %v4450_v56 = vsel %vm473_vm5, %v419_v14, %v527_v31  ;;  %v4452_v59 = vpack.c.bf16 %v1245_v21, %v1243_v28  ;;  %v362_v61 = vmul.f32 %v4143_v6, %v301_v41 }
  0x4c   : > { %5311 = vst [vmem:[#allocation9_spill] sm:$0xff] %v4448_v22  ;;  %v4454_v24 = vsel %vm474_vm6, %v420_v23, %v528_v50  ;;  %v719_v27 = vrot.slane %v4450_v56, 1  ;;  %3630 = vmatmul.mubr.msk.bf16.gmra.mrb[12].mxu0 %vm804_vm2, %v4448_v22  ;;  %3497 = vmatprep.mubr.msk.bf16.mxu1 %vm804_vm2, %v4448_v22  ;;  %v363_v5 = vmul.f32 %v4143_v6, %v302_v51 }
  0x4d   : > { %v4464_v63 = vsel %vm475_vm7, %v421_v26, %v529_v58  ;;  %v720_v4 = vrot.slane %v4454_v24, 1  ;;  %v1248_v14 = vsel %vm1230_vm8, %v1246_v10, %v1247_v35  ;;  %3651 = vmatprep.mubr.msk.bf16.mxu0 %vm804_vm2, %v4411_v48  ;;  %v422_v23 = vadd.f32 %v4153_v7, %v361_v33  ;;  %v304_v10 = vld [vmem:[%s4148_s12 + $0x110] sm:$0xff] }
  0x4e   : > { %v722_v20 = vrot.slane %v4464_v63, 1  ;;  %v423_v26 = vadd.f32 %v4153_v7, %v362_v61  ;;  %v1250_v28 = vsel %vm1230_vm8, %v1247_v35, %v1249_v43  ;;  %v424_v31 = vadd.f32 %v4153_v7, %v363_v5 }
  0x4f   : > { %v721_v30 = vsel %vm673_vm1, %v719_v27, %v720_v4  ;;  %v4483_v21 = vpack.c.bf16 %v1250_v28, %v1248_v14  ;;  %v364_v41 = vmul.f32 %v4143_v6, %v303_v62  ;;  %vm476_vm9 = vcmp.ge.f32.partialorder %v422_v23, 0.0 }
  0x50   : > { %v723_v44 = vsel %vm673_vm1, %v720_v4, %v722_v20  ;;  %vm477_vm10 = vcmp.ge.f32.partialorder %v423_v26, 0.0  ;;  %v530_v50 = vmul.f32 0.01, %v422_v23  ;;  %vm478_vm11 = vcmp.ge.f32.partialorder %v424_v31, 0.0 }
  0x51   : > { %v4489_v51 = vpack.c.bf16 %v723_v44, %v721_v30  ;;  %v531_v58 = vmul.f32 0.01, %v423_v26  ;;  %v532_v35 = vmul.f32 0.01, %v424_v31  ;;  %v365_v27 = vmul.f32 %v4143_v6, %v304_v10  ;;  %v307_v44 = vld [vmem:[%s4148_s12 + $0x128] sm:$0xff] }
  0x52   : > { %v4491_v43 = vsel %vm476_vm9, %v422_v23, %v530_v50  ;;  %v366_v33 = vmul.f32 %v4143_v6, %v305_v38  ;;  %v425_v61 = vadd.f32 %v4153_v7, %v364_v41  ;;  %v1252_v14 = vrot.slane %v4300_v16, 2  ;;  %v306_v41 = vld [vmem:[%s4148_s12 + $0x120] sm:$0xff] }
  0x53   : > { %5312 = vst [vmem:[#allocation10_spill] sm:$0xff] %v4489_v51  ;;  %3498 = vmatmul.mubr.msk.bf16.gmra.mrb[16].mxu1 %vm804_vm2, %v4489_v51  ;;  %v4498_v62 = vsel %vm477_vm10, %v423_v26, %v531_v58  ;;  %v4500_v4 = vsel %vm478_vm11, %v424_v31, %v532_v35  ;;  %v724_v5 = vrot.slane %v4491_v43, 1  ;;  %v426_v28 = vadd.f32 %v4153_v7, %v365_v27  ;;  %v4511_v26 = vld [vmem:[%s5272_s1 + $0x1c] sm:$0xf]  ;;  %v308_v35 = vld [vmem:[%s4148_s12 + $0x130] sm:$0x3] }
  0x54   : > { %v725_v20 = vrot.slane %v4498_v62, 1  ;;  %v727_v23 = vrot.slane %v4500_v4, 1  ;;  %v427_v30 = vadd.f32 %v4153_v7, %v366_v33  ;;  %3652 = vmatmul.mubr.msk.bf16.vlgmr.msra.gmra.mrb[0].mxu0 %vm804_vm2, %v4452_v59  ;;  %vm479_vm12 = vcmp.ge.f32.partialorder %v425_v61, 0.0 }
  0x55   : > { %v533_v31 = vmul.f32 0.01, %v425_v61  ;;  %v1253_v10 = vsel %vm1230_vm8, %v1251_v0, %v1252_v14  ;;  %v1254_v38 = vrot.slane %v4309_v8, 2  ;;  %3684 = vmatpush3.bf16.msra.mxu0 %v4186_v29  ;;  %3655 = vmatprep.mubr.msk.bf16.mxu0 %vm804_vm2, %v4483_v21  ;;  %vm480_vm13 = vcmp.ge.f32.partialorder %v426_v28, 0.0 }
  0x56   : > { %v726_v50 = vsel %vm673_vm1, %v724_v5, %v725_v20  ;;  %v728_v58 = vsel %vm673_vm1, %v725_v20, %v727_v23  ;;  %vm481_vm14 = vcmp.ge.f32.partialorder %v427_v30, 0.0  ;;  %v534_v33 = vmul.f32 0.01, %v426_v28  ;;  %4051 = vmatprep.subr.msk.bf16.mxu0 %vm853_vm0, %v4511_v26 }
  0x57   : > { %v4527_v27 = vpack.c.bf16 %v728_v58, %v726_v50  ;;  %v535_v0 = vmul.f32 0.01, %v427_v30  ;;  %v4530_v8 = vsel %vm479_vm12, %v425_v61, %v533_v31  ;;  %v1255_v5 = vsel %vm1230_vm8, %v1252_v14, %v1254_v38 }
  0x58   : > { %v729_v29 = vrot.slane %v4530_v8, 1  ;;  %v367_v20 = vmul.f32 %v4143_v6, %v306_v41  ;;  %v368_v23 = vmul.f32 %v4143_v6, %v307_v44  ;;  %v4540_v50 = vsel %vm480_vm13, %v426_v28, %v534_v33  ;;  %v309_v33 = vld [vmem:[%s4148_s12 + $0x138] sm:$0xff] }
  0x59   : > { %5313 = vst [vmem:[#allocation11_spill] sm:$0xff] %v4527_v27  ;;  %3501 = vmatprep.mubr.msk.bf16.mxu1 %vm804_vm2, %v4527_v27  ;;  %v4542_v58 = vsel %vm481_vm14, %v427_v30, %v535_v0  ;;  %v4544_v61 = vpack.c.bf16 %v1255_v5, %v1253_v10  ;;  %v369_v31 = vmul.f32 %v4143_v6, %v308_v35  ;;  %v730_v14 = vrot.slane %v4540_v50, 1  ;;  %v310_v5 = vld [vmem:[%s4148_s12 + $0x140] sm:$0xff]  ;;  %v311_v27 = vld [vmem:[%s4148_s12 + $0x148] sm:$0x3] }
  0x5a   : > { %v732_v38 = vrot.slane %v4542_v58, 1  ;;  %v428_v41 = vadd.f32 %v4153_v7, %v367_v20  ;;  %v429_v44 = vadd.f32 %v4153_v7, %v368_v23  ;;  %v1256_v28 = vrot.slane %v4319_v42, 2 }
  0x5b   : > { %v430_v3 = vadd.f32 %v4153_v7, %v369_v31  ;;  %v1257_v30 = vrot.slane %v4327_v55, 2  ;;  %v1259_v10 = vrot.slane %v4329_v57, 2  ;;  %v731_v0 = vsel %vm673_vm1, %v729_v29, %v730_v14 }
  0x5c   : > { %v733_v35 = vsel %vm673_vm1, %v730_v14, %v732_v38  ;;  %vm482_vm15 = vcmp.ge.f32.partialorder %v428_v41, 0.0  ;;  %vm483_vm3 = vcmp.ge.f32.partialorder %v429_v44, 0.0  ;;  %3656 = vmatmul.mubr.msk.bf16.gmra.mrb[4].mxu0 %vm804_vm2, %v4544_v61  ;;  %v536_v23 = vmul.f32 0.01, %v428_v41 }
  0x5d   : > { %v4560_v20 = vpack.c.bf16 %v733_v35, %v731_v0  ;;  %vm484_vm4 = vcmp.ge.f32.partialorder %v430_v3, 0.0  ;;  %v537_v31 = vmul.f32 0.01, %v429_v44  ;;  %v538_v51 = vmul.f32 0.01, %v430_v3 }
  0x5e   : > { %v1258_v57 = vsel %vm1230_vm8, %v1256_v28, %v1257_v30  ;;  %v1260_v22 = vsel %vm1230_vm8, %v1257_v30, %v1259_v10  ;;  %v370_v29 = vmul.f32 %v4143_v6, %v309_v33  ;;  %v4569_v14 = vsel %vm482_vm15, %v428_v41, %v536_v23  ;;  %v312_v23 = vld [vmem:[%s4148_s12 + $0x150] sm:$0xff] }
  0x5f   : > { %5314 = vst [vmem:[#allocation12_spill] sm:$0xff] %v4560_v20  ;;  %3502 = vmatmul.mubr.msk.bf16.gmra.mrb[20].mxu1 %vm804_vm2, %v4560_v20  ;;  %v4571_v38 = vsel %vm483_vm3, %v429_v44, %v537_v31  ;;  %v4573_v0 = vpack.c.bf16 %v1260_v22, %v1258_v57  ;;  %v371_v35 = vmul.f32 %v4143_v6, %v310_v5  ;;  %v734_v28 = vrot.slane %v4569_v14, 1 }
  0x60   : > { %v4576_v47 = vsel %vm484_vm4, %v430_v3, %v538_v51  ;;  %v735_v30 = vrot.slane %v4571_v38, 1  ;;  %v372_v10 = vmul.f32 %v4143_v6, %v311_v27  ;;  %v431_v41 = vadd.f32 %v4153_v7, %v370_v29  ;;  %v314_v29 = vld [vmem:[%s4148_s12 + $0x160] sm:$0x3] }
  0x61   : > { %5315 = vst [vmem:[#allocation13_spill] sm:$0xff] %v4573_v0  ;;  %v737_v33 = vrot.slane %v4576_v47, 1  ;;  %3659 = vmatprep.mubr.msk.bf16.mxu0 %vm804_vm2, %v4573_v0  ;;  %v432_v22 = vadd.f32 %v4153_v7, %v371_v35  ;;  %v1261_v3 = vrot.slane %v4357_v32, 2  ;;  %v1262_v5 = vrot.slane %v4359_v34, 2 }
  0x62   : > { %v736_v51 = vsel %vm673_vm1, %v734_v28, %v735_v30  ;;  %v433_v44 = vadd.f32 %v4153_v7, %v372_v10  ;;  %v1264_v27 = vrot.slane %v4363_v37, 2  ;;  %vm485_vm5 = vcmp.ge.f32.partialorder %v431_v41, 0.0 }
  0x63   : > { %v738_v31 = vsel %vm673_vm1, %v735_v30, %v737_v33  ;;  %vm486_vm6 = vcmp.ge.f32.partialorder %v432_v22, 0.0  ;;  %v539_v57 = vmul.f32 0.01, %v431_v41  ;;  %v540_v35 = vmul.f32 0.01, %v432_v22 }
  0x64   : > { %v4594_v20 = vpack.c.bf16 %v738_v31, %v736_v51  ;;  %vm487_vm7 = vcmp.ge.f32.partialorder %v433_v44, 0.0  ;;  %v541_v9 = vmul.f32 0.01, %v433_v44  ;;  %v1263_v10 = vsel %vm1230_vm8, %v1261_v3, %v1262_v5 }
  0x65   : > { %v4597_v28 = vsel %vm485_vm5, %v431_v41, %v539_v57  ;;  %v1265_v54 = vsel %vm1230_vm8, %v1262_v5, %v1264_v27  ;;  %v373_v37 = vmul.f32 %v4143_v6, %v312_v23  ;;  %v4604_v30 = vsel %vm486_vm6, %v432_v22, %v540_v35  ;;  %v315_v35 = vld [vmem:[%s4148_s12 + $0x168] sm:$0xff] }
  0x66   : > { %5316 = vst [vmem:[#allocation14_spill] sm:$0xff] %v4594_v20  ;;  %3505 = vmatprep.mubr.msk.bf16.mxu1 %vm804_vm2, %v4594_v20  ;;  %v4606_v33 = vsel %vm487_vm7, %v433_v44, %v541_v9  ;;  %v739_v51 = vrot.slane %v4597_v28, 1  ;;  %v4609_v31 = vpack.c.bf16 %v1265_v54, %v1263_v10  ;;  %v740_v41 = vrot.slane %v4604_v30, 1  ;;  %v316_v10 = vld [vmem:[%s4148_s12 + $0x170] sm:$0xff] }
  0x67   : > { %v742_v3 = vrot.slane %v4606_v33, 1  ;;  %v374_v5 = vmul.f32 %v4143_v6, %v313_v17  ;;  %v375_v27 = vmul.f32 %v4143_v6, %v314_v29  ;;  %v434_v9 = vadd.f32 %v4153_v7, %v373_v37 }
  0x68   : > { %5317 = vst [vmem:[#allocation15_spill] sm:$0xff] %v4609_v31  ;;  %3660 = vmatmul.mubr.msk.bf16.gmra.mrb[8].mxu0 %vm804_vm2, %v4609_v31  ;;  %v1266_v22 = vrot.slane %v4373_v2, 2  ;;  %v1267_v44 = vrot.slane %v4379_v11, 2  ;;  %v1269_v54 = vrot.slane %v4381_v25, 2  ;;  %v741_v23 = vsel %vm673_vm1, %v739_v51, %v740_v41 }
  0x69   : > { %v743_v57 = vsel %vm673_vm1, %v740_v41, %v742_v3  ;;  %v435_v17 = vadd.f32 %v4153_v7, %v374_v5  ;;  %v436_v29 = vadd.f32 %v4153_v7, %v375_v27  ;;  %vm488_vm9 = vcmp.ge.f32.partialorder %v434_v9, 0.0 }
  0x6a   : > { %v4627_v20 = vpack.c.bf16 %v743_v57, %v741_v23  ;;  %v542_v37 = vmul.f32 0.01, %v434_v9  ;;  %v1268_v12 = vsel %vm1230_vm8, %v1266_v22, %v1267_v44  ;;  %v1270_v41 = vsel %vm1230_vm8, %v1267_v44, %v1269_v54 }
  0x6b   : > { %vm489_vm10 = vcmp.ge.f32.partialorder %v435_v17, 0.0  ;;  %vm490_vm11 = vcmp.ge.f32.partialorder %v436_v29, 0.0  ;;  %v543_v25 = vmul.f32 0.01, %v435_v17  ;;  %v544_v31 = vmul.f32 0.01, %v436_v29 }
  0x6c   : > { %5318 = vst [vmem:[#allocation16_spill] sm:$0xff] %v4627_v20  ;;  %3506 = vmatmul.mubr.msk.bf16.gmra.mrb[24].mxu1 %vm804_vm2, %v4627_v20  ;;  %v4633_v51 = vsel %vm488_vm9, %v434_v9, %v542_v37  ;;  %v376_v3 = vmul.f32 %v4143_v6, %v315_v35  ;;  %v377_v5 = vmul.f32 %v4143_v6, %v316_v10 }
  0x6d   : > { %v4638_v27 = vsel %vm489_vm10, %v435_v17, %v543_v25  ;;  %v4640_v23 = vsel %vm490_vm11, %v436_v29, %v544_v31  ;;  %v744_v22 = vrot.slane %v4633_v51, 1  ;;  %v4643_v57 = vpack.c.bf16 %v1270_v41, %v1268_v12 }
  0x6e   : > { %v745_v0 = vrot.slane %v4638_v27, 1  ;;  %v747_v20 = vrot.slane %v4640_v23, 1  ;;  %v378_v9 = vmul.f32 %v4143_v6, %v317_v45  ;;  %v437_v44 = vadd.f32 %v4153_v7, %v376_v3 }
  0x6f   : > { %3663 = vmatprep.mubr.msk.bf16.mxu0 %vm804_vm2, %v4643_v57  ;;  %v438_v54 = vadd.f32 %v4153_v7, %v377_v5  ;;  %v1271_v31 = vrot.slane %v4419_v53, 2  ;;  %v1272_v17 = vrot.slane %v4421_v60, 2  ;;  %v1274_v12 = vrot.slane %v4425_v1, 2 }
  0x70   : > { %v746_v29 = vsel %vm673_vm1, %v744_v22, %v745_v0  ;;  %v748_v35 = vsel %vm673_vm1, %v745_v0, %v747_v20  ;;  %v439_v10 = vadd.f32 %v4153_v7, %v378_v9  ;;  %vm491_vm12 = vcmp.ge.f32.partialorder %v437_v44, 0.0 }
  0x71   : > { %v4658_v6 = vpack.c.bf16 %v748_v35, %v746_v29  ;;  %vm492_vm13 = vcmp.ge.f32.partialorder %v438_v54, 0.0  ;;  %v545_v45 = vmul.f32 0.01, %v437_v44  ;;  %v546_v37 = vmul.f32 0.01, %v438_v54 }
  0x72   : > { %vm493_vm14 = vcmp.ge.f32.partialorder %v439_v10, 0.0  ;;  %v547_v25 = vmul.f32 0.01, %v439_v10  ;;  %v1273_v41 = vsel %vm1230_vm8, %v1271_v31, %v1272_v17  ;;  %v1275_v3 = vsel %vm1230_vm8, %v1272_v17, %v1274_v12 }
  0x73   : > { %5319 = vst [vmem:[#allocation17_spill] sm:$0xff] %v4658_v6  ;;  %3509 = vmatprep.mubr.msk.bf16.mxu1 %vm804_vm2, %v4658_v6  ;;  %v4664_v1 = vsel %vm491_vm12, %v437_v44, %v545_v45  ;;  %v4666_v20 = vsel %vm492_vm13, %v438_v54, %v546_v37  ;;  %v4668_v7 = vpack.c.bf16 %v1275_v3, %v1273_v41  ;;  %v1276_v9 = vrot.slane %v4450_v56, 2 }
  0x74   : > { %v4670_v0 = vsel %vm493_vm14, %v439_v10, %v547_v25  ;;  %v749_v5 = vrot.slane %v4664_v1, 1  ;;  %v750_v22 = vrot.slane %v4666_v20, 1  ;;  %v1277_v44 = vrot.slane %v4454_v24, 2 }
  0x75   : > { %5320 = vst [vmem:[#allocation18_spill] sm:$0xff] %v4668_v7  ;;  %v752_v31 = vrot.slane %v4670_v0, 1  ;;  %3664 = vmatmul.mubr.msk.bf16.gmra.mrb[12].mxu0 %vm804_vm2, %v4668_v7  ;;  %v1279_v54 = vrot.slane %v4464_v63, 2  ;;  %v1281_v17 = vrot.slane %v4491_v43, 2  ;;  %v608_v29 = vpack.c.bf16 %v4193_v39, %v4191_v36 }
  0x76   : > { %v751_v12 = vsel %vm673_vm1, %v749_v5, %v750_v22  ;;  %v1282_v35 = vrot.slane %v4498_v62, 2  ;;  %v1284_v10 = vrot.slane %v4500_v4, 2  ;;  %v1278_v37 = vsel %vm1230_vm8, %v1276_v9, %v1277_v44 }
  0x77   : > { %v753_v45 = vsel %vm673_vm1, %v750_v22, %v752_v31  ;;  %v1280_v25 = vsel %vm1230_vm8, %v1277_v44, %v1279_v54  ;;  %v1286_v41 = vrot.slane %v4530_v8, 2  ;;  %v1287_v4 = vrot.slane %v4540_v50, 2 }
  0x78   : > { %v4690_v63 = vpack.c.bf16 %v753_v45, %v751_v12  ;;  %v4692_v3 = vpack.c.bf16 %v1280_v25, %v1278_v37  ;;  %v1283_v5 = vsel %vm1230_vm8, %v1281_v17, %v1282_v35  ;;  %v1285_v6 = vsel %vm1230_vm8, %v1282_v35, %v1284_v10  ;;  %v318_v37 = vld [vmem:[%s4148_s12 + $0x180] sm:$0xff] }
  0x79   : > { %v4696_v7 = vpack.c.bf16 %v1285_v6, %v1283_v5  ;;  %v1289_v22 = vrot.slane %v4542_v58, 2  ;;  %v1291_v9 = vrot.slane %v4569_v14, 2  ;;  %v1292_v31 = vrot.slane %v4571_v38, 2  ;;  %v319_v5 = vld [vmem:[%s4148_s12 + $0x188] sm:$0xff] }
  0x7a   : > { %3510 = vmatmul.mubr.msk.bf16.gmra.mrb[28].mxu1 %vm804_vm2, %v4690_v63  ;;  %3667 = vmatprep.mubr.msk.bf16.mxu0 %vm804_vm2, %v4692_v3  ;;  %v1294_v44 = vrot.slane %v4576_v47, 2  ;;  %v1288_v6 = vsel %vm1230_vm8, %v1286_v41, %v1287_v4  ;;  %v1296_v54 = vrot.slane %v4597_v28, 2  ;;  %v1297_v17 = vrot.slane %v4604_v30, 2 }
  0x7b   : > { %3515 = vmatprep.mubr.msk.bf16.mxu1 %vm804_vm2, %v608_v29  ;;  %v1290_v58 = vsel %vm1230_vm8, %v1287_v4, %v1289_v22  ;;  %v1299_v35 = vrot.slane %v4606_v33, 2  ;;  %v1293_v47 = vsel %vm1230_vm8, %v1291_v9, %v1292_v31  ;;  %v1301_v45 = vrot.slane %v4633_v51, 2 }
  0x7c   : > { %v4712_v12 = vpack.c.bf16 %v1290_v58, %v1288_v6  ;;  %v1295_v29 = vsel %vm1230_vm8, %v1292_v31, %v1294_v44  ;;  %v1298_v10 = vsel %vm1230_vm8, %v1296_v54, %v1297_v17  ;;  %v1302_v33 = vrot.slane %v4638_v27, 2  ;;  %v320_v44 = vld [vmem:[%s4148_s12 + $0x190] sm:$0x3]  ;;  %v4773_v54 = vld [vmem:[%s5274_s3] ss:$0 sm:$0xff] }
  0x7d   : > { %3668 = vmatmul.mubr.msk.bf16.gmra.mrb[16].mxu0 %vm804_vm2, %v4696_v7  ;;  %v1300_v25 = vsel %vm1230_vm8, %v1297_v17, %v1299_v35  ;;  %v1304_v41 = vrot.slane %v4640_v23, 2  ;;  %v1410_v4 = vsel %vm853_vm0, %v4239_v18, 0  ;;  %v4732_v22 = vpack.c.bf16 %v4243_v19, %v4232_v15  ;;  %v4754_v15 = vld [vmem:[%s5273_s2] ss:$0 sm:$0xff] }
  0x7e   : > { %3671 = vmatprep.mubr.msk.bf16.mxu0 %vm804_vm2, %v4712_v12  ;;  %v4736_v9 = vpack.c.bf16 %v4270_v49, %v4268_v46  ;;  %v4740_v31 = vpack.c.bf16 %v4300_v16, %v4297_v13  ;;  %v4743_v6 = vpack.c.bf16 %v1295_v29, %v1293_v47  ;;  %v4745_v23 = vpack.c.bf16 %v1300_v25, %v1298_v10 }
  0x7f   : > { %v4749_v18 = vpack.c.bf16 %v4379_v11, %v4373_v2  ;;  %v379_v19 = vmul.f32 %v4754_v15, %v318_v37  ;;  %v1303_v46 = vsel %vm1230_vm8, %v1301_v45, %v1302_v33  ;;  %v1306_v49 = vrot.slane %v4664_v1, 2  ;;  %v4764_v2 = vld [vmem:[%s5272_s1 + $0xc] sm:$0xf] }
  0x80   : > { %v1307_v13 = vrot.slane %v4666_v20, 2  ;;  %v380_v16 = vmul.f32 %v4754_v15, %v319_v5  ;;  %v1305_v11 = vsel %vm1230_vm8, %v1302_v33, %v1304_v41  ;;  %v381_v58 = vmul.f32 %v4754_v15, %v320_v44 }
  0x81   : > { %v440_v17 = vadd.f32 %v4773_v54, %v379_v19  ;;  %v4778_v35 = vpack.c.bf16 %v4421_v60, %v4419_v53  ;;  %v1309_v47 = vrot.slane %v4670_v0, 2  ;;  %v4786_v10 = vpack.c.bf16 %v4454_v24, %v4450_v56 }
  0x82   : > { %3516 = vmatmul.mubr.msk.bf16.vlgmr.msra.gmra.mrb[0].mxu1 %vm804_vm2, %v4211_v52  ;;  %v441_v29 = vadd.f32 %v4773_v54, %v380_v16  ;;  %v4790_v45 = vpack.c.bf16 %v4498_v62, %v4491_v43  ;;  %v442_v37 = vadd.f32 %v4773_v54, %v381_v58  ;;  %v4795_v60 = vpack.c.bf16 %v4540_v50, %v4530_v8 }
  0x83   : > { %3548 = vmatpush3.bf16.msra.mxu1 %v1410_v4  ;;  %3519 = vmatprep.mubr.msk.bf16.mxu1 %vm804_vm2, %v4732_v22  ;;  %vm494_vm15 = vcmp.ge.f32.partialorder %v440_v17, 0.0  ;;  %v548_v53 = vmul.f32 0.01, %v440_v17  ;;  %v4803_v24 = vpack.c.bf16 %v4571_v38, %v4569_v14  ;;  %v4807_v43 = vpack.c.bf16 %v4604_v30, %v4597_v28 }
  0x84   : > { %4046 = vmatprep.subr.msk.bf16.mxu1 %vm853_vm0, %v4764_v2  ;;  %vm495_vm3 = vcmp.ge.f32.partialorder %v441_v29, 0.0  ;;  %v549_v56 = vmul.f32 0.01, %v441_v29  ;;  %v1308_v62 = vsel %vm1230_vm8, %v1306_v49, %v1307_v13  ;;  %vm496_vm4 = vcmp.ge.f32.partialorder %v442_v37, 0.0 }
  0x85   : > { %3672 = vmatmul.mubr.msk.bf16.gmra.mrb[20].mxu0 %vm804_vm2, %v4743_v6  ;;  %v550_v8 = vmul.f32 0.01, %v442_v37  ;;  %v4814_v50 = vpack.c.bf16 %v4638_v27, %v4633_v51  ;;  %v1310_v0 = vsel %vm1230_vm8, %v1307_v13, %v1309_v47  ;;  %v4817_v25 = vsel %vm494_vm15, %v440_v17, %v548_v53  ;;  %v4874_v13 = vld [vmem:[%s5272_s1 + $0x20] sm:$0xf]  ;;  %v4064_v53 = vld [vmem:[%s5272_s1 + $0x10] sm:$0xf] }
  0x86   : > { %3675 = vmatprep.mubr.msk.bf16.mxu0 %vm804_vm2, %v4745_v23  ;;  %v4819_v14 = vsel %vm495_vm3, %v441_v29, %v549_v56  ;;  %v4823_v38 = vpack.c.bf16 %v4666_v20, %v4664_v1  ;;  %v4825_v30 = vpack.c.bf16 %v1305_v11, %v1303_v46  ;;  %v4829_v33 = vpack.c.bf16 %v1310_v0, %v1308_v62 }
  0x87   : > { %v604_v28 = vsel %vm496_vm4, %v442_v37, %v550_v8  ;;  %v2019_v51 = vrot.slane %v4817_v25, 2  ;;  %v2020_v27 = vrot.slane %v4819_v14, 2  ;;  %v4839_v1 = vpack.c.bf16 %v4327_v55, %v4319_v42 }
  0x88   : > { %v2022_v41 = vrot.slane %v604_v28, 2  ;;  %v4847_v4 = vpack.c.bf16 %v4359_v34, %v4357_v32  ;;  %v1810_v42 = vrot.slane %v4817_v25, 1  ;;  %v1811_v55 = vrot.slane %v4819_v14, 1 }
  0x89   : > { %v2021_v20 = vsel %vm1230_vm8, %v2019_v51, %v2020_v27  ;;  %v1813_v19 = vrot.slane %v604_v28, 1  ;;  %v2447_v49 = vsel %vm853_vm0, %v4511_v26, 0  ;;  %v1231_v26 = vrot.slane %v4191_v36, 2 }
  0x8a   : > { %3520 = vmatmul.mubr.msk.bf16.gmra.mrb[4].mxu1 %vm804_vm2, %v4736_v9  ;;  %v2023_v5 = vsel %vm1230_vm8, %v2020_v27, %v2022_v41  ;;  %v1812_v46 = vsel %vm673_vm1, %v1810_v42, %v1811_v55  ;;  %v1232_v16 = vrot.slane %v4193_v39, 2  ;;  %v1234_v11 = vrot.slane %v4195_v40, 2  ;;  %v321_v39 = vld [vmem:[%s4148_s12 + $0x198] sm:$0xff]  ;;  %v322_v40 = vld [vmem:[%s4148_s12 + $0x1a0] sm:$0xff] }
  0x8b   : > { %3523 = vmatprep.mubr.msk.bf16.mxu1 %vm804_vm2, %v4740_v31  ;;  %v4849_v44 = vpack.c.bf16 %v2023_v5, %v2021_v20  ;;  %v1814_v32 = vsel %vm673_vm1, %v1811_v55, %v1813_v19  ;;  %v1612_v47 = vsel %vm853_vm0, %v4764_v2, 0  ;;  %v382_v29 = vmul.f32 %v4754_v15, %v321_v39  ;;  %v323_v2 = vld [vmem:[%s4148_s12 + $0x1a8] sm:$0x3]  ;;  %v5330_v39 = vld [vmem:[#allocation9_spill] sm:$0xff]  ;;  %s5122_s12 = scalar_lea.vmem %s5275_s4, %s3325_s9 }
  0x8c   : > { %v4863_v34 = vpack.c.bf16 %v1814_v32, %v1812_v46  ;;  %v1233_v58 = vsel %vm1230_vm8, %v1231_v26, %v1232_v16  ;;  %v1235_v17 = vsel %vm1230_vm8, %v1232_v16, %v1234_v11  ;;  %v383_v37 = vmul.f32 %v4754_v15, %v322_v40  ;;  %v5322_v20 = vld [vmem:[#allocation15_spill] sm:$0xff]  ;;  %v5324_v26 = vld [vmem:[#allocation18_spill] sm:$0xff]  ;;  %v5325_v11 = vld [vmem:[#allocation4_spill] sm:$0xff] }
  0x8d   : > { %3676 = vmatmul.mubr.msk.bf16.gmra.mrb[24].mxu0 %vm804_vm2, %v4825_v30  ;;  %v1343_v36 = vpack.c.bf16 %v1235_v17, %v1233_v58  ;;  %v384_v62 = vmul.f32 %v4754_v15, %v323_v2  ;;  %v4944_v8 = vpack.c.bf16 %v4819_v14, %v4817_v25  ;;  %v5321_v14 = vld [vmem:[#allocation13_spill] sm:$0xff]  ;;  %v5323_v19 = vld [vmem:[#allocation3_spill] sm:$0xff]  ;;  %v2656_v16 = vsel %vm853_vm0, %v4874_v13, 0  ;;  %v5327_v17 = vld [vmem:[#allocation6_spill] sm:$0xff] }
  0x8e   : > { %3679 = vmatprep.mubr.msk.bf16.mxu0 %vm804_vm2, %v4829_v33  ;;  %v444_v56 = vadd.f32 %v4773_v54, %v383_v37  ;;  %v5326_v58 = vld [vmem:[#allocation5_spill] sm:$0xff]  ;;  %v5331_v40 = vld [vmem:[#allocation10_spill] sm:$0xff]  ;;  %v5336_v2 = vld [vmem:[#allocation16_spill] sm:$0xff] }
  0x8f   : > { %v445_v51 = vadd.f32 %v4773_v54, %v384_v62  ;;  %v5334_v37 = vld [vmem:[#allocation14_spill] sm:$0xff] }
  0x90   : > { %v552_v28 = vmul.f32 0.01, %v444_v56  ;;  %vm498_vm6 = vcmp.ge.f32.partialorder %v444_v56, 0.0 }
  0x91   : > { %v553_v41 = vmul.f32 0.01, %v445_v51  ;;  %vm499_vm7 = vcmp.ge.f32.partialorder %v445_v51, 0.0 }
  0x92   : > { %3524 = vmatmul.mubr.msk.bf16.gmra.mrb[8].mxu1 %vm804_vm2, %v4839_v1  ;;  %v606_v27 = vsel %vm498_vm6, %v444_v56, %v552_v28 }
  0x93   : > { %3527 = vmatprep.mubr.msk.bf16.mxu1 %vm804_vm2, %v4847_v4  ;;  %v2643_v42 = vrot.slane %v606_v27, 2  ;;  %v2434_v56 = vrot.slane %v606_v27, 1 }
  0x95   : > { %3680 = vmatmul.mubr.msk.bf16.gmra.mrb[28].mxu0 %vm804_vm2, %v4849_v44 }
  0x96   : > { %3685 = vmatprep.mubr.msk.bf16.mxu0 %vm804_vm2, %v4732_v22 }
  0x9a   : > { %3528 = vmatmul.mubr.msk.bf16.gmra.mrb[12].mxu1 %vm804_vm2, %v4749_v18 }
  0x9b   : > { %3531 = vmatprep.mubr.msk.bf16.mxu1 %vm804_vm2, %v4778_v35 }
  0x9d   : > { %3686 = vmatmul.mubr.msk.bf16.vlgmr.msra.gmra.mrb[0].mxu0 %vm804_vm2, %v4736_v9 }
  0x9e   : > { %3718 = vmatpush3.bf16.msra.mxu0 %v2447_v49  ;;  %3689 = vmatprep.mubr.msk.bf16.mxu0 %vm804_vm2, %v4740_v31 }
  0x9f   : > { %4052 = vmatprep.subr.msk.bf16.mxu0 %vm853_vm0, %v4874_v13  ;;  %v5329_v13 = vld [vmem:[#allocation8_spill] sm:$0xff] }
  0xa2   : > { %3532 = vmatmul.mubr.msk.bf16.gmra.mrb[16].mxu1 %vm804_vm2, %v4786_v10 }
  0xa3   : > { %3535 = vmatprep.mubr.msk.bf16.mxu1 %vm804_vm2, %v4790_v45 }
  0xa5   : > { %3690 = vmatmul.mubr.msk.bf16.gmra.mrb[4].mxu0 %vm804_vm2, %v4839_v1 }
  0xa6   : > { %3693 = vmatprep.mubr.msk.bf16.mxu0 %vm804_vm2, %v4847_v4 }
  0xaa   : > { %3536 = vmatmul.mubr.msk.bf16.gmra.mrb[20].mxu1 %vm804_vm2, %v4795_v60 }
  0xab   : > { %3539 = vmatprep.mubr.msk.bf16.mxu1 %vm804_vm2, %v4803_v24 }
  0xad   : > { %3694 = vmatmul.mubr.msk.bf16.gmra.mrb[8].mxu0 %vm804_vm2, %v4749_v18 }
  0xae   : > { %3697 = vmatprep.mubr.msk.bf16.mxu0 %vm804_vm2, %v4778_v35 }
  0xb2   : > { %3540 = vmatmul.mubr.msk.bf16.gmra.mrb[24].mxu1 %vm804_vm2, %v4807_v43 }
  0xb3   : > { %3543 = vmatprep.mubr.msk.bf16.mxu1 %vm804_vm2, %v4814_v50 }
  0xb5   : > { %3698 = vmatmul.mubr.msk.bf16.gmra.mrb[12].mxu0 %vm804_vm2, %v4786_v10 }
  0xb6   : > { %3701 = vmatprep.mubr.msk.bf16.mxu0 %vm804_vm2, %v4790_v45 }
  0xba   : > { %3544 = vmatmul.mubr.msk.bf16.gmra.mrb[28].mxu1 %vm804_vm2, %v4823_v38 }
  0xbb   : > { %3549 = vmatprep.mubr.msk.bf16.mxu1 %vm804_vm2, %v1343_v36  ;;  %v5328_v36 = vld [vmem:[#allocation7_spill] sm:$0xff] }
  0xbd   : > { %3702 = vmatmul.mubr.msk.bf16.gmra.mrb[16].mxu0 %vm804_vm2, %v4795_v60 }
  0xbe   : > { %3705 = vmatprep.mubr.msk.bf16.mxu0 %vm804_vm2, %v4803_v24 }
  0xc2   : > { %3550 = vmatmul.mubr.msk.bf16.vlgmr.msra.gmra.mrb[0].mxu1 %vm804_vm2, %v4411_v48  ;;  %v443_v48 = vadd.f32 %v4773_v54, %v382_v29  ;;  %v607_v54 = vsel %vm499_vm7, %v445_v51, %v553_v41  ;;  %v5333_v29 = vld [vmem:[#allocation12_spill] sm:$0xff] }
  0xc3   : > { %3582 = vmatpush3.bf16.msra.mxu1 %v1612_v47  ;;  %3553 = vmatprep.mubr.msk.bf16.mxu1 %vm804_vm2, %v4452_v59  ;;  %v2645_v55 = vrot.slane %v607_v54, 2  ;;  %v5332_v47 = vld [vmem:[#allocation11_spill] sm:$0xff]  ;;  %v2436_v62 = vrot.slane %v607_v54, 1 }
  0xc4   : > { %4048 = vmatprep.subr.msk.bf16.mxu1 %vm853_vm0, %v4064_v53  ;;  %v551_v0 = vmul.f32 0.01, %v443_v48  ;;  %vm497_vm5 = vcmp.ge.f32.partialorder %v443_v48, 0.0  ;;  %v5335_v53 = vld [vmem:[#allocation2_spill] sm:$0xff]  ;;  %vm2952_vm0 = vcmask 57344  }
  0xc5   : > { %3706 = vmatmul.mubr.msk.bf16.gmra.mrb[20].mxu0 %vm804_vm2, %v4807_v43  ;;  %v4964_v32 = vsel %vm1230_vm8, %v2643_v42, %v2645_v55 }
  0xc6   : > { %3709 = vmatprep.mubr.msk.bf16.mxu0 %vm804_vm2, %v4814_v50  ;;  %v605_v15 = vsel %vm497_vm5, %v443_v48, %v551_v0  ;;  %v5337_v48 = vld [vmem:[#allocation17_spill] sm:$0xff] }
  0xc7   : > { %v2228_v25 = vpack.c.bf16 %v606_v27, %v605_v15  ;;  %v2642_v5 = vrot.slane %v605_v15, 2 }
  0xc9   : > { %v4961_v46 = vsel %vm1230_vm8, %v2642_v5, %v2643_v42 }
  0xca   : > { %3554 = vmatmul.mubr.msk.bf16.gmra.mrb[4].mxu1 %vm804_vm2, %v4483_v21  ;;  %v2649_v49 = vpack.c.bf16 %v4964_v32, %v4961_v46 }
  0xcb   : > { %3557 = vmatprep.mubr.msk.bf16.mxu1 %vm804_vm2, %v4544_v61 }
  0xcd   : > { %3710 = vmatmul.mubr.msk.bf16.gmra.mrb[24].mxu0 %vm804_vm2, %v4823_v38 }
  0xce   : > { %3713 = vmatprep.mubr.msk.bf16.mxu0 %vm804_vm2, %v4944_v8 }
  0xd2   : > { %3558 = vmatmul.mubr.msk.bf16.gmra.mrb[8].mxu1 %vm804_vm2, %v5321_v14 }
  0xd3   : > { %3561 = vmatprep.mubr.msk.bf16.mxu1 %vm804_vm2, %v5322_v20 }
  0xd5   : > { %3714 = vmatmul.mubr.msk.bf16.gmra.mrb[28].mxu0 %vm804_vm2, %v2228_v25 }
  0xd6   : > { %3719 = vmatprep.mubr.msk.bf16.mxu0 %vm804_vm2, %v5323_v19 }
  0xda   : > { %3562 = vmatmul.mubr.msk.bf16.gmra.mrb[12].mxu1 %vm804_vm2, %v4643_v57 }
  0xdb   : > { %3565 = vmatprep.mubr.msk.bf16.mxu1 %vm804_vm2, %v5324_v26 }
  0xdd   : > { %3720 = vmatmul.mubr.msk.bf16.vlgmr.msra.gmra.mrb[0].mxu0 %vm804_vm2, %v5325_v11 }
  0xde   : > { %3752 = vmatpush3.bf16.msra.mxu0 %v2656_v16  ;;  %3723 = vmatprep.mubr.msk.bf16.mxu0 %vm804_vm2, %v5326_v58 }
  0xe2   : > { %3566 = vmatmul.mubr.msk.bf16.gmra.mrb[16].mxu1 %vm804_vm2, %v4692_v3 }
  0xe3   : > { %3569 = vmatprep.mubr.msk.bf16.mxu1 %vm804_vm2, %v4696_v7 }
  0xe5   : > { %3724 = vmatmul.mubr.msk.bf16.gmra.mrb[4].mxu0 %vm804_vm2, %v5327_v17 }
  0xe6   : > { %3727 = vmatprep.mubr.msk.bf16.mxu0 %vm804_vm2, %v5328_v36 }
  0xea   : > { %3570 = vmatmul.mubr.msk.bf16.gmra.mrb[20].mxu1 %vm804_vm2, %v4712_v12 }
  0xeb   : > { %3573 = vmatprep.mubr.msk.bf16.mxu1 %vm804_vm2, %v4743_v6 }
  0xed   : > { %3728 = vmatmul.mubr.msk.bf16.gmra.mrb[8].mxu0 %vm804_vm2, %v5329_v13 }
  0xee   : > { %3731 = vmatprep.mubr.msk.bf16.mxu0 %vm804_vm2, %v5330_v39 }
  0xf2   : > { %3574 = vmatmul.mubr.msk.bf16.gmra.mrb[24].mxu1 %vm804_vm2, %v4745_v23 }
  0xf3   : > { %3577 = vmatprep.mubr.msk.bf16.mxu1 %vm804_vm2, %v4825_v30 }
  0xf5   : > { %3732 = vmatmul.mubr.msk.bf16.gmra.mrb[12].mxu0 %vm804_vm2, %v5331_v40 }
  0xf6   : > { %3735 = vmatprep.mubr.msk.bf16.mxu0 %vm804_vm2, %v5332_v47 }
  0xfa   : > { %3578 = vmatmul.mubr.msk.bf16.gmra.mrb[28].mxu1 %vm804_vm2, %v4829_v33 }
  0xfb   : > { %3583 = vmatprep.mubr.msk.bf16.mxu1 %vm804_vm2, %v4211_v52  ;;  %v2433_v52 = vrot.slane %v605_v15, 1 }
  0xfd   : > { %3736 = vmatmul.mubr.msk.bf16.gmra.mrb[16].mxu0 %vm804_vm2, %v5333_v29 }
  0xfe   : > { %3739 = vmatprep.mubr.msk.bf16.mxu0 %vm804_vm2, %v5334_v37 }
 0x102   : > { %3584 = vmatmul.mubr.msk.bf16.vlgmr.msra.gmra.mrb[0].mxu1 %vm804_vm2, %v4732_v22  ;;  %v2435_v22 = vsel %vm673_vm1, %v2433_v52, %v2434_v56 }
 0x103   : > { %3786 = vmatpush3.bf16.msra.mxu1 %v5335_v53  ;;  %3587 = vmatprep.mubr.msk.bf16.mxu1 %vm804_vm2, %v4736_v9  ;;  %v2437_v9 = vsel %vm673_vm1, %v2434_v56, %v2436_v62 }
 0x104   : > { %v2440_v0 = vpack.c.bf16 %v2437_v9, %v2435_v22 }
 0x105   : > { %3740 = vmatmul.mubr.msk.bf16.gmra.mrb[20].mxu0 %vm804_vm2, %v5336_v2 }
 0x106   : > { %3743 = vmatprep.mubr.msk.bf16.mxu0 %vm804_vm2, %v5337_v48 }
 0x10a   : > { %3588 = vmatmul.mubr.msk.bf16.gmra.mrb[4].mxu1 %vm804_vm2, %v4740_v31 }
 0x10b   : > { %3591 = vmatprep.mubr.msk.bf16.mxu1 %vm804_vm2, %v4839_v1 }
 0x10d   : > { %3744 = vmatmul.mubr.msk.bf16.gmra.mrb[24].mxu0 %vm804_vm2, %v4690_v63 }
 0x10e   : > { %3747 = vmatprep.mubr.msk.bf16.mxu0 %vm804_vm2, %v4863_v34 }
 0x112   : > { %3592 = vmatmul.mubr.msk.bf16.gmra.mrb[8].mxu1 %vm804_vm2, %v4847_v4 }
 0x113   : > { %3595 = vmatprep.mubr.msk.bf16.mxu1 %vm804_vm2, %v4749_v18 }
 0x115   : > { %3748 = vmatmul.mubr.msk.bf16.gmra.mrb[28].mxu0 %vm804_vm2, %v2440_v0 }
 0x116   : > { %3753 = vmatprep.mubr.msk.bf16.mxu0 %vm804_vm2, %v4452_v59 }
 0x11a   : > { %3596 = vmatmul.mubr.msk.bf16.gmra.mrb[12].mxu1 %vm804_vm2, %v4778_v35 }
 0x11b   : > { %3599 = vmatprep.mubr.msk.bf16.mxu1 %vm804_vm2, %v4786_v10 }
 0x11d   : > { %3754 = vmatmul.mubr.msk.bf16.vlgmr.msra.gmra.mrb[0].mxu0 %vm804_vm2, %v4483_v21 }
 0x11e   : > { %3757 = vmatprep.mubr.msk.bf16.mxu0 %vm804_vm2, %v4544_v61 }
 0x122   : > { %3600 = vmatmul.mubr.msk.bf16.gmra.mrb[16].mxu1 %vm804_vm2, %v4790_v45 }
 0x123   : > { %3603 = vmatprep.mubr.msk.bf16.mxu1 %vm804_vm2, %v4795_v60 }
 0x125   : > { %3758 = vmatmul.mubr.msk.bf16.gmra.mrb[4].mxu0 %vm804_vm2, %v5321_v14 }
 0x126   : > { %3761 = vmatprep.mubr.msk.bf16.mxu0 %vm804_vm2, %v5322_v20 }
 0x12a   : > { %3604 = vmatmul.mubr.msk.bf16.gmra.mrb[20].mxu1 %vm804_vm2, %v4803_v24 }
 0x12b   : > { %3607 = vmatprep.mubr.msk.bf16.mxu1 %vm804_vm2, %v4807_v43 }
 0x12d   : > { %3762 = vmatmul.mubr.msk.bf16.gmra.mrb[8].mxu0 %vm804_vm2, %v4643_v57 }
 0x12e   : > { %3765 = vmatprep.mubr.msk.bf16.mxu0 %vm804_vm2, %v5324_v26 }
 0x132   : > { %3608 = vmatmul.mubr.msk.bf16.gmra.mrb[24].mxu1 %vm804_vm2, %v4814_v50 }
 0x133   : > { %3611 = vmatprep.mubr.msk.bf16.mxu1 %vm804_vm2, %v4823_v38 }
 0x135   : > { %3766 = vmatmul.mubr.msk.bf16.gmra.mrb[12].mxu0 %vm804_vm2, %v4692_v3 }
 0x136   : > { %3769 = vmatprep.mubr.msk.bf16.mxu0 %vm804_vm2, %v4696_v7 }
 0x13a   : > { %3612 = vmatmul.mubr.msk.bf16.gmra.mrb[28].mxu1 %vm804_vm2, %v4944_v8 }
 0x13b   : > { %3633 = vmatprep.mubr.msk.bf16.mxu1 %vm804_vm2, %v5331_v40 }
 0x13d   : > { %3770 = vmatmul.mubr.msk.bf16.gmra.mrb[16].mxu0 %vm804_vm2, %v4712_v12 }
 0x13e   : > { %3773 = vmatprep.mubr.msk.bf16.mxu0 %vm804_vm2, %v4743_v6 }
 0x142   : > { %3634 = vmatmul.mubr.msk.bf16.vlgmr.msra.gmra.mrb[16].mxu1 %vm804_vm2, %v5332_v47 }
 0x143   : > { %3637 = vmatprep.mubr.msk.bf16.mxu1 %vm804_vm2, %v5333_v29 }
 0x145   : > { %3774 = vmatmul.mubr.msk.bf16.gmra.mrb[20].mxu0 %vm804_vm2, %v4745_v23 }
 0x146   : > { %3777 = vmatprep.mubr.msk.bf16.mxu0 %vm804_vm2, %v4825_v30 }
 0x14a   : > { %3638 = vmatmul.mubr.msk.bf16.gmra.mrb[20].mxu1 %vm804_vm2, %v5334_v37 }
 0x14b   : > { %3641 = vmatprep.mubr.msk.bf16.mxu1 %vm804_vm2, %v5336_v2 }
 0x14d   : > { %3778 = vmatmul.mubr.msk.bf16.gmra.mrb[24].mxu0 %vm804_vm2, %v4829_v33 }
 0x14e   : > { %3781 = vmatprep.mubr.msk.bf16.mxu0 %vm804_vm2, %v4849_v44 }
 0x152   : > { %3642 = vmatmul.mubr.msk.bf16.gmra.mrb[24].mxu1 %vm804_vm2, %v5337_v48 }
 0x153   : > { %3645 = vmatprep.mubr.msk.bf16.mxu1 %vm804_vm2, %v4690_v63 }
 0x155   : > { %3782 = vmatmul.mubr.msk.bf16.gmra.mrb[28].mxu0 %vm804_vm2, %v2649_v49 }
 0x15a   : > { %3646 = vmatmul.mubr.msk.bf16.gmra.mrb[28].mxu1 %vm804_vm2, %v4863_v34 }
 0x1d5   : > { %v3585_v59 = vpop.f32.mrb[0].mxu1 }
 0x1d6   : > { %v1648_v21 = vpop.f32.mrb[1].mxu1 }
 0x1d7   : > { %v3586_v61 = vpop.f32.mrb[2].mxu1 }
 0x1d8   : > { %v1651_v57 = vpop.f32.mrb[3].mxu1 }
 0x1dd   : > { %v3589_v7 = vpop.f32.mrb[4].mxu1 }
 0x1de   : > { %v1664_v3 = vpop.f32.mrb[5].mxu1 }
 0x1df   : > { %v3590_v12 = vpop.f32.mrb[6].mxu1 }
 0x1e0   : > { %v1667_v31 = vpop.f32.mrb[7].mxu1 }
 0x1e5   : > { %v5102_v6 = vpop.f32.mrb[8].mxu1 }
 0x1e6   : > { %v5104_v63 = vpop.f32.mrb[9].mxu1 }
 0x1e7   : > { %v5106_v23 = vpop.f32.mrb[10].mxu1 }
 0x1e8   : > { %v5108_v18 = vpop.f32.mrb[11].mxu1 }
 0x1ed   : > { %v5110_v35 = vpop.f32.mrb[12].mxu1 }
 0x1ee   : > { %v5113_v10 = vpop.f32.mrb[13].mxu1 }
 0x1ef   : > { %v5115_v45 = vpop.f32.mrb[14].mxu1 }
 0x1f0   : > { %v5117_v60 = vpop.f32.mrb[15].mxu1  ;;  %v3755_v24 = vpop.f32.mrb[0].mxu0 }
 0x1f1   : > { %v3787_v43 = vadd.f32 %v3755_v24, %v3585_v59  ;;  %v2692_v50 = vpop.f32.mrb[1].mxu0 }
 0x1f2   : > { %v3788_v38 = vadd.f32 %v2692_v50, %v1648_v21  ;;  %v3756_v30 = vpop.f32.mrb[2].mxu0 }
 0x1f3   : > { %2853 = vst.msk [vmem:[%s5122_s12 + $0x10] sm:$0xff] %vm804_vm2, %v3787_v43  ;;  %v3789_v33 = vadd.f32 %v3756_v30, %v3586_v61  ;;  %v2695_v1 = vpop.f32.mrb[3].mxu0  ;;  %v2956_v34 = vmul.f32 %v3787_v43, %v3787_v43  ;;  %v2886_v41 = vsel %vm804_vm2, %v3787_v43, 0.0 }
 0x1f4   : > { %2851 = vst.msk [vmem:[%s5122_s12] sm:$0xff] %vm804_vm2, %v3788_v38  ;;  %v2954_v4 = vmul.f32 %v3788_v38, %v3788_v38  ;;  %v3790_v44 = vadd.f32 %v2695_v1, %v1651_v57  ;;  %v2883_v8 = vsel %vm804_vm2, %v3788_v38, 0.0 }
 0x1f5   : > { %2854 = vst.msk [vmem:[%s5122_s12 + $0x18] sm:$0xff] %vm804_vm2, %v3789_v33  ;;  %v2957_v15 = vmul.f32 %v3789_v33, %v3789_v33  ;;  %v2989_v19 = vsel %vm804_vm2, %v2956_v34, 0.0  ;;  %v2888_v46 = vsel %vm804_vm2, %v3789_v33, 0.0 }
 0x1f6   : > { %2852 = vst.msk [vmem:[%s5122_s12 + $0x8] sm:$0xff] %vm804_vm2, %v3790_v44  ;;  %v2884_v28 = vsel %vm804_vm2, %v3790_v44, 0.0  ;;  %v2955_v51 = vmul.f32 %v3790_v44, %v3790_v44  ;;  %v2986_v25 = vsel %vm804_vm2, %v2954_v4, 0.0 }
 0x1f7   : > { %v2885_v27 = vadd.f32 %v2884_v28, %v2883_v8  ;;  %v2991_v26 = vsel %vm804_vm2, %v2957_v15, 0.0 }
 0x1f8   : > { %v2987_v14 = vsel %vm804_vm2, %v2955_v51, 0.0  ;;  %v3759_v20 = vpop.f32.mrb[4].mxu0 }
 0x1f9   : > { %v2887_v5 = vadd.f32 %v2886_v41, %v2885_v27  ;;  %v2988_v42 = vadd.f32 %v2987_v14, %v2986_v25  ;;  %v3791_v54 = vadd.f32 %v3759_v20, %v3589_v7  ;;  %v2708_v55 = vpop.f32.mrb[5].mxu0 }
 0x1fa   : > { %v3792_v32 = vadd.f32 %v2708_v55, %v1664_v3  ;;  %v3760_v49 = vpop.f32.mrb[6].mxu0 }
 0x1fb   : > { %v2990_v16 = vadd.f32 %v2989_v19, %v2988_v42  ;;  %2857 = vst.msk [vmem:[%s5122_s12 + $0x30] sm:$0xff] %vm804_vm2, %v3791_v54  ;;  %v2889_v11 = vadd.f32 %v2888_v46, %v2887_v5  ;;  %v2711_v58 = vpop.f32.mrb[7].mxu0  ;;  %v3793_v13 = vadd.f32 %v3760_v49, %v3590_v12  ;;  %v2960_v53 = vmul.f32 %v3791_v54, %v3791_v54 }
 0x1fc   : > { %2855 = vst.msk [vmem:[%s5122_s12 + $0x20] sm:$0xff] %vm804_vm2, %v3792_v32  ;;  %v2890_v17 = vsel %vm804_vm2, %v3792_v32, 0.0  ;;  %v2958_v36 = vmul.f32 %v3792_v32, %v3792_v32  ;;  %v3794_v39 = vadd.f32 %v2711_v58, %v1667_v31  ;;  %v2894_v56 = vsel %vm804_vm2, %v3791_v54, 0.0 }
 0x1fd   : > { %v2891_v40 = vadd.f32 %v2890_v17, %v2889_v11  ;;  %v2992_v47 = vadd.f32 %v2991_v26, %v2990_v16  ;;  %2858 = vst.msk [vmem:[%s5122_s12 + $0x38] sm:$0xff] %vm804_vm2, %v3793_v13  ;;  %v2961_v22 = vmul.f32 %v3793_v13, %v3793_v13  ;;  %v2896_v61 = vsel %vm804_vm2, %v3793_v13, 0.0 }
 0x1fe   : > { %v2993_v29 = vsel %vm804_vm2, %v2958_v36, 0.0  ;;  %2856 = vst.msk [vmem:[%s5122_s12 + $0x28] sm:$0xff] %vm804_vm2, %v3794_v39  ;;  %v2892_v37 = vsel %vm804_vm2, %v3794_v39, 0.0  ;;  %v2959_v52 = vmul.f32 %v3794_v39, %v3794_v39  ;;  %v2997_v12 = vsel %vm804_vm2, %v2960_v53, 0.0 }
 0x1ff   : > { %v2994_v2 = vadd.f32 %v2993_v29, %v2992_v47  ;;  %v2893_v48 = vadd.f32 %v2892_v37, %v2891_v40 }
 0x200   : > { %v3763_v62 = vpop.f32.mrb[8].mxu0  ;;  %v2995_v0 = vsel %vm804_vm2, %v2959_v52, 0.0 }
 0x201   : > { %v2895_v9 = vadd.f32 %v2894_v56, %v2893_v48  ;;  %v3795_v59 = vadd.f32 %v3763_v62, %v5102_v6  ;;  %v2724_v21 = vpop.f32.mrb[9].mxu0  ;;  %v2996_v57 = vadd.f32 %v2995_v0, %v2994_v2 }
 0x202   : > { %v3796_v7 = vadd.f32 %v2724_v21, %v5104_v63  ;;  %v3764_v3 = vpop.f32.mrb[10].mxu0  ;;  %v2999_v63 = vsel %vm804_vm2, %v2961_v22, 0.0 }
 0x203   : > { %2861 = vst.msk [vmem:[%s5122_s12 + $0x50] sm:$0xff] %vm804_vm2, %v3795_v59  ;;  %v2897_v31 = vadd.f32 %v2896_v61, %v2895_v9  ;;  %v3797_v24 = vadd.f32 %v3764_v3, %v5106_v23  ;;  %v2727_v43 = vpop.f32.mrb[11].mxu0  ;;  %v2998_v50 = vadd.f32 %v2997_v12, %v2996_v57  ;;  %v2964_v34 = vmul.f32 %v3795_v59, %v3795_v59 }
 0x204   : > { %2859 = vst.msk [vmem:[%s5122_s12 + $0x40] sm:$0xff] %vm804_vm2, %v3796_v7  ;;  %v2898_v6 = vsel %vm804_vm2, %v3796_v7, 0.0  ;;  %v2962_v38 = vmul.f32 %v3796_v7, %v3796_v7  ;;  %v3798_v30 = vadd.f32 %v2727_v43, %v5108_v18  ;;  %v2902_v28 = vsel %vm804_vm2, %v3795_v59, 0.0 }
 0x205   : > { %v2899_v33 = vadd.f32 %v2898_v6, %v2897_v31  ;;  %2862 = vst.msk [vmem:[%s5122_s12 + $0x58] sm:$0xff] %vm804_vm2, %v3797_v24  ;;  %v3000_v1 = vadd.f32 %v2999_v63, %v2998_v50  ;;  %v2965_v27 = vmul.f32 %v3797_v24, %v3797_v24  ;;  %v2904_v20 = vsel %vm804_vm2, %v3797_v24, 0.0 }
 0x206   : > { %v3001_v4 = vsel %vm804_vm2, %v2962_v38, 0.0  ;;  %2860 = vst.msk [vmem:[%s5122_s12 + $0x48] sm:$0xff] %vm804_vm2, %v3798_v30  ;;  %v2900_v23 = vsel %vm804_vm2, %v3798_v30, 0.0  ;;  %v2963_v44 = vmul.f32 %v3798_v30, %v3798_v30  ;;  %v3005_v55 = vsel %vm804_vm2, %v2964_v34, 0.0 }
 0x207   : > { %v2901_v8 = vadd.f32 %v2900_v23, %v2899_v33  ;;  %v3002_v51 = vadd.f32 %v3001_v4, %v3000_v1 }
 0x208   : > { %v3003_v18 = vsel %vm804_vm2, %v2963_v44, 0.0  ;;  %v3767_v15 = vpop.f32.mrb[12].mxu0 }
 0x209   : > { %v2903_v41 = vadd.f32 %v2902_v28, %v2901_v8  ;;  %v3799_v25 = vadd.f32 %v3767_v15, %v5110_v35  ;;  %v2740_v14 = vpop.f32.mrb[13].mxu0  ;;  %v3004_v5 = vadd.f32 %v3003_v18, %v3002_v51 }
 0x20a   : > { %v3800_v42 = vadd.f32 %v2740_v14, %v5113_v10  ;;  %v3768_v54 = vpop.f32.mrb[14].mxu0  ;;  %v3007_v10 = vsel %vm804_vm2, %v2965_v27, 0.0 }
 0x20b   : > { %2865 = vst.msk [vmem:[%s5122_s12 + $0x70] sm:$0xff] %vm804_vm2, %v3799_v25  ;;  %v2905_v19 = vadd.f32 %v2904_v20, %v2903_v41  ;;  %v3801_v46 = vadd.f32 %v3768_v54, %v5115_v45  ;;  %v2743_v32 = vpop.f32.mrb[15].mxu0  ;;  %v3006_v49 = vadd.f32 %v3005_v55, %v3004_v5  ;;  %v2968_v13 = vmul.f32 %v3799_v25, %v3799_v25 }
 0x20c   : > { %2863 = vst.msk [vmem:[%s5122_s12 + $0x60] sm:$0xff] %vm804_vm2, %v3800_v42  ;;  %v2906_v35 = vsel %vm804_vm2, %v3800_v42, 0.0  ;;  %v2966_v26 = vmul.f32 %v3800_v42, %v3800_v42  ;;  %v3802_v16 = vadd.f32 %v2743_v32, %v5117_v60  ;;  %v2910_v40 = vsel %vm804_vm2, %v3799_v25, 0.0 }
 0x20d   : > { %v2907_v11 = vadd.f32 %v2906_v35, %v2905_v19  ;;  %2866 = vst.msk [vmem:[%s5122_s12 + $0x78] sm:$0xff] %vm804_vm2, %v3801_v46  ;;  %v3008_v58 = vadd.f32 %v3007_v10, %v3006_v49  ;;  %v2969_v37 = vmul.f32 %v3801_v46, %v3801_v46  ;;  %v2912_v48 = vsel %vm804_vm2, %v3801_v46, 0.0 }
 0x20e   : > { %v3009_v17 = vsel %vm804_vm2, %v2966_v26, 0.0  ;;  %2864 = vst.msk [vmem:[%s5122_s12 + $0x68] sm:$0xff] %vm804_vm2, %v3802_v16  ;;  %v2908_v45 = vsel %vm804_vm2, %v3802_v16, 0.0  ;;  %v2967_v36 = vmul.f32 %v3802_v16, %v3802_v16  ;;  %v3013_v62 = vsel %vm804_vm2, %v2968_v13, 0.0 }
 0x20f   : > { %v2909_v39 = vadd.f32 %v2908_v45, %v2907_v11  ;;  %v3010_v47 = vadd.f32 %v3009_v17, %v3008_v58  ;;  %v3015_v59 = vsel %vm804_vm2, %v2969_v37, 0.0 }
 0x210   : > { %v3011_v60 = vsel %vm804_vm2, %v2967_v36, 0.0  ;;  %v3771_v29 = vpop.f32.mrb[16].mxu0 }
 0x211   : > { %v2911_v53 = vadd.f32 %v2910_v40, %v2909_v39  ;;  %v2756_v2 = vpop.f32.mrb[17].mxu0  ;;  %v3012_v52 = vadd.f32 %v3011_v60, %v3010_v47 }
 0x212   : > { %v3772_v56 = vpop.f32.mrb[18].mxu0 }
 0x213   : > { %v2913_v22 = vadd.f32 %v2912_v48, %v2911_v53  ;;  %v2759_v9 = vpop.f32.mrb[19].mxu0  ;;  %v3014_v0 = vadd.f32 %v3013_v62, %v3012_v52 }
 0x215   : > { %v3635_v21 = vpop.f32.mrb[16].mxu1  ;;  %v3016_v7 = vadd.f32 %v3015_v59, %v3014_v0 }
 0x216   : > { %v3803_v61 = vadd.f32 %v3771_v29, %v3635_v21  ;;  %v1924_v57 = vpop.f32.mrb[17].mxu1 }
 0x217   : > { %v3804_v3 = vadd.f32 %v2756_v2, %v1924_v57  ;;  %v3636_v12 = vpop.f32.mrb[18].mxu1 }
 0x218   : > { %2869 = vst.msk [vmem:[%s5122_s12 + $0x90] sm:$0xff] %vm804_vm2, %v3803_v61  ;;  %v3805_v31 = vadd.f32 %v3772_v56, %v3636_v12  ;;  %v1927_v24 = vpop.f32.mrb[19].mxu1  ;;  %v3775_v43 = vpop.f32.mrb[20].mxu0  ;;  %v2972_v1 = vmul.f32 %v3803_v61, %v3803_v61  ;;  %v2918_v18 = vsel %vm804_vm2, %v3803_v61, 0.0 }
 0x219   : > { %2867 = vst.msk [vmem:[%s5122_s12 + $0x80] sm:$0xff] %vm804_vm2, %v3804_v3  ;;  %v2914_v50 = vsel %vm804_vm2, %v3804_v3, 0.0  ;;  %v2970_v6 = vmul.f32 %v3804_v3, %v3804_v3  ;;  %v3806_v38 = vadd.f32 %v2759_v9, %v1927_v24  ;;  %v2772_v30 = vpop.f32.mrb[21].mxu0 }
 0x21a   : > { %v2915_v63 = vadd.f32 %v2914_v50, %v2913_v22  ;;  %2870 = vst.msk [vmem:[%s5122_s12 + $0x98] sm:$0xff] %vm804_vm2, %v3805_v31  ;;  %v3776_v33 = vpop.f32.mrb[22].mxu0  ;;  %v2973_v28 = vmul.f32 %v3805_v31, %v3805_v31  ;;  %v3021_v5 = vsel %vm804_vm2, %v2972_v1, 0.0  ;;  %v2920_v42 = vsel %vm804_vm2, %v3805_v31, 0.0 }
 0x21b   : > { %v3017_v4 = vsel %vm804_vm2, %v2970_v6, 0.0  ;;  %2868 = vst.msk [vmem:[%s5122_s12 + $0x88] sm:$0xff] %vm804_vm2, %v3806_v38  ;;  %v2916_v23 = vsel %vm804_vm2, %v3806_v38, 0.0  ;;  %v2971_v44 = vmul.f32 %v3806_v38, %v3806_v38  ;;  %v2775_v34 = vpop.f32.mrb[23].mxu0 }
 0x21c   : > { %v3018_v8 = vadd.f32 %v3017_v4, %v3016_v7  ;;  %v2917_v51 = vadd.f32 %v2916_v23, %v2915_v63  ;;  %v3023_v19 = vsel %vm804_vm2, %v2973_v28, 0.0 }
 0x21d   : > { %v3019_v15 = vsel %vm804_vm2, %v2971_v44, 0.0  ;;  %v3639_v27 = vpop.f32.mrb[20].mxu1 }
 0x21e   : > { %v2919_v41 = vadd.f32 %v2918_v18, %v2917_v51  ;;  %v3020_v25 = vadd.f32 %v3019_v15, %v3018_v8  ;;  %v3807_v14 = vadd.f32 %v3775_v43, %v3639_v27  ;;  %v1940_v20 = vpop.f32.mrb[21].mxu1 }
 0x21f   : > { %v3808_v54 = vadd.f32 %v2772_v30, %v1940_v20  ;;  %v3640_v55 = vpop.f32.mrb[22].mxu1 }
 0x220   : > { %v3022_v46 = vadd.f32 %v3021_v5, %v3020_v25  ;;  %2873 = vst.msk [vmem:[%s5122_s12 + $0xb0] sm:$0xff] %vm804_vm2, %v3807_v14  ;;  %v2921_v32 = vadd.f32 %v2920_v42, %v2919_v41  ;;  %v1943_v49 = vpop.f32.mrb[23].mxu1  ;;  %v3779_v35 = vpop.f32.mrb[24].mxu0  ;;  %v3809_v10 = vadd.f32 %v3776_v33, %v3640_v55  ;;  %v2976_v47 = vmul.f32 %v3807_v14, %v3807_v14 }
 0x221   : > { %2871 = vst.msk [vmem:[%s5122_s12 + $0xa0] sm:$0xff] %vm804_vm2, %v3808_v54  ;;  %v2922_v26 = vsel %vm804_vm2, %v3808_v54, 0.0  ;;  %v2974_v16 = vmul.f32 %v3808_v54, %v3808_v54  ;;  %v3810_v11 = vadd.f32 %v2775_v34, %v1943_v49  ;;  %v2788_v58 = vpop.f32.mrb[25].mxu0  ;;  %v2926_v53 = vsel %vm804_vm2, %v3807_v14, 0.0 }
 0x222   : > { %v2923_v17 = vadd.f32 %v2922_v26, %v2921_v32  ;;  %v3024_v45 = vadd.f32 %v3023_v19, %v3022_v46  ;;  %v3780_v36 = vpop.f32.mrb[26].mxu0  ;;  %2874 = vst.msk [vmem:[%s5122_s12 + $0xb8] sm:$0xff] %vm804_vm2, %v3809_v10  ;;  %v2977_v48 = vmul.f32 %v3809_v10, %v3809_v10  ;;  %v2928_v9 = vsel %vm804_vm2, %v3809_v10, 0.0 }
 0x223   : > { %v3025_v13 = vsel %vm804_vm2, %v2974_v16, 0.0  ;;  %2872 = vst.msk [vmem:[%s5122_s12 + $0xa8] sm:$0xff] %vm804_vm2, %v3810_v11  ;;  %v2924_v39 = vsel %vm804_vm2, %v3810_v11, 0.0  ;;  %v2791_v40 = vpop.f32.mrb[27].mxu0  ;;  %v2975_v37 = vmul.f32 %v3810_v11, %v3810_v11  ;;  %v3029_v61 = vsel %vm804_vm2, %v2976_v47, 0.0 }
 0x224   : > { %v3026_v60 = vadd.f32 %v3025_v13, %v3024_v45  ;;  %v2925_v29 = vadd.f32 %v2924_v39, %v2923_v17  ;;  %v3031_v38 = vsel %vm804_vm2, %v2977_v48, 0.0 }
 0x225   : > { %v3643_v2 = vpop.f32.mrb[24].mxu1  ;;  %v3027_v56 = vsel %vm804_vm2, %v2975_v37, 0.0 }
 0x226   : > { %v2927_v52 = vadd.f32 %v2926_v53, %v2925_v29  ;;  %v3811_v62 = vadd.f32 %v3779_v35, %v3643_v2  ;;  %v1956_v22 = vpop.f32.mrb[25].mxu1  ;;  %v3028_v0 = vadd.f32 %v3027_v56, %v3026_v60 }
 0x227   : > { %v3812_v59 = vadd.f32 %v2788_v58, %v1956_v22  ;;  %v3644_v21 = vpop.f32.mrb[26].mxu1 }
 0x228   : > { %2877 = vst.msk [vmem:[%s5122_s12 + $0xd0] sm:$0xff] %vm804_vm2, %v3811_v62  ;;  %v2929_v57 = vadd.f32 %v2928_v9, %v2927_v52  ;;  %v3813_v7 = vadd.f32 %v3780_v36, %v3644_v21  ;;  %v1959_v3 = vpop.f32.mrb[27].mxu1  ;;  %v3783_v12 = vpop.f32.mrb[28].mxu0  ;;  %v3030_v31 = vadd.f32 %v3029_v61, %v3028_v0  ;;  %v2980_v34 = vmul.f32 %v3811_v62, %v3811_v62 }
 0x229   : > { %2875 = vst.msk [vmem:[%s5122_s12 + $0xc0] sm:$0xff] %vm804_vm2, %v3812_v59  ;;  %v2930_v24 = vsel %vm804_vm2, %v3812_v59, 0.0  ;;  %v2978_v43 = vmul.f32 %v3812_v59, %v3812_v59  ;;  %v3814_v50 = vadd.f32 %v2791_v40, %v1959_v3  ;;  %v2804_v6 = vpop.f32.mrb[29].mxu0  ;;  %v2934_v28 = vsel %vm804_vm2, %v3811_v62, 0.0 }
 0x22a   : > { %v2931_v30 = vadd.f32 %v2930_v24, %v2929_v57  ;;  %2878 = vst.msk [vmem:[%s5122_s12 + $0xd8] sm:$0xff] %vm804_vm2, %v3813_v7  ;;  %v3784_v63 = vpop.f32.mrb[30].mxu0  ;;  %v3032_v33 = vadd.f32 %v3031_v38, %v3030_v31  ;;  %v2981_v27 = vmul.f32 %v3813_v7, %v3813_v7  ;;  %v2936_v20 = vsel %vm804_vm2, %v3813_v7, 0.0 }
 0x22b   : > { %v3033_v1 = vsel %vm804_vm2, %v2978_v43, 0.0  ;;  %2876 = vst.msk [vmem:[%s5122_s12 + $0xc8] sm:$0xff] %vm804_vm2, %v3814_v50  ;;  %v2932_v4 = vsel %vm804_vm2, %v3814_v50, 0.0  ;;  %v2979_v23 = vmul.f32 %v3814_v50, %v3814_v50  ;;  %v2807_v44 = vpop.f32.mrb[31].mxu0  ;;  %v3037_v55 = vsel %vm804_vm2, %v2980_v34, 0.0 }
 0x22c   : > { %v2933_v8 = vadd.f32 %v2932_v4, %v2931_v30  ;;  %v3034_v51 = vadd.f32 %v3033_v1, %v3032_v33  ;;  %v3039_v10 = vsel %vm804_vm2, %v2981_v27, 0.0 }
 0x22d   : > { %v3035_v18 = vsel %vm804_vm2, %v2979_v23, 0.0  ;;  %v3647_v15 = vpop.f32.mrb[28].mxu1 }
 0x22e   : > { %v2935_v41 = vadd.f32 %v2934_v28, %v2933_v8  ;;  %v3815_v25 = vadd.f32 %v3783_v12, %v3647_v15  ;;  %v1972_v14 = vpop.f32.mrb[29].mxu1  ;;  %v3036_v5 = vadd.f32 %v3035_v18, %v3034_v51 }
 0x22f   : > { %v3816_v42 = vadd.f32 %v2804_v6, %v1972_v14  ;;  %v3648_v54 = vpop.f32.mrb[30].mxu1 }
 0x230   : > { %2881 = vst.msk [vmem:[%s5122_s12 + $0xf0] sm:$0xff] %vm804_vm2, %v3815_v25  ;;  %v2937_v19 = vadd.f32 %v2936_v20, %v2935_v41  ;;  %v3817_v46 = vadd.f32 %v3784_v63, %v3648_v54  ;;  %v1975_v32 = vpop.f32.mrb[31].mxu1  ;;  %v3038_v49 = vadd.f32 %v3037_v55, %v3036_v5  ;;  %v2984_v13 = vmul.f32 %v3815_v25, %v3815_v25 }
 0x231   : > { %2879 = vst.msk [vmem:[%s5122_s12 + $0xe0] sm:$0xff] %vm804_vm2, %v3816_v42  ;;  %v2938_v35 = vsel %vm804_vm2, %v3816_v42, 0.0  ;;  %v2982_v26 = vmul.f32 %v3816_v42, %v3816_v42  ;;  %v3818_v16 = vadd.f32 %v2807_v44, %v1975_v32  ;;  %v2942_v40 = vsel %vm804_vm2, %v3815_v25, 0.0 }
 0x232   : > { %v2939_v11 = vadd.f32 %v2938_v35, %v2937_v19  ;;  %2882 = vst.msk [vmem:[%s5122_s12 + $0xf8] sm:$0xff] %vm804_vm2, %v3817_v46  ;;  %v3040_v58 = vadd.f32 %v3039_v10, %v3038_v49  ;;  %v2985_v29 = vmul.f32 %v3817_v46, %v3817_v46  ;;  %v2944_v53 = vsel %vm804_vm2, %v3817_v46, 0.0 }
 0x233   : > { %v3041_v17 = vsel %vm804_vm2, %v2982_v26, 0.0  ;;  %2880 = vst.msk [vmem:[%s5122_s12 + $0xe8] sm:$0xff] %vm804_vm2, %v3818_v16  ;;  %v2940_v45 = vsel %vm804_vm2, %v3818_v16, 0.0  ;;  %v2983_v36 = vmul.f32 %v3818_v16, %v3818_v16  ;;  %v3045_v48 = vsel %vm804_vm2, %v2984_v13, 0.0 }
 0x234   : > { %v2941_v39 = vadd.f32 %v2940_v45, %v2939_v11  ;;  %v3042_v47 = vadd.f32 %v3041_v17, %v3040_v58  ;;  %v3047_v62 = vsel %vm804_vm2, %v2985_v29, 0.0 }
 0x235   : > { %v3043_v60 = vsel %vm804_vm2, %v2983_v36, 0.0 }
 0x236   : > { %v2943_v37 = vadd.f32 %v2942_v40, %v2941_v39  ;;  %v3044_v2 = vadd.f32 %v3043_v60, %v3042_v47 }
 0x238   : > { %v2945_v52 = vadd.f32 %v2944_v53, %v2943_v37  ;;  %v3046_v56 = vadd.f32 %v3045_v48, %v3044_v2 }
 0x23a   : > { %v2946_v22 = vrot.slane %v2945_v52, 4  ;;  %v3048_v9 = vadd.f32 %v3047_v62, %v3046_v56 }
 0x23c   : > { %v2947_v0 = vadd.f32 %v2946_v22, %v2945_v52  ;;  %v3049_v59 = vrot.slane %v3048_v9, 4 }
 0x23e   : > { %v2948_v21 = vrot.slane %v2947_v0, 2  ;;  %v3050_v61 = vadd.f32 %v3049_v59, %v3048_v9 }
 0x240   : > { %v2949_v57 = vadd.f32 %v2948_v21, %v2947_v0  ;;  %v3051_v7 = vrot.slane %v3050_v61, 2 }
 0x242   : > { %v2950_v3 = vrot.slane %v2949_v57, 1  ;;  %v3052_v12 = vadd.f32 %v3051_v7, %v3050_v61 }
 0x244   : > { %v2951_v31 = vadd.f32 %v2950_v3, %v2949_v57  ;;  %v3053_v24 = vrot.slane %v3052_v12, 1 }
 0x246   : > { %2953 = vst.msk [vmem:[%s265_s15] sm:$0x1] %vm2952_vm0, %v2951_v31  ;;  %v3054_v43 = vadd.f32 %v3053_v24, %v3052_v12 }
 0x248   : > { %3055 = vst.msk [vmem:[%s268_s18] sm:$0x1] %vm2952_vm0, %v3054_v43 }
 0x249 PF: > { %s17_s21 = sadd.s32 1, %s4071_s21  }
 0x24a   : > { %p14_p4 = scmp.ge.s32.totalorder %s17_s21, 4  }
 0x24c   :  { %16 = sbr.rel (!%p14_p4) target bundleno = 1 (0x1), region = 98 }

// kernel: _upsample_bn_forward.3
= control target key start
LH: loop header
LB: loop body
LE: loop exit
PB: predicated region body
PF: predicated region fallthrough
CT: control target
= control target key end

     0   :  { %s3871_s21 = smov 0   ;;  %s4851_s0 = inlined_call_operand.vmem [shape: f32[2,18,18,16], index: 0, kind: input, shape index: {}]   ;;  %s4852_s1 = inlined_call_operand.vmem [shape: bf16[9,16,8], index: 1, kind: input, shape index: {}]   ;;  %s4853_s2 = inlined_call_operand.vmem [shape: f32[1,1,16], index: 2, kind: input, shape index: {}]   ;;  %s4854_s3 = inlined_call_operand.vmem [shape: f32[1,1,16], index: 3, kind: input, shape index: {}]   ;;  %s4855_s4 = inlined_call_operand.vmem [shape: f32[2,256,8], index: 4, kind: output, shape index: {0}]   ;;  %s4856_s5 = inlined_call_operand.vmem [shape: f32[2,1,8], index: 5, kind: output, shape index: {1}]   ;;  %s4857_s6 = inlined_call_operand.vmem [shape: f32[2,1,8], index: 6, kind: output, shape index: {2}]  }
   0x1 LB: > { %s2913_s2 = sadd.s32 4294967295, %s3834_s21   ;;  %p2917_p0 = scmp.ge.s32.totalorder %s3834_s21, 1  ;;  %s3834_s21 = sphi %s3871_s21, %s17_s21  }
   0x2   : > { %p217_p1 = scmp.lt.s32.totalorder %s3834_s21, 3 }
   0x4   : > { %p218_p2 = pnand %p2917_p0, %p217_p1 }
   0x6   : > { %221 = sbr.rel (%p218_p2) target bundleno = 548 (0x224), region = 36 }
   0xd   : > { %v3819_v0 = vld [vmem:[%s4852_s1 + $0x8] sm:$0xff]   ;;  %p253_p3 = scmp.lt.s32.totalorder %s2913_s2, 1  ;;  %v3885_v1 = vld [vmem:[%s4852_s1 + $0x20] sm:$0xff]   ;;  %vm390_vm0 = vcmask 1046528   ;;  %vm528_vm1 = vcmask 130048   ;;  %v3975_v36 = vld [vmem:[%s4852_s1 + $0x10] sm:$0xff]  }
   0xe   : > { %4883 = vst [vmem:[#allocation2_spill] sm:$0xff] %v3885_v1  ;;  %3246 = vmatprep.subr.bf16.mxu1 %v3819_v0  ;;  %3382 = vmatprep.subr.bf16.mxu0 %v3885_v1  ;;  %v3821_v2 = vld [vmem:[%s4852_s1] sm:$0xff]   ;;  %v3898_v3 = vld [vmem:[%s4852_s1 + $0x28] sm:$0xff]   ;;  %v4000_v50 = vld [vmem:[%s4852_s1 + $0x30] sm:$0xff]   ;;  %vm953_vm2 = vcmask 1045504   ;;  %vm2602_vm3 = vcmask 64512  }
   0xf   : > { %s4916_s2 = smov (!%p253_p3, %s2913_s2), 1  ;;  %3247 = vmatpush3.bf16.msra.mxu1 %v3819_v0  ;;  %3383 = vmatpush3.bf16.msra.mxu0 %v3885_v1  ;;  %vm2704_vm4 = vcmask 57344  }
  0x10   : > { %s3810_s27 = smul.u32 432, %s4916_s2  ;;  %3280 = vmatprep.subr.bf16.mxu1 %v3821_v2  ;;  %3416 = vmatprep.subr.bf16.mxu0 %v3898_v3  ;;  %s3092_s19 = sshll.u32 %s4916_s2, 8 }
  0x11   : > { %s4702_s22 = scalar_lea.vmem %s4855_s4, %s3092_s19  ;;  %s265_s25 = scalar_lea.vmem %s4856_s5, %s4916_s2 }
  0x12   : > { %s3903_s8 = scalar_lea.vmem %s4851_s0, %s3810_s27  ;;  %s268_s28 = scalar_lea.vmem %s4857_s6, %s4916_s2 }
  0x13   : > { %v3907_v4 = vld [vmem:[%s3903_s8] sm:$0xff]  ;;  %v3910_v5 = vld [vmem:[%s3903_s8 + $0x8] sm:$0xff]  ;;  %v3913_v6 = vld [vmem:[%s3903_s8 + $0x10] sm:$0x3] }
  0x14   : > { %v391_v7 = vrot.slane %v3907_v4, 1  ;;  %v392_v8 = vrot.slane %v3910_v5, 1  ;;  %v394_v9 = vrot.slane %v3913_v6, 1  ;;  %v3919_v10 = vld [vmem:[%s3903_s8 + $0x18] sm:$0xff]  ;;  %v3922_v11 = vld [vmem:[%s3903_s8 + $0x20] sm:$0xff]  ;;  %v3933_v15 = vld [vmem:[%s3903_s8 + $0x30] sm:$0xff] }
  0x15   : > { %v3925_v12 = vld [vmem:[%s3903_s8 + $0x28] sm:$0x3]  ;;  %v3929_v13 = vpack.c.bf16 %v3922_v11, %v3919_v10  ;;  %v396_v14 = vrot.slane %v3919_v10, 1  ;;  %v397_v18 = vrot.slane %v3922_v11, 1  ;;  %v3940_v20 = vld [vmem:[%s3903_s8 + $0x38] sm:$0xff]  ;;  %v3949_v24 = vld [vmem:[%s3903_s8 + $0x50] sm:$0xff] }
  0x16   : > { %v393_v16 = vsel %vm390_vm0, %v391_v7, %v392_v8  ;;  %v395_v17 = vsel %vm390_vm0, %v392_v8, %v394_v9  ;;  %v399_v19 = vrot.slane %v3925_v12, 1  ;;  %v3943_v21 = vld [vmem:[%s3903_s8 + $0x40] sm:$0x3]  ;;  %v3946_v23 = vld [vmem:[%s3903_s8 + $0x48] sm:$0xff]  ;;  %v401_v27 = vrot.slane %v3933_v15, 1  ;;  %v3970_v35 = vld [vmem:[%s3903_s8 + $0x78] sm:$0xff] }
  0x17   : > { %v503_v22 = vpack.c.bf16 %v395_v17, %v393_v16  ;;  %v398_v25 = vsel %vm390_vm0, %v396_v14, %v397_v18  ;;  %v402_v28 = vrot.slane %v3940_v20, 1  ;;  %v3956_v29 = vld [vmem:[%s3903_s8 + $0x58] sm:$0x3]  ;;  %v3959_v30 = vld [vmem:[%s3903_s8 + $0x60] sm:$0xff]  ;;  %v3962_v31 = vld [vmem:[%s3903_s8 + $0x68] sm:$0xff]  ;;  %v404_v33 = vrot.slane %v3943_v21, 1 }
  0x18   : > { %v400_v26 = vsel %vm390_vm0, %v397_v18, %v399_v19  ;;  %v3967_v34 = vld [vmem:[%s3903_s8 + $0x70] sm:$0x3]  ;;  %v406_v38 = vrot.slane %v3946_v23, 1  ;;  %v407_v39 = vrot.slane %v3949_v24, 1  ;;  %v3981_v40 = vld [vmem:[%s3903_s8 + $0x80] sm:$0xff]  ;;  %v409_v43 = vrot.slane %v3956_v29, 1 }
  0x19   : > { %3248 = vmatprep.mubr.msk.bf16.mxu1 %vm528_vm1, %v503_v22  ;;  %v504_v32 = vpack.c.bf16 %v400_v26, %v398_v25  ;;  %v403_v37 = vsel %vm390_vm0, %v401_v27, %v402_v28  ;;  %v3984_v41 = vld [vmem:[%s3903_s8 + $0x88] sm:$0x3]  ;;  %v405_v42 = vsel %vm390_vm0, %v402_v28, %v404_v33  ;;  %v411_v44 = vrot.slane %v3959_v30, 1  ;;  %v4020_v59 = vld [vmem:[%s3903_s8 + $0x90] sm:$0xff]  ;;  %v4023_v60 = vld [vmem:[%s3903_s8 + $0x98] sm:$0xff] }
  0x1a   : > { %v412_v45 = vrot.slane %v3962_v31, 1  ;;  %v3992_v46 = vpack.c.bf16 %v405_v42, %v403_v37  ;;  %v408_v47 = vsel %vm390_vm0, %v406_v38, %v407_v39  ;;  %v414_v48 = vrot.slane %v3967_v34, 1  ;;  %v4026_v61 = vld [vmem:[%s3903_s8 + $0xa0] sm:$0x3]  ;;  %v4030_v62 = vld [vmem:[%s3903_s8 + $0xa8] sm:$0xff]  ;;  %v4033_v63 = vld [vmem:[%s3903_s8 + $0xb0] sm:$0xff] }
  0x1b   : > { %3384 = vmatprep.mubr.msk.bf16.mxu0 %vm528_vm1, %v504_v32  ;;  %3249 = vmatmul.mubr.msk.bf16.vlgmr.msra.gmra.mrb[0].mxu1 %vm528_vm1, %v504_v32  ;;  %v416_v49 = vrot.slane %v3970_v35, 1  ;;  %v410_v51 = vsel %vm390_vm0, %v407_v39, %v409_v43  ;;  %v417_v52 = vrot.slane %v3981_v40, 1  ;;  %v419_v53 = vrot.slane %v3984_v41, 1  ;;  %v4036_v0 = vld [vmem:[%s3903_s8 + $0xb8] sm:$0x3]  ;;  %v4059_v22 = vld [vmem:[%s3903_s8 + $0xc0] sm:$0xff] }
  0x1c   : > { %3281 = vmatpush3.bf16.msra.mxu1 %v3821_v2  ;;  %4884 = vst [vmem:[#allocation3_spill] sm:$0xff] %v3992_v46  ;;  %3385 = vmatmul.mubr.msk.bf16.vlgmr.msra.gmra.mrb[0].mxu0 %vm528_vm1, %v3992_v46  ;;  %v4010_v54 = vpack.c.bf16 %v410_v51, %v408_v47  ;;  %v413_v55 = vsel %vm390_vm0, %v411_v44, %v412_v45  ;;  %v421_v7 = vrot.slane %v4020_v59, 1  ;;  %v422_v8 = vrot.slane %v4023_v60, 1  ;;  %v4062_v25 = vld [vmem:[%s3903_s8 + $0xc8] sm:$0xff]  ;;  %v4067_v28 = vld [vmem:[%s3903_s8 + $0xd0] sm:$0x3] }
  0x1d   : > { %3314 = vmatprep.subr.bf16.mxu1 %v3975_v36  ;;  %3252 = vmatprep.mubr.msk.bf16.mxu1 %vm528_vm1, %v3992_v46  ;;  %v415_v56 = vsel %vm390_vm0, %v412_v45, %v414_v48  ;;  %v418_v57 = vsel %vm390_vm0, %v416_v49, %v417_v52  ;;  %v420_v58 = vsel %vm390_vm0, %v417_v52, %v419_v53  ;;  %v424_v9 = vrot.slane %v4026_v61, 1  ;;  %v4090_v44 = vld [vmem:[%s3903_s8 + $0xe8] sm:$0x3]  ;;  %v4095_v48 = vld [vmem:[%s3903_s8 + $0xf0] sm:$0xff]  ;;  %v4098_v49 = vld [vmem:[%s3903_s8 + $0xf8] sm:$0xff] }
  0x1e   : > { %4885 = vst [vmem:[#allocation4_spill] sm:$0xff] %v4010_v54  ;;  %3417 = vmatpush3.bf16.msra.mxu0 %v3898_v3  ;;  %3388 = vmatprep.mubr.msk.bf16.mxu0 %vm528_vm1, %v4010_v54  ;;  %v4038_v2 = vpack.c.bf16 %v415_v56, %v413_v55  ;;  %v4042_v3 = vpack.c.bf16 %v420_v58, %v418_v57  ;;  %v426_v14 = vrot.slane %v4030_v62, 1  ;;  %v427_v16 = vrot.slane %v4033_v63, 1  ;;  %v4107_v56 = vld [vmem:[%s3903_s8 + $0x100] sm:$0x3] }
  0x1f   : > { %3450 = vmatprep.subr.bf16.mxu0 %v4000_v50  ;;  %v429_v17 = vrot.slane %v4036_v0, 1  ;;  %v423_v18 = vsel %vm390_vm0, %v421_v7, %v422_v8  ;;  %v425_v19 = vsel %vm390_vm0, %v422_v8, %v424_v9  ;;  %v959_v32 = vrot.slane %v3919_v10, 2 }
  0x20   : > { %4886 = vst [vmem:[#allocation5_spill] sm:$0xff] %v4038_v2  ;;  %4887 = vst [vmem:[#allocation6_spill] sm:$0xff] %v4042_v3  ;;  %v428_v26 = vsel %vm390_vm0, %v426_v14, %v427_v16  ;;  %v960_v33 = vrot.slane %v3922_v11, 2  ;;  %v962_v37 = vrot.slane %v3925_v12, 2  ;;  %v4072_v38 = vpack.c.bf16 %v425_v19, %v423_v18  ;;  %v4084_v11 = vld [vmem:[%s3903_s8 + $0xd8] sm:$0xff]  ;;  %v4087_v12 = vld [vmem:[%s3903_s8 + $0xe0] sm:$0xff] }
  0x21   : > { %v430_v27 = vsel %vm390_vm0, %v427_v16, %v429_v17  ;;  %v431_v39 = vrot.slane %v4059_v22, 1  ;;  %v432_v42 = vrot.slane %v4062_v25, 1  ;;  %v434_v10 = vrot.slane %v4067_v28, 1  ;;  %v4123_v18 = vld [vmem:[%s3903_s8 + $0x108] sm:$0xff]  ;;  %v4126_v19 = vld [vmem:[%s3903_s8 + $0x110] sm:$0xff] }
  0x22   : > { %4888 = vst [vmem:[#allocation7_spill] sm:$0xff] %v4072_v38  ;;  %v4078_v43 = vpack.c.bf16 %v430_v27, %v428_v26  ;;  %v964_v45 = vrot.slane %v3933_v15, 2  ;;  %v965_v47 = vrot.slane %v3940_v20, 2  ;;  %v967_v51 = vrot.slane %v3943_v21, 2  ;;  %v4129_v26 = vld [vmem:[%s3903_s8 + $0x118] sm:$0x3] }
  0x23   : > { %3253 = vmatmul.mubr.msk.bf16.gmra.mrb[4].mxu1 %vm528_vm1, %v4010_v54  ;;  %v433_v52 = vsel %vm390_vm0, %v431_v39, %v432_v42  ;;  %v961_v53 = vsel %vm953_vm2, %v959_v32, %v960_v33  ;;  %v963_v55 = vsel %vm953_vm2, %v960_v33, %v962_v37  ;;  %v435_v57 = vsel %vm390_vm0, %v432_v42, %v434_v10  ;;  %v4138_v39 = vld [vmem:[%s3903_s8 + $0x120] sm:$0xff] }
  0x24   : > { %3256 = vmatprep.mubr.msk.bf16.mxu1 %vm528_vm1, %v4038_v2  ;;  %3389 = vmatmul.mubr.msk.bf16.gmra.mrb[4].mxu0 %vm528_vm1, %v4038_v2  ;;  %4889 = vst [vmem:[#allocation8_spill] sm:$0xff] %v4078_v43  ;;  %v436_v21 = vrot.slane %v4084_v11, 1  ;;  %v437_v58 = vrot.slane %v4087_v12, 1  ;;  %v439_v7 = vrot.slane %v4090_v44, 1  ;;  %v441_v8 = vrot.slane %v4095_v48, 1  ;;  %v4176_v2 = vld [vmem:[%s3903_s8 + $0x138] sm:$0xff] }
  0x25   : > { %3392 = vmatprep.mubr.msk.bf16.mxu0 %vm528_vm1, %v4042_v3  ;;  %v442_v9 = vrot.slane %v4098_v49, 1  ;;  %v444_v14 = vrot.slane %v4107_v56, 1  ;;  %v4118_v16 = vpack.c.bf16 %v435_v57, %v433_v52  ;;  %v4120_v17 = vpack.c.bf16 %v963_v55, %v961_v53  ;;  %v4147_v55 = vld [vmem:[%s3903_s8 + $0x128] sm:$0xff]  ;;  %v4150_v57 = vld [vmem:[%s3903_s8 + $0x130] sm:$0x3] }
  0x26   : > { %v438_v27 = vsel %vm390_vm0, %v436_v21, %v437_v58  ;;  %v440_v32 = vsel %vm390_vm0, %v437_v58, %v439_v7  ;;  %v966_v33 = vsel %vm953_vm2, %v964_v45, %v965_v47  ;;  %v968_v37 = vsel %vm953_vm2, %v965_v47, %v967_v51 }
  0x27   : > { %4890 = vst [vmem:[#allocation9_spill] sm:$0xff] %v4118_v16  ;;  %v443_v42 = vsel %vm390_vm0, %v441_v8, %v442_v9  ;;  %v969_v10 = vrot.slane %v3946_v23, 2  ;;  %v970_v52 = vrot.slane %v3949_v24, 2  ;;  %v972_v53 = vrot.slane %v3956_v29, 2 }
  0x28   : > { %v445_v45 = vsel %vm390_vm0, %v442_v9, %v444_v14  ;;  %v446_v47 = vrot.slane %v4123_v18, 1  ;;  %v447_v51 = vrot.slane %v4126_v19, 1  ;;  %v449_v21 = vrot.slane %v4129_v26, 1 }
  0x29   : > { %v4160_v29 = vpack.c.bf16 %v440_v32, %v438_v27  ;;  %v451_v58 = vrot.slane %v4138_v39, 1  ;;  %v452_v7 = vrot.slane %v4147_v55, 1  ;;  %v454_v8 = vrot.slane %v4150_v57, 1 }
  0x2a   : > { %v4165_v9 = vpack.c.bf16 %v968_v37, %v966_v33  ;;  %v4167_v14 = vpack.c.bf16 %v445_v45, %v443_v42  ;;  %v450_v27 = vsel %vm390_vm0, %v447_v51, %v449_v21  ;;  %v974_v32 = vrot.slane %v3959_v30, 2  ;;  %v4179_v33 = vld [vmem:[%s3903_s8 + $0x140] sm:$0xff]  ;;  %v4199_v21 = vld [vmem:[%s3903_s8 + $0x150] sm:$0xff] }
  0x2b   : > { %3257 = vmatmul.mubr.msk.bf16.gmra.mrb[8].mxu1 %vm528_vm1, %v4042_v3  ;;  %4891 = vst [vmem:[#allocation10_spill] sm:$0xff] %v4160_v29  ;;  %v975_v3 = vrot.slane %v3962_v31, 2  ;;  %v977_v37 = vrot.slane %v3967_v34, 2  ;;  %v979_v42 = vrot.slane %v3970_v35, 2  ;;  %v982_v34 = vrot.slane %v3984_v41, 2 }
  0x2c   : > { %3260 = vmatprep.mubr.msk.bf16.mxu1 %vm528_vm1, %v4072_v38  ;;  %3393 = vmatmul.mubr.msk.bf16.gmra.mrb[8].mxu0 %vm528_vm1, %v4072_v38  ;;  %4892 = vst [vmem:[#allocation11_spill] sm:$0xff] %v4165_v9  ;;  %4893 = vst [vmem:[#allocation12_spill] sm:$0xff] %v4167_v14  ;;  %v448_v38 = vsel %vm390_vm0, %v446_v47, %v447_v51  ;;  %v453_v47 = vsel %vm390_vm0, %v451_v58, %v452_v7  ;;  %v456_v54 = vrot.slane %v4176_v2, 1 }
  0x2d   : > { %3396 = vmatprep.mubr.msk.bf16.mxu0 %vm528_vm1, %v4078_v43  ;;  %v455_v51 = vsel %vm390_vm0, %v452_v7, %v454_v8  ;;  %v976_v41 = vsel %vm953_vm2, %v974_v32, %v975_v3  ;;  %v4222_v7 = vpack.c.bf16 %v3949_v24, %v3946_v23  ;;  %v978_v8 = vsel %vm953_vm2, %v975_v3, %v977_v37 }
  0x2e   : > { %v461_v24 = vrot.slane %v4199_v21, 1  ;;  %v984_v37 = vrot.slane %v4020_v59, 2 }
  0x33   : > { %3261 = vmatmul.mubr.msk.bf16.gmra.mrb[12].mxu1 %vm528_vm1, %v4078_v43  ;;  %v971_v43 = vsel %vm953_vm2, %v969_v10, %v970_v52  ;;  %v980_v10 = vrot.slane %v3981_v40, 2 }
  0x34   : > { %3264 = vmatprep.mubr.msk.bf16.mxu1 %vm528_vm1, %v4118_v16  ;;  %3397 = vmatmul.mubr.msk.bf16.gmra.mrb[12].mxu0 %vm528_vm1, %v4118_v16  ;;  %v973_v16 = vsel %vm953_vm2, %v970_v52, %v972_v53  ;;  %v4185_v52 = vld [vmem:[%s3903_s8 + $0x148] sm:$0x3]  ;;  %v4189_v53 = vpack.c.bf16 %v3940_v20, %v3933_v15  ;;  %v457_v15 = vrot.slane %v4179_v33, 1  ;;  %v4206_v20 = vld [vmem:[%s3903_s8 + $0x158] sm:$0xff] }
  0x35   : > { %3418 = vmatprep.mubr.msk.bf16.mxu0 %vm528_vm1, %v4120_v17  ;;  %v4193_v45 = vpack.c.bf16 %v973_v16, %v971_v43  ;;  %v4214_v43 = vld [vmem:[%s4852_s1 + $0x38] sm:$0xff]   ;;  %v4216_v16 = vpack.c.bf16 %v450_v27, %v448_v38  ;;  %v459_v58 = vrot.slane %v4185_v52, 1  ;;  %v981_v46 = vsel %vm953_vm2, %v979_v42, %v980_v10 }
  0x36   : > { %v4232_v38 = vpack.c.bf16 %v3962_v31, %v3959_v30  ;;  %v983_v23 = vsel %vm953_vm2, %v980_v10, %v982_v34  ;;  %v462_v3 = vrot.slane %v4206_v20, 1  ;;  %v458_v32 = vsel %vm390_vm0, %v456_v54, %v457_v15 }
  0x37   : > { %4894 = vst [vmem:[#allocation13_spill] sm:$0xff] %v4193_v45  ;;  %4895 = vst [vmem:[#allocation14_spill] sm:$0xff] %v4216_v16  ;;  %v985_v30 = vrot.slane %v4023_v60, 2  ;;  %v4246_v31 = vpack.c.bf16 %v3981_v40, %v3970_v35  ;;  %v987_v42 = vrot.slane %v4026_v61, 2  ;;  %v989_v10 = vrot.slane %v4030_v62, 2 }
  0x38   : > { %v990_v54 = vrot.slane %v4033_v63, 2  ;;  %v4256_v34 = vpack.c.bf16 %v983_v23, %v981_v46  ;;  %v4263_v35 = vpack.c.bf16 %v4023_v60, %v4020_v59  ;;  %v463_v40 = vsel %vm390_vm0, %v461_v24, %v462_v3 }
  0x39   : > { %v4278_v46 = vpack.c.bf16 %v4033_v63, %v4030_v62  ;;  %v955_v59 = vrot.slane %v3910_v5, 2  ;;  %v957_v60 = vrot.slane %v3913_v6, 2  ;;  %v986_v23 = vsel %vm953_vm2, %v984_v37, %v985_v30 }
  0x3a   : > { %4898 = vst [vmem:[#allocation17_spill] sm:$0xff] %v4256_v34  ;;  %v991_v24 = vsel %vm953_vm2, %v989_v10, %v990_v54  ;;  %v4292_v62 = vpack.c.bf16 %v4062_v25, %v4059_v22  ;;  %v4321_v10 = vpack.c.bf16 %v4179_v33, %v4176_v2 }
  0x3b   : > { %3265 = vmatmul.mubr.msk.bf16.gmra.mrb[16].mxu1 %vm528_vm1, %v4160_v29  ;;  %v4209_v29 = vld [vmem:[%s3903_s8 + $0x160] sm:$0x3] }
  0x3c   : > { %3268 = vmatprep.mubr.msk.bf16.mxu1 %vm528_vm1, %v4167_v14  ;;  %3419 = vmatmul.mubr.msk.bf16.vlgmr.msra.gmra.mrb[0].mxu0 %vm528_vm1, %v4165_v9  ;;  %v4227_v14 = vpack.c.bf16 %v455_v51, %v453_v47  ;;  %v464_v27 = vrot.slane %v4209_v29, 1  ;;  %v954_v47 = vrot.slane %v3907_v4, 2  ;;  %v4254_v51 = vpack.c.bf16 %v978_v8, %v976_v41  ;;  %v4274_v41 = vld [vmem:[%s3903_s8 + $0x178] sm:$0x3] }
  0x3d   : > { %3451 = vmatpush3.bf16.msra.mxu0 %v4000_v50  ;;  %3422 = vmatprep.mubr.msk.bf16.mxu0 %vm528_vm1, %v4193_v45  ;;  %v460_v50 = vsel %vm390_vm0, %v457_v15, %v459_v58  ;;  %v4259_v45 = vld [vmem:[%s3903_s8 + $0x168] sm:$0xff]  ;;  %v992_v15 = vrot.slane %v4036_v0, 2  ;;  %v4271_v58 = vld [vmem:[%s3903_s8 + $0x170] sm:$0xff]  ;;  %v988_v0 = vsel %vm953_vm2, %v985_v30, %v987_v42  ;;  %v4309_v30 = vpack.c.bf16 %v4098_v49, %v4095_v48 }
  0x3e   : > { %4896 = vst [vmem:[#allocation15_spill] sm:$0xff] %v4227_v14  ;;  %3484 = vmatprep.subr.bf16.mxu0 %v4214_v43  ;;  %4897 = vst [vmem:[#allocation16_spill] sm:$0xff] %v4254_v51  ;;  %v465_v61 = vsel %vm390_vm0, %v462_v3, %v464_v27  ;;  %v4284_v8 = vpack.c.bf16 %v460_v50, %v458_v32  ;;  %v466_v3 = vrot.slane %v4259_v45, 1  ;;  %v467_v63 = vrot.slane %v4271_v58, 1 }
  0x3f   : > { %v4296_v6 = vpack.c.bf16 %v465_v61, %v463_v40  ;;  %v469_v27 = vrot.slane %v4274_v41, 1  ;;  %v4302_v32 = vpack.c.bf16 %v4087_v12, %v4084_v11  ;;  %v993_v37 = vsel %vm953_vm2, %v990_v54, %v992_v15 }
  0x40   : > { %v4313_v50 = vpack.c.bf16 %v4126_v19, %v4123_v18  ;;  %v4317_v42 = vpack.c.bf16 %v4147_v55, %v4138_v39  ;;  %v4325_v40 = vpack.c.bf16 %v4206_v20, %v4199_v21  ;;  %v4329_v54 = vpack.c.bf16 %v4271_v58, %v4259_v45 }
  0x41   : > { %v4332_v61 = vsel %vm953_vm2, %v954_v47, %v955_v59  ;;  %v4335_v15 = vsel %vm953_vm2, %v955_v59, %v957_v60  ;;  %v468_v1 = vsel %vm390_vm0, %v466_v3, %v467_v63  ;;  %v995_v47 = vrot.slane %v4062_v25, 2 }
  0x42   : > { %v997_v9 = vrot.slane %v4067_v28, 2  ;;  %v470_v59 = vsel %vm390_vm0, %v467_v63, %v469_v27  ;;  %v1000_v60 = vrot.slane %v4087_v12, 2  ;;  %v1012_v63 = vrot.slane %v4129_v26, 2 }
  0x43   : > { %3269 = vmatmul.mubr.msk.bf16.gmra.mrb[20].mxu1 %vm528_vm1, %v4216_v16  ;;  %v994_v16 = vrot.slane %v4059_v22, 2  ;;  %v999_v22 = vrot.slane %v4084_v11, 2  ;;  %v4359_v25 = vpack.c.bf16 %v470_v59, %v468_v1  ;;  %v1004_v1 = vrot.slane %v4095_v48, 2 }
  0x44   : > { %3272 = vmatprep.mubr.msk.bf16.mxu1 %vm528_vm1, %v4227_v14  ;;  %3423 = vmatmul.mubr.msk.bf16.gmra.mrb[4].mxu0 %vm528_vm1, %v4254_v51  ;;  %v4337_v14 = vpack.c.bf16 %v988_v0, %v986_v23  ;;  %v4344_v51 = vpack.c.bf16 %v993_v37, %v991_v24  ;;  %v1002_v23 = vrot.slane %v4090_v44, 2  ;;  %v998_v0 = vsel %vm953_vm2, %v995_v47, %v997_v9 }
  0x45   : > { %3426 = vmatprep.mubr.msk.bf16.mxu0 %vm528_vm1, %v4256_v34  ;;  %v1066_v34 = vpack.c.bf16 %v4335_v15, %v4332_v61  ;;  %v996_v28 = vsel %vm953_vm2, %v994_v16, %v995_v47  ;;  %v324_v24 = vpack.c.bf16 %v3910_v5, %v3907_v4  ;;  %v1001_v11 = vsel %vm953_vm2, %v999_v22, %v1000_v60  ;;  %v4902_v61 = vld [vmem:[#allocation16_spill] sm:$0xff] }
  0x46   : > { %v1003_v12 = vsel %vm953_vm2, %v1000_v60, %v1002_v23  ;;  %v4367_v44 = vpack.c.bf16 %v998_v0, %v996_v28  ;;  %v1005_v16 = vrot.slane %v4098_v49, 2  ;;  %v1007_v9 = vrot.slane %v4107_v56, 2 }
  0x47   : > { %v4371_v3 = vpack.c.bf16 %v1003_v12, %v1001_v11  ;;  %v1009_v4 = vrot.slane %v4123_v18, 2  ;;  %v1010_v5 = vrot.slane %v4126_v19, 2  ;;  %v4391_v18 = vld [vmem:[%s4852_s1 + $0x18] sm:$0xff]   ;;  %v1014_v37 = vrot.slane %v4138_v39, 2 }
  0x48   : > { %v1006_v48 = vsel %vm953_vm2, %v1004_v1, %v1005_v16  ;;  %v1008_v49 = vsel %vm953_vm2, %v1005_v16, %v1007_v9  ;;  %v1015_v47 = vrot.slane %v4147_v55, 2  ;;  %v1017_v59 = vrot.slane %v4150_v57, 2  ;;  %v318_v16 = vld [vmem:[%s3903_s8 + $0x180] sm:$0xff]  ;;  %v320_v9 = vld [vmem:[%s3903_s8 + $0x190] sm:$0x3] }
  0x49   : > { %v1011_v56 = vsel %vm953_vm2, %v1009_v4, %v1010_v5  ;;  %v1013_v27 = vsel %vm953_vm2, %v1010_v5, %v1012_v63  ;;  %v4393_v19 = vpack.c.bf16 %v1008_v49, %v1006_v48  ;;  %v1019_v22 = vrot.slane %v4176_v2, 2 }
  0x4a   : > { %v4397_v26 = vpack.c.bf16 %v1013_v27, %v1011_v56  ;;  %v1020_v60 = vrot.slane %v4179_v33, 2  ;;  %v1022_v23 = vrot.slane %v4185_v52, 2  ;;  %v1016_v39 = vsel %vm953_vm2, %v1014_v37, %v1015_v47 }
  0x4b   : > { %3273 = vmatmul.mubr.msk.bf16.gmra.mrb[24].mxu1 %vm528_vm1, %v4284_v8  ;;  %v1024_v52 = vrot.slane %v4199_v21, 2  ;;  %v1025_v28 = vrot.slane %v4206_v20, 2  ;;  %v1027_v0 = vrot.slane %v4209_v29, 2  ;;  %v1030_v11 = vrot.slane %v4271_v58, 2 }
  0x4c   : > { %3276 = vmatprep.mubr.msk.bf16.mxu1 %vm528_vm1, %v4296_v6  ;;  %3427 = vmatmul.mubr.msk.bf16.gmra.mrb[8].mxu0 %vm528_vm1, %v4337_v14  ;;  %v1021_v55 = vsel %vm953_vm2, %v1019_v22, %v1020_v60  ;;  %v1023_v2 = vsel %vm953_vm2, %v1020_v60, %v1022_v23  ;;  %v1032_v12 = vrot.slane %v4274_v41, 2  ;;  %v1754_v4 = vrot.slane %v318_v16, 2  ;;  %v3827_v23 = vld [vmem:[%s4852_s1 + $0x40] sm:$0xff]  }
  0x4d   : > { %3430 = vmatprep.mubr.msk.bf16.mxu0 %vm528_vm1, %v4344_v51  ;;  %v4421_v33 = vpack.c.bf16 %v1023_v2, %v1021_v55  ;;  %v1026_v21 = vsel %vm953_vm2, %v1024_v52, %v1025_v28  ;;  %v1028_v20 = vsel %vm953_vm2, %v1025_v28, %v1027_v0  ;;  %v1757_v63 = vrot.slane %v320_v9, 2  ;;  %v323_v52 = vld [vmem:[%s3903_s8 + $0x1a8] sm:$0x3] }
  0x4e   : > { %v1033_v1 = vsel %vm953_vm2, %v1030_v11, %v1032_v12  ;;  %v4442_v58 = vpack.c.bf16 %v1028_v20, %v1026_v21  ;;  %v1541_v48 = vrot.slane %v318_v16, 1  ;;  %v1544_v56 = vrot.slane %v320_v9, 1  ;;  %v4904_v21 = vld [vmem:[#allocation3_spill] sm:$0xff]  ;;  %v4905_v20 = vld [vmem:[#allocation4_spill] sm:$0xff]  ;;  %v4910_v9 = vld [vmem:[#allocation9_spill] sm:$0xff] }
  0x4f   : > { %v2392_v28 = vrot.slane %v323_v52, 2 }
  0x53   : > { %3277 = vmatmul.mubr.msk.bf16.gmra.mrb[28].mxu1 %vm528_vm1, %v4359_v25 }
  0x54   : > { %3282 = vmatprep.mubr.msk.bf16.mxu1 %vm528_vm1, %v324_v24  ;;  %3431 = vmatmul.mubr.msk.bf16.gmra.mrb[12].mxu0 %vm528_vm1, %v4367_v44  ;;  %v1029_v24 = vrot.slane %v4259_v45, 2  ;;  %v319_v45 = vld [vmem:[%s3903_s8 + $0x188] sm:$0xff] }
  0x55   : > { %3434 = vmatprep.mubr.msk.bf16.mxu0 %vm528_vm1, %v4371_v3  ;;  %v1755_v5 = vrot.slane %v319_v45, 2  ;;  %v1542_v49 = vrot.slane %v319_v45, 1  ;;  %v4528_v15 = vpack.c.bf16 %v319_v45, %v318_v16  ;;  %v4908_v16 = vld [vmem:[#allocation7_spill] sm:$0xff]  ;;  %v4909_v45 = vld [vmem:[#allocation8_spill] sm:$0xff] }
  0x56   : > { %v1031_v29 = vsel %vm953_vm2, %v1029_v24, %v1030_v11 }
  0x57   : > { %v4446_v41 = vpack.c.bf16 %v1033_v1, %v1031_v29  ;;  %v1756_v27 = vsel %vm953_vm2, %v1754_v4, %v1755_v5  ;;  %v1758_v37 = vsel %vm953_vm2, %v1755_v5, %v1757_v63  ;;  %v4906_v29 = vld [vmem:[#allocation5_spill] sm:$0xff]  ;;  %v4907_v1 = vld [vmem:[#allocation6_spill] sm:$0xff]  ;;  %v4912_v5 = vld [vmem:[#allocation12_spill] sm:$0xff] }
  0x58   : > { %v4460_v60 = vpack.c.bf16 %v1758_v37, %v1756_v27  ;;  %v4911_v4 = vld [vmem:[#allocation10_spill] sm:$0xff] }
  0x59   : > { %v4913_v63 = vld [vmem:[#allocation14_spill] sm:$0xff] }
  0x5b   : > { %3283 = vmatmul.mubr.msk.bf16.vlgmr.msra.gmra.mrb[0].mxu1 %vm528_vm1, %v3929_v13 }
  0x5c   : > { %3315 = vmatpush3.bf16.msra.mxu1 %v3975_v36  ;;  %3286 = vmatprep.mubr.msk.bf16.mxu1 %vm528_vm1, %v4189_v53  ;;  %v1018_v36 = vsel %vm953_vm2, %v1015_v47, %v1017_v59  ;;  %v1543_v47 = vsel %vm390_vm0, %v1541_v48, %v1542_v49  ;;  %v1545_v59 = vsel %vm390_vm0, %v1542_v49, %v1544_v56  ;;  %v4914_v48 = vld [vmem:[#allocation15_spill] sm:$0xff] }
  0x5d   : > { %3348 = vmatprep.subr.bf16.mxu1 %v4391_v18  ;;  %3435 = vmatmul.mubr.msk.bf16.gmra.mrb[16].mxu0 %vm528_vm1, %v4393_v19  ;;  %v4417_v57 = vpack.c.bf16 %v1018_v36, %v1016_v39  ;;  %v4458_v22 = vpack.c.bf16 %v1545_v59, %v1543_v47  ;;  %v4900_v39 = vld [vmem:[#allocation2_spill] sm:$0xff] }
  0x5e   : > { %3438 = vmatprep.mubr.msk.bf16.mxu0 %vm528_vm1, %v4397_v26  ;;  %v322_v36 = vld [vmem:[%s3903_s8 + $0x1a0] sm:$0xff] }
  0x5f   : > { %v2390_v2 = vrot.slane %v322_v36, 2 }
  0x61   : > { %v4545_v11 = vsel %vm953_vm2, %v2390_v2, %v2392_v28 }
  0x63   : > { %3287 = vmatmul.mubr.msk.bf16.gmra.mrb[4].mxu1 %vm528_vm1, %v4222_v7 }
  0x64   : > { %3290 = vmatprep.mubr.msk.bf16.mxu1 %vm528_vm1, %v4232_v38 }
  0x65   : > { %3439 = vmatmul.mubr.msk.bf16.gmra.mrb[20].mxu0 %vm528_vm1, %v4417_v57 }
  0x66   : > { %3442 = vmatprep.mubr.msk.bf16.mxu0 %vm528_vm1, %v4421_v33 }
  0x6b   : > { %3291 = vmatmul.mubr.msk.bf16.gmra.mrb[8].mxu1 %vm528_vm1, %v4246_v31 }
  0x6c   : > { %3294 = vmatprep.mubr.msk.bf16.mxu1 %vm528_vm1, %v4263_v35 }
  0x6d   : > { %3443 = vmatmul.mubr.msk.bf16.gmra.mrb[24].mxu0 %vm528_vm1, %v4442_v58 }
  0x6e   : > { %3446 = vmatprep.mubr.msk.bf16.mxu0 %vm528_vm1, %v4446_v41 }
  0x73   : > { %3295 = vmatmul.mubr.msk.bf16.gmra.mrb[12].mxu1 %vm528_vm1, %v4278_v46 }
  0x74   : > { %3298 = vmatprep.mubr.msk.bf16.mxu1 %vm528_vm1, %v4292_v62 }
  0x75   : > { %3447 = vmatmul.mubr.msk.bf16.gmra.mrb[28].mxu0 %vm528_vm1, %v4460_v60 }
  0x76   : > { %3452 = vmatprep.mubr.msk.bf16.mxu0 %vm528_vm1, %v4189_v53 }
  0x7b   : > { %3299 = vmatmul.mubr.msk.bf16.gmra.mrb[16].mxu1 %vm528_vm1, %v4302_v32 }
  0x7c   : > { %3302 = vmatprep.mubr.msk.bf16.mxu1 %vm528_vm1, %v4309_v30 }
  0x7d   : > { %3453 = vmatmul.mubr.msk.bf16.vlgmr.msra.gmra.mrb[0].mxu0 %vm528_vm1, %v4222_v7 }
  0x7e   : > { %3485 = vmatpush3.bf16.msra.mxu0 %v4214_v43  ;;  %3456 = vmatprep.mubr.msk.bf16.mxu0 %vm528_vm1, %v4232_v38  ;;  %v4899_v43 = vld [vmem:[#allocation11_spill] sm:$0xff] }
  0x7f   : > { %3518 = vmatprep.subr.bf16.mxu0 %v3827_v23 }
  0x83   : > { %3303 = vmatmul.mubr.msk.bf16.gmra.mrb[20].mxu1 %vm528_vm1, %v4313_v50 }
  0x84   : > { %3306 = vmatprep.mubr.msk.bf16.mxu1 %vm528_vm1, %v4317_v42 }
  0x85   : > { %3457 = vmatmul.mubr.msk.bf16.gmra.mrb[4].mxu0 %vm528_vm1, %v4246_v31 }
  0x86   : > { %3460 = vmatprep.mubr.msk.bf16.mxu0 %vm528_vm1, %v4263_v35 }
  0x8b   : > { %3307 = vmatmul.mubr.msk.bf16.gmra.mrb[24].mxu1 %vm528_vm1, %v4321_v10 }
  0x8c   : > { %3310 = vmatprep.mubr.msk.bf16.mxu1 %vm528_vm1, %v4325_v40 }
  0x8d   : > { %3461 = vmatmul.mubr.msk.bf16.gmra.mrb[8].mxu0 %vm528_vm1, %v4278_v46 }
  0x8e   : > { %3464 = vmatprep.mubr.msk.bf16.mxu0 %vm528_vm1, %v4292_v62 }
  0x93   : > { %3311 = vmatmul.mubr.msk.bf16.gmra.mrb[28].mxu1 %vm528_vm1, %v4329_v54 }
  0x94   : > { %3316 = vmatprep.mubr.msk.bf16.mxu1 %vm528_vm1, %v1066_v34  ;;  %v4901_v34 = vld [vmem:[#allocation13_spill] sm:$0xff] }
  0x95   : > { %3465 = vmatmul.mubr.msk.bf16.gmra.mrb[12].mxu0 %vm528_vm1, %v4302_v32 }
  0x96   : > { %3468 = vmatprep.mubr.msk.bf16.mxu0 %vm528_vm1, %v4309_v30 }
  0x9b   : > { %3317 = vmatmul.mubr.msk.bf16.vlgmr.msra.gmra.mrb[0].mxu1 %vm528_vm1, %v4120_v17  ;;  %v4903_v17 = vld [vmem:[#allocation17_spill] sm:$0xff] }
  0x9c   : > { %3349 = vmatpush3.bf16.msra.mxu1 %v4391_v18  ;;  %3320 = vmatprep.mubr.msk.bf16.mxu1 %vm528_vm1, %v4899_v43  ;;  %v321_v18 = vld [vmem:[%s3903_s8 + $0x198] sm:$0xff] }
  0x9d   : > { %3552 = vmatprep.subr.bf16.mxu1 %v4900_v39  ;;  %3469 = vmatmul.mubr.msk.bf16.gmra.mrb[16].mxu0 %vm528_vm1, %v4313_v50  ;;  %v2389_v55 = vrot.slane %v321_v18, 2  ;;  %v1967_v0 = vpack.c.bf16 %v322_v36, %v321_v18 }
  0x9e   : > { %3472 = vmatprep.mubr.msk.bf16.mxu0 %vm528_vm1, %v4317_v42 }
  0x9f   : > { %v4542_v24 = vsel %vm953_vm2, %v2389_v55, %v2390_v2 }
  0xa0   : > { %v2396_v12 = vpack.c.bf16 %v4545_v11, %v4542_v24 }
  0xa3   : > { %3321 = vmatmul.mubr.msk.bf16.gmra.mrb[4].mxu1 %vm528_vm1, %v4901_v34 }
  0xa4   : > { %3324 = vmatprep.mubr.msk.bf16.mxu1 %vm528_vm1, %v4902_v61 }
  0xa5   : > { %3473 = vmatmul.mubr.msk.bf16.gmra.mrb[20].mxu0 %vm528_vm1, %v4321_v10 }
  0xa6   : > { %3476 = vmatprep.mubr.msk.bf16.mxu0 %vm528_vm1, %v4325_v40 }
  0xab   : > { %3325 = vmatmul.mubr.msk.bf16.gmra.mrb[8].mxu1 %vm528_vm1, %v4903_v17 }
  0xac   : > { %3328 = vmatprep.mubr.msk.bf16.mxu1 %vm528_vm1, %v4337_v14 }
  0xad   : > { %3477 = vmatmul.mubr.msk.bf16.gmra.mrb[24].mxu0 %vm528_vm1, %v4329_v54 }
  0xae   : > { %3480 = vmatprep.mubr.msk.bf16.mxu0 %vm528_vm1, %v4528_v15 }
  0xb3   : > { %3329 = vmatmul.mubr.msk.bf16.gmra.mrb[12].mxu1 %vm528_vm1, %v4344_v51 }
  0xb4   : > { %3332 = vmatprep.mubr.msk.bf16.mxu1 %vm528_vm1, %v4367_v44 }
  0xb5   : > { %3481 = vmatmul.mubr.msk.bf16.gmra.mrb[28].mxu0 %vm528_vm1, %v1967_v0 }
  0xb6   : > { %3486 = vmatprep.mubr.msk.bf16.mxu0 %vm528_vm1, %v4904_v21 }
  0xbb   : > { %3333 = vmatmul.mubr.msk.bf16.gmra.mrb[16].mxu1 %vm528_vm1, %v4371_v3 }
  0xbc   : > { %3336 = vmatprep.mubr.msk.bf16.mxu1 %vm528_vm1, %v4393_v19 }
  0xbd   : > { %3487 = vmatmul.mubr.msk.bf16.vlgmr.msra.gmra.mrb[0].mxu0 %vm528_vm1, %v4905_v20 }
  0xbe   : > { %3519 = vmatpush3.bf16.msra.mxu0 %v3827_v23  ;;  %3490 = vmatprep.mubr.msk.bf16.mxu0 %vm528_vm1, %v4906_v29 }
  0xc3   : > { %3337 = vmatmul.mubr.msk.bf16.gmra.mrb[20].mxu1 %vm528_vm1, %v4397_v26 }
  0xc4   : > { %3340 = vmatprep.mubr.msk.bf16.mxu1 %vm528_vm1, %v4417_v57 }
  0xc5   : > { %3491 = vmatmul.mubr.msk.bf16.gmra.mrb[4].mxu0 %vm528_vm1, %v4907_v1 }
  0xc6   : > { %3494 = vmatprep.mubr.msk.bf16.mxu0 %vm528_vm1, %v4908_v16 }
  0xcb   : > { %3341 = vmatmul.mubr.msk.bf16.gmra.mrb[24].mxu1 %vm528_vm1, %v4421_v33 }
  0xcc   : > { %3344 = vmatprep.mubr.msk.bf16.mxu1 %vm528_vm1, %v4442_v58 }
  0xcd   : > { %3495 = vmatmul.mubr.msk.bf16.gmra.mrb[8].mxu0 %vm528_vm1, %v4909_v45 }
  0xce   : > { %3498 = vmatprep.mubr.msk.bf16.mxu0 %vm528_vm1, %v4910_v9 }
  0xd3   : > { %3345 = vmatmul.mubr.msk.bf16.gmra.mrb[28].mxu1 %vm528_vm1, %v4446_v41 }
  0xd4   : > { %3350 = vmatprep.mubr.msk.bf16.mxu1 %vm528_vm1, %v3929_v13  ;;  %v2176_v13 = vrot.slane %v321_v18, 1 }
  0xd5   : > { %3499 = vmatmul.mubr.msk.bf16.gmra.mrb[12].mxu0 %vm528_vm1, %v4911_v4 }
  0xd6   : > { %3502 = vmatprep.mubr.msk.bf16.mxu0 %vm528_vm1, %v4912_v5 }
  0xdb   : > { %3351 = vmatmul.mubr.msk.bf16.vlgmr.msra.gmra.mrb[0].mxu1 %vm528_vm1, %v4189_v53  ;;  %v2177_v53 = vrot.slane %v322_v36, 1 }
  0xdc   : > { %3553 = vmatpush3.bf16.msra.mxu1 %v4900_v39  ;;  %3354 = vmatprep.mubr.msk.bf16.mxu1 %vm528_vm1, %v4222_v7  ;;  %v2179_v7 = vrot.slane %v323_v52, 1 }
  0xdd   : > { %3503 = vmatmul.mubr.msk.bf16.gmra.mrb[16].mxu0 %vm528_vm1, %v4913_v63 }
  0xde   : > { %3506 = vmatprep.mubr.msk.bf16.mxu0 %vm528_vm1, %v4914_v48 }
  0xe3   : > { %3355 = vmatmul.mubr.msk.bf16.gmra.mrb[4].mxu1 %vm528_vm1, %v4232_v38  ;;  %v2178_v38 = vsel %vm390_vm0, %v2176_v13, %v2177_v53 }
  0xe4   : > { %3358 = vmatprep.mubr.msk.bf16.mxu1 %vm528_vm1, %v4246_v31  ;;  %v2180_v31 = vsel %vm390_vm0, %v2177_v53, %v2179_v7 }
  0xe5   : > { %3507 = vmatmul.mubr.msk.bf16.gmra.mrb[20].mxu0 %vm528_vm1, %v4284_v8  ;;  %v2183_v49 = vpack.c.bf16 %v2180_v31, %v2178_v38 }
  0xe6   : > { %3510 = vmatprep.mubr.msk.bf16.mxu0 %vm528_vm1, %v4296_v6 }
  0xeb   : > { %3359 = vmatmul.mubr.msk.bf16.gmra.mrb[8].mxu1 %vm528_vm1, %v4263_v35 }
  0xec   : > { %3362 = vmatprep.mubr.msk.bf16.mxu1 %vm528_vm1, %v4278_v46 }
  0xed   : > { %3511 = vmatmul.mubr.msk.bf16.gmra.mrb[24].mxu0 %vm528_vm1, %v4359_v25 }
  0xee   : > { %3514 = vmatprep.mubr.msk.bf16.mxu0 %vm528_vm1, %v4458_v22 }
  0xf3   : > { %3363 = vmatmul.mubr.msk.bf16.gmra.mrb[12].mxu1 %vm528_vm1, %v4292_v62 }
  0xf4   : > { %3366 = vmatprep.mubr.msk.bf16.mxu1 %vm528_vm1, %v4302_v32 }
  0xf5   : > { %3515 = vmatmul.mubr.msk.bf16.gmra.mrb[28].mxu0 %vm528_vm1, %v2183_v49 }
  0xf6   : > { %3520 = vmatprep.mubr.msk.bf16.mxu0 %vm528_vm1, %v4899_v43 }
  0xfb   : > { %3367 = vmatmul.mubr.msk.bf16.gmra.mrb[16].mxu1 %vm528_vm1, %v4309_v30 }
  0xfc   : > { %3370 = vmatprep.mubr.msk.bf16.mxu1 %vm528_vm1, %v4313_v50 }
  0xfd   : > { %3521 = vmatmul.mubr.msk.bf16.vlgmr.msra.gmra.mrb[0].mxu0 %vm528_vm1, %v4901_v34 }
  0xfe   : > { %3524 = vmatprep.mubr.msk.bf16.mxu0 %vm528_vm1, %v4902_v61 }
 0x103   : > { %3371 = vmatmul.mubr.msk.bf16.gmra.mrb[20].mxu1 %vm528_vm1, %v4317_v42 }
 0x104   : > { %3374 = vmatprep.mubr.msk.bf16.mxu1 %vm528_vm1, %v4321_v10 }
 0x105   : > { %3525 = vmatmul.mubr.msk.bf16.gmra.mrb[4].mxu0 %vm528_vm1, %v4903_v17 }
 0x106   : > { %3528 = vmatprep.mubr.msk.bf16.mxu0 %vm528_vm1, %v4337_v14 }
 0x10b   : > { %3375 = vmatmul.mubr.msk.bf16.gmra.mrb[24].mxu1 %vm528_vm1, %v4325_v40 }
 0x10c   : > { %3378 = vmatprep.mubr.msk.bf16.mxu1 %vm528_vm1, %v4329_v54 }
 0x10d   : > { %3529 = vmatmul.mubr.msk.bf16.gmra.mrb[8].mxu0 %vm528_vm1, %v4344_v51 }
 0x10e   : > { %3532 = vmatprep.mubr.msk.bf16.mxu0 %vm528_vm1, %v4367_v44 }
 0x113   : > { %3379 = vmatmul.mubr.msk.bf16.gmra.mrb[28].mxu1 %vm528_vm1, %v4528_v15 }
 0x114   : > { %3400 = vmatprep.mubr.msk.bf16.mxu1 %vm528_vm1, %v4911_v4 }
 0x115   : > { %3533 = vmatmul.mubr.msk.bf16.gmra.mrb[12].mxu0 %vm528_vm1, %v4371_v3 }
 0x116   : > { %3536 = vmatprep.mubr.msk.bf16.mxu0 %vm528_vm1, %v4393_v19 }
 0x11b   : > { %3401 = vmatmul.mubr.msk.bf16.vlgmr.msra.gmra.mrb[16].mxu1 %vm528_vm1, %v4912_v5 }
 0x11c   : > { %3404 = vmatprep.mubr.msk.bf16.mxu1 %vm528_vm1, %v4913_v63 }
 0x11d   : > { %3537 = vmatmul.mubr.msk.bf16.gmra.mrb[16].mxu0 %vm528_vm1, %v4397_v26 }
 0x11e   : > { %3540 = vmatprep.mubr.msk.bf16.mxu0 %vm528_vm1, %v4417_v57 }
 0x123   : > { %3405 = vmatmul.mubr.msk.bf16.gmra.mrb[20].mxu1 %vm528_vm1, %v4914_v48 }
 0x124   : > { %3408 = vmatprep.mubr.msk.bf16.mxu1 %vm528_vm1, %v4284_v8 }
 0x125   : > { %3541 = vmatmul.mubr.msk.bf16.gmra.mrb[20].mxu0 %vm528_vm1, %v4421_v33 }
 0x126   : > { %3544 = vmatprep.mubr.msk.bf16.mxu0 %vm528_vm1, %v4442_v58 }
 0x12b   : > { %3409 = vmatmul.mubr.msk.bf16.gmra.mrb[24].mxu1 %vm528_vm1, %v4296_v6 }
 0x12c   : > { %3412 = vmatprep.mubr.msk.bf16.mxu1 %vm528_vm1, %v4359_v25 }
 0x12d   : > { %3545 = vmatmul.mubr.msk.bf16.gmra.mrb[24].mxu0 %vm528_vm1, %v4446_v41 }
 0x12e   : > { %3548 = vmatprep.mubr.msk.bf16.mxu0 %vm528_vm1, %v4460_v60 }
 0x133   : > { %3413 = vmatmul.mubr.msk.bf16.gmra.mrb[28].mxu1 %vm528_vm1, %v4458_v22 }
 0x135   : > { %3549 = vmatmul.mubr.msk.bf16.gmra.mrb[28].mxu0 %vm528_vm1, %v2396_v12 }
 0x1ae   : > { %v3352_v14 = vpop.f32.mrb[0].mxu1 }
 0x1af   : > { %v1379_v51 = vpop.f32.mrb[1].mxu1 }
 0x1b0   : > { %v3353_v35 = vpop.f32.mrb[2].mxu1 }
 0x1b1   : > { %v1382_v46 = vpop.f32.mrb[3].mxu1 }
 0x1b6   : > { %v3356_v8 = vpop.f32.mrb[4].mxu1 }
 0x1b7   : > { %v1395_v62 = vpop.f32.mrb[5].mxu1 }
 0x1b8   : > { %v3357_v6 = vpop.f32.mrb[6].mxu1 }
 0x1b9   : > { %v1398_v32 = vpop.f32.mrb[7].mxu1 }
 0x1be   : > { %v4682_v30 = vpop.f32.mrb[8].mxu1 }
 0x1bf   : > { %v4684_v50 = vpop.f32.mrb[9].mxu1 }
 0x1c0   : > { %v4686_v42 = vpop.f32.mrb[10].mxu1 }
 0x1c1   : > { %v4688_v10 = vpop.f32.mrb[11].mxu1 }
 0x1c6   : > { %v4690_v40 = vpop.f32.mrb[12].mxu1 }
 0x1c7   : > { %v4692_v54 = vpop.f32.mrb[13].mxu1 }
 0x1c8   : > { %v4694_v25 = vpop.f32.mrb[14].mxu1 }
 0x1c9   : > { %v4696_v44 = vpop.f32.mrb[15].mxu1 }
 0x1d0   : > { %v3522_v3 = vpop.f32.mrb[0].mxu0 }
 0x1d1   : > { %v3554_v19 = vadd.f32 %v3522_v3, %v3352_v14  ;;  %v2443_v26 = vpop.f32.mrb[1].mxu0 }
 0x1d2   : > { %v3555_v57 = vadd.f32 %v2443_v26, %v1379_v51  ;;  %v3523_v33 = vpop.f32.mrb[2].mxu0 }
 0x1d3   : > { %2605 = vst.msk [vmem:[%s4702_s22 + $0x10] sm:$0xff] %vm2602_vm3, %v3554_v19  ;;  %v3556_v58 = vadd.f32 %v3523_v33, %v3353_v35  ;;  %v2446_v41 = vpop.f32.mrb[3].mxu0  ;;  %v2708_v37 = vmul.f32 %v3554_v19, %v3554_v19  ;;  %v2638_v43 = vsel %vm2602_vm3, %v3554_v19, 0.0 }
 0x1d4   : > { %2603 = vst.msk [vmem:[%s4702_s22] sm:$0xff] %vm2602_vm3, %v3555_v57  ;;  %v2706_v56 = vmul.f32 %v3555_v57, %v3555_v57  ;;  %v3557_v27 = vadd.f32 %v2446_v41, %v1382_v46  ;;  %v2635_v47 = vsel %vm2602_vm3, %v3555_v57, 0.0 }
 0x1d5   : > { %2606 = vst.msk [vmem:[%s4702_s22 + $0x18] sm:$0xff] %vm2602_vm3, %v3556_v58  ;;  %v2709_v60 = vmul.f32 %v3556_v58, %v3556_v58  ;;  %v2741_v55 = vsel %vm2602_vm3, %v2708_v37, 0.0  ;;  %v2640_v2 = vsel %vm2602_vm3, %v3556_v58, 0.0 }
 0x1d6   : > { %2604 = vst.msk [vmem:[%s4702_s22 + $0x8] sm:$0xff] %vm2602_vm3, %v3557_v27  ;;  %v2636_v59 = vsel %vm2602_vm3, %v3557_v27, 0.0  ;;  %v2707_v22 = vmul.f32 %v3557_v27, %v3557_v27  ;;  %v2738_v39 = vsel %vm2602_vm3, %v2706_v56, 0.0 }
 0x1d7   : > { %v2637_v23 = vadd.f32 %v2636_v59, %v2635_v47  ;;  %v2743_v0 = vsel %vm2602_vm3, %v2709_v60, 0.0 }
 0x1d8   : > { %v2739_v34 = vsel %vm2602_vm3, %v2707_v22, 0.0  ;;  %v3526_v61 = vpop.f32.mrb[4].mxu0 }
 0x1d9   : > { %v2639_v17 = vadd.f32 %v2638_v43, %v2637_v23  ;;  %v2740_v15 = vadd.f32 %v2739_v34, %v2738_v39  ;;  %v3558_v18 = vadd.f32 %v3526_v61, %v3356_v8  ;;  %v2459_v36 = vpop.f32.mrb[5].mxu0 }
 0x1da   : > { %v3559_v52 = vadd.f32 %v2459_v36, %v1395_v62  ;;  %v3527_v28 = vpop.f32.mrb[6].mxu0 }
 0x1db   : > { %v2742_v24 = vadd.f32 %v2741_v55, %v2740_v15  ;;  %2609 = vst.msk [vmem:[%s4702_s22 + $0x30] sm:$0xff] %vm2602_vm3, %v3558_v18  ;;  %v2641_v11 = vadd.f32 %v2640_v2, %v2639_v17  ;;  %v2462_v12 = vpop.f32.mrb[7].mxu0  ;;  %v3560_v29 = vadd.f32 %v3527_v28, %v3357_v6  ;;  %v2712_v5 = vmul.f32 %v3558_v18, %v3558_v18 }
 0x1dc   : > { %2607 = vst.msk [vmem:[%s4702_s22 + $0x20] sm:$0xff] %vm2602_vm3, %v3559_v52  ;;  %v2642_v21 = vsel %vm2602_vm3, %v3559_v52, 0.0  ;;  %v2710_v20 = vmul.f32 %v3559_v52, %v3559_v52  ;;  %v3561_v1 = vadd.f32 %v2462_v12, %v1398_v32  ;;  %v2646_v53 = vsel %vm2602_vm3, %v3558_v18, 0.0 }
 0x1dd   : > { %v2643_v16 = vadd.f32 %v2642_v21, %v2641_v11  ;;  %v2744_v45 = vadd.f32 %v2743_v0, %v2742_v24  ;;  %2610 = vst.msk [vmem:[%s4702_s22 + $0x38] sm:$0xff] %vm2602_vm3, %v3560_v29  ;;  %v2713_v38 = vmul.f32 %v3560_v29, %v3560_v29  ;;  %v2648_v35 = vsel %vm2602_vm3, %v3560_v29, 0.0 }
 0x1de   : > { %v2745_v9 = vsel %vm2602_vm3, %v2710_v20, 0.0  ;;  %2608 = vst.msk [vmem:[%s4702_s22 + $0x28] sm:$0xff] %vm2602_vm3, %v3561_v1  ;;  %v2644_v4 = vsel %vm2602_vm3, %v3561_v1, 0.0  ;;  %v2711_v13 = vmul.f32 %v3561_v1, %v3561_v1  ;;  %v2749_v6 = vsel %vm2602_vm3, %v2712_v5, 0.0 }
 0x1df   : > { %v2746_v63 = vadd.f32 %v2745_v9, %v2744_v45  ;;  %v2645_v48 = vadd.f32 %v2644_v4, %v2643_v16 }
 0x1e0   : > { %v3530_v7 = vpop.f32.mrb[8].mxu0  ;;  %v2747_v49 = vsel %vm2602_vm3, %v2711_v13, 0.0 }
 0x1e1   : > { %v2647_v31 = vadd.f32 %v2646_v53, %v2645_v48  ;;  %v3562_v14 = vadd.f32 %v3530_v7, %v4682_v30  ;;  %v2475_v51 = vpop.f32.mrb[9].mxu0  ;;  %v2748_v46 = vadd.f32 %v2747_v49, %v2746_v63 }
 0x1e2   : > { %v3563_v8 = vadd.f32 %v2475_v51, %v4684_v50  ;;  %v3531_v62 = vpop.f32.mrb[10].mxu0  ;;  %v2751_v50 = vsel %vm2602_vm3, %v2713_v38, 0.0 }
 0x1e3   : > { %2613 = vst.msk [vmem:[%s4702_s22 + $0x50] sm:$0xff] %vm2602_vm3, %v3562_v14  ;;  %v2649_v32 = vadd.f32 %v2648_v35, %v2647_v31  ;;  %v3564_v3 = vadd.f32 %v3531_v62, %v4686_v42  ;;  %v2478_v19 = vpop.f32.mrb[11].mxu0  ;;  %v2750_v26 = vadd.f32 %v2749_v6, %v2748_v46  ;;  %v2716_v37 = vmul.f32 %v3562_v14, %v3562_v14 }
 0x1e4   : > { %2611 = vst.msk [vmem:[%s4702_s22 + $0x40] sm:$0xff] %vm2602_vm3, %v3563_v8  ;;  %v2650_v30 = vsel %vm2602_vm3, %v3563_v8, 0.0  ;;  %v2714_v57 = vmul.f32 %v3563_v8, %v3563_v8  ;;  %v3565_v33 = vadd.f32 %v2478_v19, %v4688_v10  ;;  %v2654_v59 = vsel %vm2602_vm3, %v3562_v14, 0.0 }
 0x1e5   : > { %v2651_v58 = vadd.f32 %v2650_v30, %v2649_v32  ;;  %2614 = vst.msk [vmem:[%s4702_s22 + $0x58] sm:$0xff] %vm2602_vm3, %v3564_v3  ;;  %v2752_v41 = vadd.f32 %v2751_v50, %v2750_v26  ;;  %v2717_v23 = vmul.f32 %v3564_v3, %v3564_v3  ;;  %v2656_v61 = vsel %vm2602_vm3, %v3564_v3, 0.0 }
 0x1e6   : > { %v2753_v56 = vsel %vm2602_vm3, %v2714_v57, 0.0  ;;  %2612 = vst.msk [vmem:[%s4702_s22 + $0x48] sm:$0xff] %vm2602_vm3, %v3565_v33  ;;  %v2652_v42 = vsel %vm2602_vm3, %v3565_v33, 0.0  ;;  %v2715_v27 = vmul.f32 %v3565_v33, %v3565_v33  ;;  %v2757_v36 = vsel %vm2602_vm3, %v2716_v37, 0.0 }
 0x1e7   : > { %v2653_v47 = vadd.f32 %v2652_v42, %v2651_v58  ;;  %v2754_v22 = vadd.f32 %v2753_v56, %v2752_v41 }
 0x1e8   : > { %v2755_v10 = vsel %vm2602_vm3, %v2715_v27, 0.0  ;;  %v3534_v60 = vpop.f32.mrb[12].mxu0 }
 0x1e9   : > { %v2655_v43 = vadd.f32 %v2654_v59, %v2653_v47  ;;  %v3566_v39 = vadd.f32 %v3534_v60, %v4690_v40  ;;  %v2491_v34 = vpop.f32.mrb[13].mxu0  ;;  %v2756_v17 = vadd.f32 %v2755_v10, %v2754_v22 }
 0x1ea   : > { %v3567_v15 = vadd.f32 %v2491_v34, %v4692_v54  ;;  %v3535_v18 = vpop.f32.mrb[14].mxu0  ;;  %v2759_v54 = vsel %vm2602_vm3, %v2717_v23, 0.0 }
 0x1eb   : > { %2617 = vst.msk [vmem:[%s4702_s22 + $0x70] sm:$0xff] %vm2602_vm3, %v3566_v39  ;;  %v2657_v55 = vadd.f32 %v2656_v61, %v2655_v43  ;;  %v3568_v2 = vadd.f32 %v3535_v18, %v4694_v25  ;;  %v2494_v52 = vpop.f32.mrb[15].mxu0  ;;  %v2758_v28 = vadd.f32 %v2757_v36, %v2756_v17  ;;  %v2720_v16 = vmul.f32 %v3566_v39, %v3566_v39 }
 0x1ec   : > { %2615 = vst.msk [vmem:[%s4702_s22 + $0x60] sm:$0xff] %vm2602_vm3, %v3567_v15  ;;  %v2658_v40 = vsel %vm2602_vm3, %v3567_v15, 0.0  ;;  %v2718_v0 = vmul.f32 %v3567_v15, %v3567_v15  ;;  %v3569_v24 = vadd.f32 %v2494_v52, %v4696_v44  ;;  %v2662_v44 = vsel %vm2602_vm3, %v3566_v39, 0.0 }
 0x1ed   : > { %v2659_v11 = vadd.f32 %v2658_v40, %v2657_v55  ;;  %2618 = vst.msk [vmem:[%s4702_s22 + $0x78] sm:$0xff] %vm2602_vm3, %v3568_v2  ;;  %v2760_v21 = vadd.f32 %v2759_v54, %v2758_v28  ;;  %v2721_v13 = vmul.f32 %v3568_v2, %v3568_v2  ;;  %v2664_v31 = vsel %vm2602_vm3, %v3568_v2, 0.0 }
 0x1ee   : > { %v3402_v12 = vpop.f32.mrb[16].mxu1  ;;  %v2761_v20 = vsel %vm2602_vm3, %v2718_v0, 0.0  ;;  %2616 = vst.msk [vmem:[%s4702_s22 + $0x68] sm:$0xff] %vm2602_vm3, %v3569_v24  ;;  %v2660_v25 = vsel %vm2602_vm3, %v3569_v24, 0.0  ;;  %v2719_v29 = vmul.f32 %v3569_v24, %v3569_v24  ;;  %v2765_v35 = vsel %vm2602_vm3, %v2720_v16, 0.0 }
 0x1ef   : > { %v1659_v1 = vpop.f32.mrb[17].mxu1  ;;  %v2661_v45 = vadd.f32 %v2660_v25, %v2659_v11  ;;  %v2762_v4 = vadd.f32 %v2761_v20, %v2760_v21  ;;  %v2767_v26 = vsel %vm2602_vm3, %v2721_v13, 0.0 }
 0x1f0   : > { %v3403_v9 = vpop.f32.mrb[18].mxu1  ;;  %v2763_v5 = vsel %vm2602_vm3, %v2719_v29, 0.0  ;;  %v3538_v63 = vpop.f32.mrb[16].mxu0 }
 0x1f1   : > { %v1662_v48 = vpop.f32.mrb[19].mxu1  ;;  %v2663_v53 = vadd.f32 %v2662_v44, %v2661_v45  ;;  %v3570_v7 = vadd.f32 %v3538_v63, %v3402_v12  ;;  %v2507_v38 = vpop.f32.mrb[17].mxu0  ;;  %v2764_v49 = vadd.f32 %v2763_v5, %v2762_v4 }
 0x1f2   : > { %v3571_v14 = vadd.f32 %v2507_v38, %v1659_v1  ;;  %v3539_v51 = vpop.f32.mrb[18].mxu0 }
 0x1f3   : > { %2621 = vst.msk [vmem:[%s4702_s22 + $0x90] sm:$0xff] %vm2602_vm3, %v3570_v7  ;;  %v2665_v46 = vadd.f32 %v2664_v31, %v2663_v53  ;;  %v3572_v8 = vadd.f32 %v3539_v51, %v3403_v9  ;;  %v2510_v62 = vpop.f32.mrb[19].mxu0  ;;  %v2766_v6 = vadd.f32 %v2765_v35, %v2764_v49  ;;  %v2724_v42 = vmul.f32 %v3570_v7, %v3570_v7 }
 0x1f4   : > { %2619 = vst.msk [vmem:[%s4702_s22 + $0x80] sm:$0xff] %vm2602_vm3, %v3571_v14  ;;  %v2666_v32 = vsel %vm2602_vm3, %v3571_v14, 0.0  ;;  %v2722_v3 = vmul.f32 %v3571_v14, %v3571_v14  ;;  %v3573_v19 = vadd.f32 %v2510_v62, %v1662_v48  ;;  %v2670_v47 = vsel %vm2602_vm3, %v3570_v7, 0.0 }
 0x1f5   : > { %v2667_v30 = vadd.f32 %v2666_v32, %v2665_v46  ;;  %2622 = vst.msk [vmem:[%s4702_s22 + $0x98] sm:$0xff] %vm2602_vm3, %v3572_v8  ;;  %v2768_v33 = vadd.f32 %v2767_v26, %v2766_v6  ;;  %v2725_v23 = vmul.f32 %v3572_v8, %v3572_v8  ;;  %v2672_v61 = vsel %vm2602_vm3, %v3572_v8, 0.0 }
 0x1f6   : > { %v3406_v57 = vpop.f32.mrb[20].mxu1  ;;  %v2769_v50 = vsel %vm2602_vm3, %v2722_v3, 0.0  ;;  %2620 = vst.msk [vmem:[%s4702_s22 + $0x88] sm:$0xff] %vm2602_vm3, %v3573_v19  ;;  %v2668_v58 = vsel %vm2602_vm3, %v3573_v19, 0.0  ;;  %v2723_v41 = vmul.f32 %v3573_v19, %v3573_v19  ;;  %v2773_v36 = vsel %vm2602_vm3, %v2724_v42, 0.0 }
 0x1f7   : > { %v1675_v56 = vpop.f32.mrb[21].mxu1  ;;  %v2669_v27 = vadd.f32 %v2668_v58, %v2667_v30  ;;  %v2770_v59 = vadd.f32 %v2769_v50, %v2768_v33  ;;  %v2775_v54 = vsel %vm2602_vm3, %v2725_v23, 0.0 }
 0x1f8   : > { %v3407_v37 = vpop.f32.mrb[22].mxu1  ;;  %v2771_v22 = vsel %vm2602_vm3, %v2723_v41, 0.0  ;;  %v3542_v10 = vpop.f32.mrb[20].mxu0 }
 0x1f9   : > { %v1678_v60 = vpop.f32.mrb[23].mxu1  ;;  %v2671_v43 = vadd.f32 %v2670_v47, %v2669_v27  ;;  %v3574_v39 = vadd.f32 %v3542_v10, %v3406_v57  ;;  %v2523_v34 = vpop.f32.mrb[21].mxu0  ;;  %v2772_v17 = vadd.f32 %v2771_v22, %v2770_v59 }
 0x1fa   : > { %v3575_v15 = vadd.f32 %v2523_v34, %v1675_v56  ;;  %v3543_v18 = vpop.f32.mrb[22].mxu0 }
 0x1fb   : > { %2625 = vst.msk [vmem:[%s4702_s22 + $0xb0] sm:$0xff] %vm2602_vm3, %v3574_v39  ;;  %v2673_v55 = vadd.f32 %v2672_v61, %v2671_v43  ;;  %v3576_v2 = vadd.f32 %v3543_v18, %v3407_v37  ;;  %v2526_v52 = vpop.f32.mrb[23].mxu0  ;;  %v2774_v28 = vadd.f32 %v2773_v36, %v2772_v17  ;;  %v2728_v16 = vmul.f32 %v3574_v39, %v3574_v39 }
 0x1fc   : > { %2623 = vst.msk [vmem:[%s4702_s22 + $0xa0] sm:$0xff] %vm2602_vm3, %v3575_v15  ;;  %v2674_v40 = vsel %vm2602_vm3, %v3575_v15, 0.0  ;;  %v2726_v0 = vmul.f32 %v3575_v15, %v3575_v15  ;;  %v3577_v24 = vadd.f32 %v2526_v52, %v1678_v60  ;;  %v2678_v44 = vsel %vm2602_vm3, %v3574_v39, 0.0 }
 0x1fd   : > { %v2675_v11 = vadd.f32 %v2674_v40, %v2673_v55  ;;  %2626 = vst.msk [vmem:[%s4702_s22 + $0xb8] sm:$0xff] %vm2602_vm3, %v3576_v2  ;;  %v2776_v21 = vadd.f32 %v2775_v54, %v2774_v28  ;;  %v2729_v13 = vmul.f32 %v3576_v2, %v3576_v2  ;;  %v2680_v31 = vsel %vm2602_vm3, %v3576_v2, 0.0 }
 0x1fe   : > { %v3410_v12 = vpop.f32.mrb[24].mxu1  ;;  %v2777_v20 = vsel %vm2602_vm3, %v2726_v0, 0.0  ;;  %2624 = vst.msk [vmem:[%s4702_s22 + $0xa8] sm:$0xff] %vm2602_vm3, %v3577_v24  ;;  %v2676_v25 = vsel %vm2602_vm3, %v3577_v24, 0.0  ;;  %v2727_v29 = vmul.f32 %v3577_v24, %v3577_v24  ;;  %v2781_v35 = vsel %vm2602_vm3, %v2728_v16, 0.0 }
 0x1ff   : > { %v1691_v1 = vpop.f32.mrb[25].mxu1  ;;  %v2677_v45 = vadd.f32 %v2676_v25, %v2675_v11  ;;  %v2778_v4 = vadd.f32 %v2777_v20, %v2776_v21  ;;  %v2783_v26 = vsel %vm2602_vm3, %v2729_v13, 0.0 }
 0x200   : > { %v3411_v9 = vpop.f32.mrb[26].mxu1  ;;  %v2779_v5 = vsel %vm2602_vm3, %v2727_v29, 0.0  ;;  %v3546_v63 = vpop.f32.mrb[24].mxu0 }
 0x201   : > { %v1694_v48 = vpop.f32.mrb[27].mxu1  ;;  %v2679_v53 = vadd.f32 %v2678_v44, %v2677_v45  ;;  %v3578_v7 = vadd.f32 %v3546_v63, %v3410_v12  ;;  %v2539_v38 = vpop.f32.mrb[25].mxu0  ;;  %v2780_v49 = vadd.f32 %v2779_v5, %v2778_v4 }
 0x202   : > { %v3579_v14 = vadd.f32 %v2539_v38, %v1691_v1  ;;  %v3547_v51 = vpop.f32.mrb[26].mxu0 }
 0x203   : > { %2629 = vst.msk [vmem:[%s4702_s22 + $0xd0] sm:$0xff] %vm2602_vm3, %v3578_v7  ;;  %v2681_v46 = vadd.f32 %v2680_v31, %v2679_v53  ;;  %v3580_v8 = vadd.f32 %v3547_v51, %v3411_v9  ;;  %v2542_v62 = vpop.f32.mrb[27].mxu0  ;;  %v2782_v6 = vadd.f32 %v2781_v35, %v2780_v49  ;;  %v2732_v42 = vmul.f32 %v3578_v7, %v3578_v7 }
 0x204   : > { %2627 = vst.msk [vmem:[%s4702_s22 + $0xc0] sm:$0xff] %vm2602_vm3, %v3579_v14  ;;  %v2682_v32 = vsel %vm2602_vm3, %v3579_v14, 0.0  ;;  %v2730_v3 = vmul.f32 %v3579_v14, %v3579_v14  ;;  %v3581_v19 = vadd.f32 %v2542_v62, %v1694_v48  ;;  %v2686_v47 = vsel %vm2602_vm3, %v3578_v7, 0.0 }
 0x205   : > { %v2683_v30 = vadd.f32 %v2682_v32, %v2681_v46  ;;  %2630 = vst.msk [vmem:[%s4702_s22 + $0xd8] sm:$0xff] %vm2602_vm3, %v3580_v8  ;;  %v2784_v33 = vadd.f32 %v2783_v26, %v2782_v6  ;;  %v2733_v23 = vmul.f32 %v3580_v8, %v3580_v8  ;;  %v2688_v61 = vsel %vm2602_vm3, %v3580_v8, 0.0 }
 0x206   : > { %v3414_v57 = vpop.f32.mrb[28].mxu1  ;;  %v2785_v50 = vsel %vm2602_vm3, %v2730_v3, 0.0  ;;  %2628 = vst.msk [vmem:[%s4702_s22 + $0xc8] sm:$0xff] %vm2602_vm3, %v3581_v19  ;;  %v2684_v58 = vsel %vm2602_vm3, %v3581_v19, 0.0  ;;  %v2731_v41 = vmul.f32 %v3581_v19, %v3581_v19  ;;  %v2789_v36 = vsel %vm2602_vm3, %v2732_v42, 0.0 }
 0x207   : > { %v1707_v56 = vpop.f32.mrb[29].mxu1  ;;  %v2685_v27 = vadd.f32 %v2684_v58, %v2683_v30  ;;  %v2786_v59 = vadd.f32 %v2785_v50, %v2784_v33  ;;  %v2791_v11 = vsel %vm2602_vm3, %v2733_v23, 0.0 }
 0x208   : > { %v3415_v37 = vpop.f32.mrb[30].mxu1  ;;  %v2787_v22 = vsel %vm2602_vm3, %v2731_v41, 0.0  ;;  %v3550_v10 = vpop.f32.mrb[28].mxu0 }
 0x209   : > { %v1710_v60 = vpop.f32.mrb[31].mxu1  ;;  %v2687_v43 = vadd.f32 %v2686_v47, %v2685_v27  ;;  %v3582_v39 = vadd.f32 %v3550_v10, %v3414_v57  ;;  %v2555_v34 = vpop.f32.mrb[29].mxu0  ;;  %v2788_v17 = vadd.f32 %v2787_v22, %v2786_v59 }
 0x20a   : > { %v3583_v15 = vadd.f32 %v2555_v34, %v1707_v56  ;;  %v3551_v18 = vpop.f32.mrb[30].mxu0 }
 0x20b   : > { %2633 = vst.msk [vmem:[%s4702_s22 + $0xf0] sm:$0xff] %vm2602_vm3, %v3582_v39  ;;  %v2736_v55 = vmul.f32 %v3582_v39, %v3582_v39  ;;  %v2689_v2 = vadd.f32 %v2688_v61, %v2687_v43  ;;  %v3584_v52 = vadd.f32 %v3551_v18, %v3415_v37  ;;  %v2558_v28 = vpop.f32.mrb[31].mxu0  ;;  %v2790_v40 = vadd.f32 %v2789_v36, %v2788_v17 }
 0x20c   : > { %2631 = vst.msk [vmem:[%s4702_s22 + $0xe0] sm:$0xff] %vm2602_vm3, %v3583_v15  ;;  %v2690_v0 = vsel %vm2602_vm3, %v3583_v15, 0.0  ;;  %v2734_v24 = vmul.f32 %v3583_v15, %v3583_v15  ;;  %v3585_v54 = vadd.f32 %v2558_v28, %v1710_v60  ;;  %v2694_v44 = vsel %vm2602_vm3, %v3582_v39, 0.0 }
 0x20d   : > { %v2797_v12 = vsel %vm2602_vm3, %v2736_v55, 0.0  ;;  %v2691_v21 = vadd.f32 %v2690_v0, %v2689_v2  ;;  %2634 = vst.msk [vmem:[%s4702_s22 + $0xf8] sm:$0xff] %vm2602_vm3, %v3584_v52  ;;  %v2737_v20 = vmul.f32 %v3584_v52, %v3584_v52  ;;  %v2792_v25 = vadd.f32 %v2791_v11, %v2790_v40 }
 0x20e   : > { %v2793_v29 = vsel %vm2602_vm3, %v2734_v24, 0.0  ;;  %2632 = vst.msk [vmem:[%s4702_s22 + $0xe8] sm:$0xff] %vm2602_vm3, %v3585_v54  ;;  %v2692_v1 = vsel %vm2602_vm3, %v3585_v54, 0.0  ;;  %v2735_v16 = vmul.f32 %v3585_v54, %v3585_v54  ;;  %v2696_v48 = vsel %vm2602_vm3, %v3584_v52, 0.0 }
 0x20f   : > { %v2799_v45 = vsel %vm2602_vm3, %v2737_v20, 0.0  ;;  %v2693_v9 = vadd.f32 %v2692_v1, %v2691_v21  ;;  %v2794_v4 = vadd.f32 %v2793_v29, %v2792_v25 }
 0x210   : > { %v2795_v5 = vsel %vm2602_vm3, %v2735_v16, 0.0 }
 0x211   : > { %v2695_v63 = vadd.f32 %v2694_v44, %v2693_v9  ;;  %v2796_v13 = vadd.f32 %v2795_v5, %v2794_v4 }
 0x213   : > { %v2697_v53 = vadd.f32 %v2696_v48, %v2695_v63  ;;  %v2798_v7 = vadd.f32 %v2797_v12, %v2796_v13 }
 0x215   : > { %v2698_v38 = vrot.slane %v2697_v53, 4  ;;  %v2800_v31 = vadd.f32 %v2799_v45, %v2798_v7 }
 0x217   : > { %v2699_v49 = vadd.f32 %v2698_v38, %v2697_v53  ;;  %v2801_v14 = vrot.slane %v2800_v31, 4 }
 0x219   : > { %v2700_v51 = vrot.slane %v2699_v49, 2  ;;  %v2802_v35 = vadd.f32 %v2801_v14, %v2800_v31 }
 0x21b   : > { %v2701_v46 = vadd.f32 %v2700_v51, %v2699_v49  ;;  %v2803_v8 = vrot.slane %v2802_v35, 2 }
 0x21d   : > { %v2702_v62 = vrot.slane %v2701_v46, 1  ;;  %v2804_v6 = vadd.f32 %v2803_v8, %v2802_v35 }
 0x21f   : > { %v2703_v32 = vadd.f32 %v2702_v62, %v2701_v46  ;;  %v2805_v3 = vrot.slane %v2804_v6, 1 }
 0x221   : > { %2705 = vst.msk [vmem:[%s265_s25] sm:$0x1] %vm2704_vm4, %v2703_v32  ;;  %v2806_v19 = vadd.f32 %v2805_v3, %v2804_v6 }
 0x223   : > { %2807 = vst.msk [vmem:[%s268_s28] sm:$0x1] %vm2704_vm4, %v2806_v19 }
 0x224 PF: > { %s17_s21 = sadd.s32 1, %s3834_s21  }
 0x225   : > { %p14_p4 = scmp.ge.s32.totalorder %s17_s21, 4  }
 0x227   :  { %16 = sbr.rel (!%p14_p4) target bundleno = 1 (0x1), region = 98 }

</bundles_post_ra>
